<compile_context>
chip_gen: v7x
topology: tpu7x:2x2x1
jax: 0.10.0
libtpu: 0.0.40
codegen_flags: <defaults>
</compile_context>

<pallas_src>
import jax
import jax.numpy as jnp
import numpy as np
from jax import lax
from jax.experimental import pallas as pl
from jax.experimental.pallas import tpu as pltpu

# ---- hyperparameters implied by BiLSTM.__init__ ---------------------------
MAX_FEATURES = 100   # opt.max_features
EMBED_SIZE   = 32    # opt.embed_size
HIDDEN       = 64    # self.hidden_size
N_CLASSES    = 4     # len(le.classes_)
LIN_PAD      = 128   # lane-dense padded width of the relu(linear(.)) stage
OUT_PAD      = 128   # lane-dense padded output width (classes live in [:4])


# --------------------------- Pallas kernel ---------------------------------
def bilstm_fused_kernel(gx_ref,       # (T, TB, 8H)  merged gate pre-activations
                        whh_ref,      # (2H, 8H)     block-structured recurrent W
                        w_lin_ref,    # (4H, LIN_PAD)
                        b_lin_ref,    # (1, LIN_PAD)
                        w_head_ref,   # (LIN_PAD, OUT_PAD) = w_fc @ w_out, zero-padded
                        b_head_ref,   # (1, OUT_PAD)
                        out_ref):     # (TB, OUT_PAD)
    T, B, G8 = gx_ref.shape
    H2 = G8 // 4                      # 2H: fused hidden width [fwd | bwd]

    whh = whh_ref[...]                # keep resident in VMEM across all T steps

    zeros = jnp.zeros((B, H2), jnp.float32)
    neg_inf = jnp.full((B, H2), -jnp.inf, jnp.float32)

    def sigmoid_cheap(x):
        # exact: sigmoid(x) == 0.5 * tanh(0.5 * x) + 0.5 ; one EUP op + VALU
        return 0.5 * jnp.tanh(0.5 * x) + 0.5

    def step(t, carry):
        h, c, s_acc, m_acc = carry
        # single (TB, 8H) load: fwd/bwd time selection was pre-merged outside
        gates = gx_ref[t] + jnp.dot(h, whh, preferred_element_type=jnp.float32)
        # lane-aligned 128-wide gate chunks: [I | F | G | O]
        i_g = sigmoid_cheap(gates[:, 0 * H2:1 * H2])
        f_g = sigmoid_cheap(gates[:, 1 * H2:2 * H2])
        g_g = jnp.tanh(gates[:, 2 * H2:3 * H2])
        o_g = sigmoid_cheap(gates[:, 3 * H2:4 * H2])
        c_new = f_g * c + i_g * g_g
        h_new = o_g * jnp.tanh(c_new)
        # sum/max pooling over time is order-invariant per column, so running
        # accumulators on the fused [h_fwd | h_bwd] state are exact.
        return (h_new, c_new, s_acc + h_new, jnp.maximum(m_acc, h_new))

    # bounded unroll: full unroll only for short recurrences
    unroll = True if T <= 32 else 4
    _, _, s_acc, m_acc = lax.fori_loop(
        0, T, step, (zeros, zeros, zeros, neg_inf), unroll=unroll)

    avg_pool = s_acc * (1.0 / T)                            # (B, 2H)
    conc = jnp.concatenate([avg_pool, m_acc], axis=1)       # (B, 4H)

    # relu(linear(.)) with 128 padded output lanes -> lane-dense (B, 128) tile
    lin = jnp.maximum(
        jnp.dot(conc, w_lin_ref[...], preferred_element_type=jnp.float32)
        + b_lin_ref[...], 0.0)
    # dropout == identity at inference; fc and out folded into one matmul
    out_ref[...] = (jnp.dot(lin, w_head_ref[...], preferred_element_type=jnp.float32)
                    + b_head_ref[...])


# --------------------- weight re-layout helpers (plain JAX) -----------------
def _interleave_gate_cols(wf, wb, H):
    # wf, wb: (in, 4H) in PyTorch gate order [i, f, g, o]
    # -> (in, 8H) with columns [i_f, i_b, f_f, f_b, g_f, g_b, o_f, o_b]
    parts = []
    for g in range(4):
        parts.append(wf[:, g * H:(g + 1) * H])
        parts.append(wb[:, g * H:(g + 1) * H])
    return jnp.concatenate(parts, axis=1)


def _block_diag_whh(whh_f, whh_b, H):
    # (H,4H) x2 -> (2H, 8H): rows 0:H map h_f -> fwd gate columns,
    # rows H:2H map h_b -> bwd gate columns, interleaved layout as above.
    z = jnp.zeros((H, H), whh_f.dtype)
    top, bot = [], []
    for g in range(4):
        top += [whh_f[:, g * H:(g + 1) * H], z]
        bot += [z, whh_b[:, g * H:(g + 1) * H]]
    return jnp.concatenate([jnp.concatenate(top, axis=1),
                            jnp.concatenate(bot, axis=1)], axis=0)


def _pick_batch_tile(B):
    # Single block on single-TensorCore parts (v5e/v6e); on v7x (2 TCs per
    # chip) prefer >=2 blocks so both cores get work, if the batch allows.
    want_blocks = 1
    try:
        if "v7" in jax.devices()[0].device_kind.lower():
            want_blocks = 2
    except Exception:
        pass
    cands = [c for c in (128, 64, 32, 16, 8) if B % c == 0]
    for c in cands:
        if B // c >= want_blocks:
            return c
    if cands:
        return cands[0]
    return B                                  # full-dim tile (sub-8 batch)


def _vmem_limit_bytes(needed):
    try:
        cap = pltpu.get_tpu_info().vmem_capacity_bytes
    except Exception:
        cap = 64 * 1024 * 1024                # conservative (v7x per-TC)
    return int(min(cap // 2, max(16 * 1024 * 1024, 4 * needed)))


def _full_spec(shape):
    return pl.BlockSpec(shape, lambda i: (0,) * len(shape))


# ----------------------------- wrapper --------------------------------------
def init_params(key):
    ks = jax.random.split(key, 16)
    H4 = 4 * HIDDEN
    s = 0.1
    return {
        "embedding": jax.random.normal(ks[0], (MAX_FEATURES, EMBED_SIZE), jnp.float32),
        # LSTM, forward direction (pre-transposed: (in, 4H), gate order i,f,g,o)
        "wih_f": s * jax.random.normal(ks[1], (EMBED_SIZE, H4), jnp.float32),
        "whh_f": s * jax.random.normal(ks[2], (HIDDEN, H4), jnp.float32),
        "b_f":   s * jax.random.normal(ks[3], (1, H4), jnp.float32),   # b_ih + b_hh
        # LSTM, backward direction
        "wih_b": s * jax.random.normal(ks[4], (EMBED_SIZE, H4), jnp.float32),
        "whh_b": s * jax.random.normal(ks[5], (HIDDEN, H4), jnp.float32),
        "b_b":   s * jax.random.normal(ks[6], (1, H4), jnp.float32),
        # head
        "w_lin": s * jax.random.normal(ks[7], (H4, 64), jnp.float32),
        "b_lin": s * jax.random.normal(ks[8], (1, 64), jnp.float32),
        "w_fc":  s * jax.random.normal(ks[9], (64, 64), jnp.float32),
        "b_fc":  s * jax.random.normal(ks[10], (1, 64), jnp.float32),
        "w_out": s * jax.random.normal(ks[11], (64, N_CLASSES), jnp.float32),
        "b_out": s * jax.random.normal(ks[12], (1, N_CLASSES), jnp.float32),
    }


@jax.jit
def bilstm_forward(x_tokens, params):
    B, T = x_tokens.shape
    H = HIDDEN
    G8 = 8 * H

    # ---- glue / weight re-layout (constant-folded or cheap under jit) ------
    # Fold the FROZEN embedding into the LSTM input weights: a (vocab, 8H)
    # gate-pre-activation table, gathered per token.  Removes the in-kernel
    # input GEMM (K=E=32, MXU-underfilled) and the gx scratch round-trip.
    wih_comb = _interleave_gate_cols(params["wih_f"], params["wih_b"], H)   # (E, 8H)
    b_comb = _interleave_gate_cols(params["b_f"], params["b_b"], H)         # (1, 8H)
    gx_table = params["embedding"] @ wih_comb + b_comb                      # (V, 8H)

    tok_tm = jnp.transpose(x_tokens, (1, 0))                                # (T, B)
    gx = jnp.take(gx_table, tok_tm, axis=0)                                 # (T, B, 8H)

    # Pre-merge fwd/bwd time selection so the recurrence body is a single
    # gx[t] load: fwd gate columns from gx[t], bwd columns from gx[T-1-t].
    fwd_cols = (jnp.arange(G8) % (2 * H)) < H                               # (8H,)
    gx_merged = jnp.where(fwd_cols, gx, gx[::-1])                           # (T, B, 8H)

    whh_blk = _block_diag_whh(params["whh_f"], params["whh_b"], H)          # (2H, 8H)

    # Lane-dense head: pad linear to 128 output lanes, fold fc+out (no
    # nonlinearity in between) into one (128, OUT_PAD) matmul with zero rows.
    w_lin_p = jnp.zeros((4 * H, LIN_PAD), jnp.float32).at[:, :64].set(params["w_lin"])
    b_lin_p = jnp.zeros((1, LIN_PAD), jnp.float32).at[:, :64].set(params["b_lin"])
    w_head = params["w_fc"] @ params["w_out"]                               # (64, C)
    b_head = params["b_fc"] @ params["w_out"] + params["b_out"]             # (1, C)
    C = w_head.shape[1]
    w_head_p = jnp.zeros((LIN_PAD, OUT_PAD), jnp.float32).at[:64, :C].set(w_head)
    b_head_p = jnp.zeros((1, OUT_PAD), jnp.float32).at[:, :C].set(b_head)

    TB = _pick_batch_tile(B)
    nb = B // TB

    # explicit VMEM budget derived from hardware capacity (v7x = 64 MiB/TC)
    needed = 4 * (2 * T * TB * G8            # double-buffered gx block
                  + 2 * H * G8               # whh
                  + 4 * H * LIN_PAD + LIN_PAD
                  + LIN_PAD * OUT_PAD + OUT_PAD
                  + 2 * TB * OUT_PAD)        # double-buffered out block
    vmem_limit = _vmem_limit_bytes(needed)

    out_padded = pl.pallas_call(
        bilstm_fused_kernel,
        out_shape=jax.ShapeDtypeStruct((B, OUT_PAD), jnp.float32),
        grid_spec=pltpu.PrefetchScalarGridSpec(
            num_scalar_prefetch=0,
            grid=(nb,),
            in_specs=[
                pl.BlockSpec((T, TB, G8), lambda i: (0, i, 0)),
                _full_spec((2 * H, G8)),
                _full_spec((4 * H, LIN_PAD)),
                _full_spec((1, LIN_PAD)),
                _full_spec((LIN_PAD, OUT_PAD)),
                _full_spec((1, OUT_PAD)),
            ],
            out_specs=pl.BlockSpec((TB, OUT_PAD), lambda i: (i, 0)),
        ),
        compiler_params=pltpu.CompilerParams(
            dimension_semantics=("parallel",),
            vmem_limit_bytes=vmem_limit),
    )(gx_merged, whh_blk, w_lin_p, b_lin_p, w_head_p, b_head_p)

    return out_padded[:, :N_CLASSES]


# ----------------------- pure-JAX reference (for checking) ------------------
def _ref_lstm_dir(emb, wih, whh, b, reverse):
    B, T, E = emb.shape
    H = whh.shape[0]

    def step(carry, x_t):
        h, c = carry
        g = x_t @ wih + h @ whh + b[0]
        i = jax.nn.sigmoid(g[:, :H]); f = jax.nn.sigmoid(g[:, H:2 * H])
        gg = jnp.tanh(g[:, 2 * H:3 * H]); o = jax.nn.sigmoid(g[:, 3 * H:])
        c = f * c + i * gg
        h = o * jnp.tanh(c)
        return (h, c), h

    xs = jnp.transpose(emb, (1, 0, 2))
    if reverse:
        xs = xs[::-1]
    _, hs = lax.scan(step, (jnp.zeros((B, H)), jnp.zeros((B, H))), xs)
    if reverse:
        hs = hs[::-1]
    return jnp.transpose(hs, (1, 0, 2))


def bilstm_reference(x_tokens, p):
    h_emb = jnp.take(p["embedding"], x_tokens, axis=0)
    hf = _ref_lstm_dir(h_emb, p["wih_f"], p["whh_f"], p["b_f"], False)
    hb = _ref_lstm_dir(h_emb, p["wih_b"], p["whh_b"], p["b_b"], True)
    h_lstm = jnp.concatenate([hf, hb], axis=-1)
    avg_pool = jnp.mean(h_lstm, axis=1)
    max_pool = jnp.max(h_lstm, axis=1)
    conc = jnp.concatenate([avg_pool, max_pool], axis=1)
    conc = jnp.maximum(conc @ p["w_lin"] + p["b_lin"][0], 0.0)
    fc_out = conc @ p["w_fc"] + p["b_fc"][0]
    return fc_out @ p["w_out"] + p["b_out"][0]


# ------------------------------- main ----------------------------------------
if __name__ == "__main__":
    key = jax.random.PRNGKey(0)
    k_tok, k_par = jax.random.split(key)

    B, T = 8, 16
    x_tokens = jax.random.randint(k_tok, (B, T), 0, MAX_FEATURES, dtype=jnp.int32)
    params = init_params(k_par)

    out = jax.block_until_ready(bilstm_forward(x_tokens, params))
    ref = jax.block_until_ready(bilstm_reference(x_tokens, params))

    np.testing.assert_allclose(np.asarray(out), np.asarray(ref),
                               rtol=1e-4, atol=1e-4)
    assert out.shape == (B, N_CLASSES)
    print("KERNEL_OK")
</pallas_src>

<mosaic_0001>
module attributes {stable_mosaic.version = 11 : i64} {
  func.func @bilstm_fused_kernel(%arg0: i32, %arg1: memref<16x8x512xf32, #tpu.memory_space<vmem>>, %arg2: memref<128x512xf32, #tpu.memory_space<vmem>>, %arg3: memref<256x128xf32, #tpu.memory_space<vmem>>, %arg4: memref<1x128xf32, #tpu.memory_space<vmem>>, %arg5: memref<128x128xf32, #tpu.memory_space<vmem>>, %arg6: memref<1x128xf32, #tpu.memory_space<vmem>>, %arg7: memref<8x128xf32, #tpu.memory_space<vmem>>) attributes {dimension_semantics = [#tpu.dimension_semantics<parallel>], iteration_bounds = array<i64: 1>, scalar_prefetch = 0 : i64, scratch_operands = 0 : i64, tpu.core_type = #tpu.core_type<tc>, window_params = [{transform_indices = @transform_0, window_bounds = array<i64: 16, 8, 512>}, {pipeline_mode = #tpu.pipeline_mode<synchronous>, transform_indices = @transform_1, window_bounds = array<i64: 128, 512>}, {pipeline_mode = #tpu.pipeline_mode<synchronous>, transform_indices = @transform_2, window_bounds = array<i64: 256, 128>}, {pipeline_mode = #tpu.pipeline_mode<synchronous>, transform_indices = @transform_3, window_bounds = array<i64: 1, 128>}, {pipeline_mode = #tpu.pipeline_mode<synchronous>, transform_indices = @transform_4, window_bounds = array<i64: 128, 128>}, {pipeline_mode = #tpu.pipeline_mode<synchronous>, transform_indices = @transform_5, window_bounds = array<i64: 1, 128>}, {transform_indices = @transform_6, window_bounds = array<i64: 8, 128>}]} {
    %c0 = arith.constant 0 : index
    %c0_0 = arith.constant 0 : index
    %0 = vector.load %arg2[%c0, %c0_0] : memref<128x512xf32, #tpu.memory_space<vmem>>, vector<128x512xf32>
    %cst = arith.constant 0.000000e+00 : f32
    %1 = vector.broadcast %cst : f32 to vector<8x128xf32>
    %cst_1 = arith.constant 0xFF800000 : f32
    %2 = vector.broadcast %cst_1 : f32 to vector<8x128xf32>
    %c0_i32 = arith.constant 0 : i32
    %3 = arith.index_cast %c0_i32 : i32 to index
    %c0_2 = arith.constant 0 : index
    %c0_3 = arith.constant 0 : index
    %4 = vector.load %arg1[%3, %c0_2, %c0_3] : memref<16x8x512xf32, #tpu.memory_space<vmem>>, vector<1x8x512xf32>
    %5 = vector.shape_cast %4 : vector<1x8x512xf32> to vector<8x512xf32>
    %cst_4 = arith.constant dense<0.000000e+00> : vector<8x512xf32>
    %6 = tpu.matmul %1, %0, %cst_4 {dimension_numbers = #tpu.dot_dimension_numbers<[1], [0], [0], [1], [0, 0, 1, 1], [], []>} : vector<8x128xf32>, vector<128x512xf32>, vector<8x512xf32> -> vector<8x512xf32>
    %7 = arith.addf %5, %6 : vector<8x512xf32>
    %8 = vector.extract_strided_slice %7 {offsets = [0, 0], sizes = [8, 128], strides = [1, 1]} : vector<8x512xf32> to vector<8x128xf32>
    %cst_5 = arith.constant 5.000000e-01 : f32
    %9 = vector.broadcast %cst_5 : f32 to vector<8x128xf32>
    %10 = arith.mulf %9, %8 : vector<8x128xf32>
    %11 = math.tanh %10 : vector<8x128xf32>
    %cst_6 = arith.constant 5.000000e-01 : f32
    %12 = vector.broadcast %cst_6 : f32 to vector<8x128xf32>
    %13 = arith.mulf %12, %11 : vector<8x128xf32>
    %cst_7 = arith.constant 5.000000e-01 : f32
    %14 = vector.broadcast %cst_7 : f32 to vector<8x128xf32>
    %15 = arith.addf %13, %14 : vector<8x128xf32>
    %16 = vector.extract_strided_slice %7 {offsets = [0, 128], sizes = [8, 128], strides = [1, 1]} : vector<8x512xf32> to vector<8x128xf32>
    %cst_8 = arith.constant 5.000000e-01 : f32
    %17 = vector.broadcast %cst_8 : f32 to vector<8x128xf32>
    %18 = arith.mulf %17, %16 : vector<8x128xf32>
    %19 = math.tanh %18 : vector<8x128xf32>
    %cst_9 = arith.constant 5.000000e-01 : f32
    %20 = vector.broadcast %cst_9 : f32 to vector<8x128xf32>
    %21 = arith.mulf %20, %19 : vector<8x128xf32>
    %cst_10 = arith.constant 5.000000e-01 : f32
    %22 = vector.broadcast %cst_10 : f32 to vector<8x128xf32>
    %23 = arith.addf %21, %22 : vector<8x128xf32>
    %24 = vector.extract_strided_slice %7 {offsets = [0, 256], sizes = [8, 128], strides = [1, 1]} : vector<8x512xf32> to vector<8x128xf32>
    %25 = math.tanh %24 : vector<8x128xf32>
    %26 = vector.extract_strided_slice %7 {offsets = [0, 384], sizes = [8, 128], strides = [1, 1]} : vector<8x512xf32> to vector<8x128xf32>
    %cst_11 = arith.constant 5.000000e-01 : f32
    %27 = vector.broadcast %cst_11 : f32 to vector<8x128xf32>
    %28 = arith.mulf %27, %26 : vector<8x128xf32>
    %29 = math.tanh %28 : vector<8x128xf32>
    %cst_12 = arith.constant 5.000000e-01 : f32
    %30 = vector.broadcast %cst_12 : f32 to vector<8x128xf32>
    %31 = arith.mulf %30, %29 : vector<8x128xf32>
    %cst_13 = arith.constant 5.000000e-01 : f32
    %32 = vector.broadcast %cst_13 : f32 to vector<8x128xf32>
    %33 = arith.addf %31, %32 : vector<8x128xf32>
    %34 = arith.mulf %23, %1 : vector<8x128xf32>
    %35 = arith.mulf %15, %25 : vector<8x128xf32>
    %36 = arith.addf %34, %35 : vector<8x128xf32>
    %37 = math.tanh %36 : vector<8x128xf32>
    %38 = arith.mulf %33, %37 : vector<8x128xf32>
    %39 = arith.addf %1, %38 : vector<8x128xf32>
    %40 = arith.maximumf %2, %38 : vector<8x128xf32>
    %c1_i32 = arith.constant 1 : i32
    %41 = arith.index_cast %c1_i32 : i32 to index
    %c0_14 = arith.constant 0 : index
    %c0_15 = arith.constant 0 : index
    %42 = vector.load %arg1[%41, %c0_14, %c0_15] : memref<16x8x512xf32, #tpu.memory_space<vmem>>, vector<1x8x512xf32>
    %43 = vector.shape_cast %42 : vector<1x8x512xf32> to vector<8x512xf32>
    %cst_16 = arith.constant dense<0.000000e+00> : vector<8x512xf32>
    %44 = tpu.matmul %38, %0, %cst_16 {dimension_numbers = #tpu.dot_dimension_numbers<[1], [0], [0], [1], [0, 0, 1, 1], [], []>} : vector<8x128xf32>, vector<128x512xf32>, vector<8x512xf32> -> vector<8x512xf32>
    %45 = arith.addf %43, %44 : vector<8x512xf32>
    %46 = vector.extract_strided_slice %45 {offsets = [0, 0], sizes = [8, 128], strides = [1, 1]} : vector<8x512xf32> to vector<8x128xf32>
    %cst_17 = arith.constant 5.000000e-01 : f32
    %47 = vector.broadcast %cst_17 : f32 to vector<8x128xf32>
    %48 = arith.mulf %47, %46 : vector<8x128xf32>
    %49 = math.tanh %48 : vector<8x128xf32>
    %cst_18 = arith.constant 5.000000e-01 : f32
    %50 = vector.broadcast %cst_18 : f32 to vector<8x128xf32>
    %51 = arith.mulf %50, %49 : vector<8x128xf32>
    %cst_19 = arith.constant 5.000000e-01 : f32
    %52 = vector.broadcast %cst_19 : f32 to vector<8x128xf32>
    %53 = arith.addf %51, %52 : vector<8x128xf32>
    %54 = vector.extract_strided_slice %45 {offsets = [0, 128], sizes = [8, 128], strides = [1, 1]} : vector<8x512xf32> to vector<8x128xf32>
    %cst_20 = arith.constant 5.000000e-01 : f32
    %55 = vector.broadcast %cst_20 : f32 to vector<8x128xf32>
    %56 = arith.mulf %55, %54 : vector<8x128xf32>
    %57 = math.tanh %56 : vector<8x128xf32>
    %cst_21 = arith.constant 5.000000e-01 : f32
    %58 = vector.broadcast %cst_21 : f32 to vector<8x128xf32>
    %59 = arith.mulf %58, %57 : vector<8x128xf32>
    %cst_22 = arith.constant 5.000000e-01 : f32
    %60 = vector.broadcast %cst_22 : f32 to vector<8x128xf32>
    %61 = arith.addf %59, %60 : vector<8x128xf32>
    %62 = vector.extract_strided_slice %45 {offsets = [0, 256], sizes = [8, 128], strides = [1, 1]} : vector<8x512xf32> to vector<8x128xf32>
    %63 = math.tanh %62 : vector<8x128xf32>
    %64 = vector.extract_strided_slice %45 {offsets = [0, 384], sizes = [8, 128], strides = [1, 1]} : vector<8x512xf32> to vector<8x128xf32>
    %cst_23 = arith.constant 5.000000e-01 : f32
    %65 = vector.broadcast %cst_23 : f32 to vector<8x128xf32>
    %66 = arith.mulf %65, %64 : vector<8x128xf32>
    %67 = math.tanh %66 : vector<8x128xf32>
    %cst_24 = arith.constant 5.000000e-01 : f32
    %68 = vector.broadcast %cst_24 : f32 to vector<8x128xf32>
    %69 = arith.mulf %68, %67 : vector<8x128xf32>
    %cst_25 = arith.constant 5.000000e-01 : f32
    %70 = vector.broadcast %cst_25 : f32 to vector<8x128xf32>
    %71 = arith.addf %69, %70 : vector<8x128xf32>
    %72 = arith.mulf %61, %36 : vector<8x128xf32>
    %73 = arith.mulf %53, %63 : vector<8x128xf32>
    %74 = arith.addf %72, %73 : vector<8x128xf32>
    %75 = math.tanh %74 : vector<8x128xf32>
    %76 = arith.mulf %71, %75 : vector<8x128xf32>
    %77 = arith.addf %39, %76 : vector<8x128xf32>
    %78 = arith.maximumf %40, %76 : vector<8x128xf32>
    %c2_i32 = arith.constant 2 : i32
    %79 = arith.index_cast %c2_i32 : i32 to index
    %c0_26 = arith.constant 0 : index
    %c0_27 = arith.constant 0 : index
    %80 = vector.load %arg1[%79, %c0_26, %c0_27] : memref<16x8x512xf32, #tpu.memory_space<vmem>>, vector<1x8x512xf32>
    %81 = vector.shape_cast %80 : vector<1x8x512xf32> to vector<8x512xf32>
    %cst_28 = arith.constant dense<0.000000e+00> : vector<8x512xf32>
    %82 = tpu.matmul %76, %0, %cst_28 {dimension_numbers = #tpu.dot_dimension_numbers<[1], [0], [0], [1], [0, 0, 1, 1], [], []>} : vector<8x128xf32>, vector<128x512xf32>, vector<8x512xf32> -> vector<8x512xf32>
    %83 = arith.addf %81, %82 : vector<8x512xf32>
    %84 = vector.extract_strided_slice %83 {offsets = [0, 0], sizes = [8, 128], strides = [1, 1]} : vector<8x512xf32> to vector<8x128xf32>
    %cst_29 = arith.constant 5.000000e-01 : f32
    %85 = vector.broadcast %cst_29 : f32 to vector<8x128xf32>
    %86 = arith.mulf %85, %84 : vector<8x128xf32>
    %87 = math.tanh %86 : vector<8x128xf32>
    %cst_30 = arith.constant 5.000000e-01 : f32
    %88 = vector.broadcast %cst_30 : f32 to vector<8x128xf32>
    %89 = arith.mulf %88, %87 : vector<8x128xf32>
    %cst_31 = arith.constant 5.000000e-01 : f32
    %90 = vector.broadcast %cst_31 : f32 to vector<8x128xf32>
    %91 = arith.addf %89, %90 : vector<8x128xf32>
    %92 = vector.extract_strided_slice %83 {offsets = [0, 128], sizes = [8, 128], strides = [1, 1]} : vector<8x512xf32> to vector<8x128xf32>
    %cst_32 = arith.constant 5.000000e-01 : f32
    %93 = vector.broadcast %cst_32 : f32 to vector<8x128xf32>
    %94 = arith.mulf %93, %92 : vector<8x128xf32>
    %95 = math.tanh %94 : vector<8x128xf32>
    %cst_33 = arith.constant 5.000000e-01 : f32
    %96 = vector.broadcast %cst_33 : f32 to vector<8x128xf32>
    %97 = arith.mulf %96, %95 : vector<8x128xf32>
    %cst_34 = arith.constant 5.000000e-01 : f32
    %98 = vector.broadcast %cst_34 : f32 to vector<8x128xf32>
    %99 = arith.addf %97, %98 : vector<8x128xf32>
    %100 = vector.extract_strided_slice %83 {offsets = [0, 256], sizes = [8, 128], strides = [1, 1]} : vector<8x512xf32> to vector<8x128xf32>
    %101 = math.tanh %100 : vector<8x128xf32>
    %102 = vector.extract_strided_slice %83 {offsets = [0, 384], sizes = [8, 128], strides = [1, 1]} : vector<8x512xf32> to vector<8x128xf32>
    %cst_35 = arith.constant 5.000000e-01 : f32
    %103 = vector.broadcast %cst_35 : f32 to vector<8x128xf32>
    %104 = arith.mulf %103, %102 : vector<8x128xf32>
    %105 = math.tanh %104 : vector<8x128xf32>
    %cst_36 = arith.constant 5.000000e-01 : f32
    %106 = vector.broadcast %cst_36 : f32 to vector<8x128xf32>
    %107 = arith.mulf %106, %105 : vector<8x128xf32>
    %cst_37 = arith.constant 5.000000e-01 : f32
    %108 = vector.broadcast %cst_37 : f32 to vector<8x128xf32>
    %109 = arith.addf %107, %108 : vector<8x128xf32>
    %110 = arith.mulf %99, %74 : vector<8x128xf32>
    %111 = arith.mulf %91, %101 : vector<8x128xf32>
    %112 = arith.addf %110, %111 : vector<8x128xf32>
    %113 = math.tanh %112 : vector<8x128xf32>
    %114 = arith.mulf %109, %113 : vector<8x128xf32>
    %115 = arith.addf %77, %114 : vector<8x128xf32>
    %116 = arith.maximumf %78, %114 : vector<8x128xf32>
    %c3_i32 = arith.constant 3 : i32
    %117 = arith.index_cast %c3_i32 : i32 to index
    %c0_38 = arith.constant 0 : index
    %c0_39 = arith.constant 0 : index
    %118 = vector.load %arg1[%117, %c0_38, %c0_39] : memref<16x8x512xf32, #tpu.memory_space<vmem>>, vector<1x8x512xf32>
    %119 = vector.shape_cast %118 : vector<1x8x512xf32> to vector<8x512xf32>
    %cst_40 = arith.constant dense<0.000000e+00> : vector<8x512xf32>
    %120 = tpu.matmul %114, %0, %cst_40 {dimension_numbers = #tpu.dot_dimension_numbers<[1], [0], [0], [1], [0, 0, 1, 1], [], []>} : vector<8x128xf32>, vector<128x512xf32>, vector<8x512xf32> -> vector<8x512xf32>
    %121 = arith.addf %119, %120 : vector<8x512xf32>
    %122 = vector.extract_strided_slice %121 {offsets = [0, 0], sizes = [8, 128], strides = [1, 1]} : vector<8x512xf32> to vector<8x128xf32>
    %cst_41 = arith.constant 5.000000e-01 : f32
    %123 = vector.broadcast %cst_41 : f32 to vector<8x128xf32>
    %124 = arith.mulf %123, %122 : vector<8x128xf32>
    %125 = math.tanh %124 : vector<8x128xf32>
    %cst_42 = arith.constant 5.000000e-01 : f32
    %126 = vector.broadcast %cst_42 : f32 to vector<8x128xf32>
    %127 = arith.mulf %126, %125 : vector<8x128xf32>
    %cst_43 = arith.constant 5.000000e-01 : f32
    %128 = vector.broadcast %cst_43 : f32 to vector<8x128xf32>
    %129 = arith.addf %127, %128 : vector<8x128xf32>
    %130 = vector.extract_strided_slice %121 {offsets = [0, 128], sizes = [8, 128], strides = [1, 1]} : vector<8x512xf32> to vector<8x128xf32>
    %cst_44 = arith.constant 5.000000e-01 : f32
    %131 = vector.broadcast %cst_44 : f32 to vector<8x128xf32>
    %132 = arith.mulf %131, %130 : vector<8x128xf32>
    %133 = math.tanh %132 : vector<8x128xf32>
    %cst_45 = arith.constant 5.000000e-01 : f32
    %134 = vector.broadcast %cst_45 : f32 to vector<8x128xf32>
    %135 = arith.mulf %134, %133 : vector<8x128xf32>
    %cst_46 = arith.constant 5.000000e-01 : f32
    %136 = vector.broadcast %cst_46 : f32 to vector<8x128xf32>
    %137 = arith.addf %135, %136 : vector<8x128xf32>
    %138 = vector.extract_strided_slice %121 {offsets = [0, 256], sizes = [8, 128], strides = [1, 1]} : vector<8x512xf32> to vector<8x128xf32>
    %139 = math.tanh %138 : vector<8x128xf32>
    %140 = vector.extract_strided_slice %121 {offsets = [0, 384], sizes = [8, 128], strides = [1, 1]} : vector<8x512xf32> to vector<8x128xf32>
    %cst_47 = arith.constant 5.000000e-01 : f32
    %141 = vector.broadcast %cst_47 : f32 to vector<8x128xf32>
    %142 = arith.mulf %141, %140 : vector<8x128xf32>
    %143 = math.tanh %142 : vector<8x128xf32>
    %cst_48 = arith.constant 5.000000e-01 : f32
    %144 = vector.broadcast %cst_48 : f32 to vector<8x128xf32>
    %145 = arith.mulf %144, %143 : vector<8x128xf32>
    %cst_49 = arith.constant 5.000000e-01 : f32
    %146 = vector.broadcast %cst_49 : f32 to vector<8x128xf32>
    %147 = arith.addf %145, %146 : vector<8x128xf32>
    %148 = arith.mulf %137, %112 : vector<8x128xf32>
    %149 = arith.mulf %129, %139 : vector<8x128xf32>
    %150 = arith.addf %148, %149 : vector<8x128xf32>
    %151 = math.tanh %150 : vector<8x128xf32>
    %152 = arith.mulf %147, %151 : vector<8x128xf32>
    %153 = arith.addf %115, %152 : vector<8x128xf32>
    %154 = arith.maximumf %116, %152 : vector<8x128xf32>
    %c4_i32 = arith.constant 4 : i32
    %155 = arith.index_cast %c4_i32 : i32 to index
    %c0_50 = arith.constant 0 : index
    %c0_51 = arith.constant 0 : index
    %156 = vector.load %arg1[%155, %c0_50, %c0_51] : memref<16x8x512xf32, #tpu.memory_space<vmem>>, vector<1x8x512xf32>
    %157 = vector.shape_cast %156 : vector<1x8x512xf32> to vector<8x512xf32>
    %cst_52 = arith.constant dense<0.000000e+00> : vector<8x512xf32>
    %158 = tpu.matmul %152, %0, %cst_52 {dimension_numbers = #tpu.dot_dimension_numbers<[1], [0], [0], [1], [0, 0, 1, 1], [], []>} : vector<8x128xf32>, vector<128x512xf32>, vector<8x512xf32> -> vector<8x512xf32>
    %159 = arith.addf %157, %158 : vector<8x512xf32>
    %160 = vector.extract_strided_slice %159 {offsets = [0, 0], sizes = [8, 128], strides = [1, 1]} : vector<8x512xf32> to vector<8x128xf32>
    %cst_53 = arith.constant 5.000000e-01 : f32
    %161 = vector.broadcast %cst_53 : f32 to vector<8x128xf32>
    %162 = arith.mulf %161, %160 : vector<8x128xf32>
    %163 = math.tanh %162 : vector<8x128xf32>
    %cst_54 = arith.constant 5.000000e-01 : f32
    %164 = vector.broadcast %cst_54 : f32 to vector<8x128xf32>
    %165 = arith.mulf %164, %163 : vector<8x128xf32>
    %cst_55 = arith.constant 5.000000e-01 : f32
    %166 = vector.broadcast %cst_55 : f32 to vector<8x128xf32>
    %167 = arith.addf %165, %166 : vector<8x128xf32>
    %168 = vector.extract_strided_slice %159 {offsets = [0, 128], sizes = [8, 128], strides = [1, 1]} : vector<8x512xf32> to vector<8x128xf32>
    %cst_56 = arith.constant 5.000000e-01 : f32
    %169 = vector.broadcast %cst_56 : f32 to vector<8x128xf32>
    %170 = arith.mulf %169, %168 : vector<8x128xf32>
    %171 = math.tanh %170 : vector<8x128xf32>
    %cst_57 = arith.constant 5.000000e-01 : f32
    %172 = vector.broadcast %cst_57 : f32 to vector<8x128xf32>
    %173 = arith.mulf %172, %171 : vector<8x128xf32>
    %cst_58 = arith.constant 5.000000e-01 : f32
    %174 = vector.broadcast %cst_58 : f32 to vector<8x128xf32>
    %175 = arith.addf %173, %174 : vector<8x128xf32>
    %176 = vector.extract_strided_slice %159 {offsets = [0, 256], sizes = [8, 128], strides = [1, 1]} : vector<8x512xf32> to vector<8x128xf32>
    %177 = math.tanh %176 : vector<8x128xf32>
    %178 = vector.extract_strided_slice %159 {offsets = [0, 384], sizes = [8, 128], strides = [1, 1]} : vector<8x512xf32> to vector<8x128xf32>
    %cst_59 = arith.constant 5.000000e-01 : f32
    %179 = vector.broadcast %cst_59 : f32 to vector<8x128xf32>
    %180 = arith.mulf %179, %178 : vector<8x128xf32>
    %181 = math.tanh %180 : vector<8x128xf32>
    %cst_60 = arith.constant 5.000000e-01 : f32
    %182 = vector.broadcast %cst_60 : f32 to vector<8x128xf32>
    %183 = arith.mulf %182, %181 : vector<8x128xf32>
    %cst_61 = arith.constant 5.000000e-01 : f32
    %184 = vector.broadcast %cst_61 : f32 to vector<8x128xf32>
    %185 = arith.addf %183, %184 : vector<8x128xf32>
    %186 = arith.mulf %175, %150 : vector<8x128xf32>
    %187 = arith.mulf %167, %177 : vector<8x128xf32>
    %188 = arith.addf %186, %187 : vector<8x128xf32>
    %189 = math.tanh %188 : vector<8x128xf32>
    %190 = arith.mulf %185, %189 : vector<8x128xf32>
    %191 = arith.addf %153, %190 : vector<8x128xf32>
    %192 = arith.maximumf %154, %190 : vector<8x128xf32>
    %c5_i32 = arith.constant 5 : i32
    %193 = arith.index_cast %c5_i32 : i32 to index
    %c0_62 = arith.constant 0 : index
    %c0_63 = arith.constant 0 : index
    %194 = vector.load %arg1[%193, %c0_62, %c0_63] : memref<16x8x512xf32, #tpu.memory_space<vmem>>, vector<1x8x512xf32>
    %195 = vector.shape_cast %194 : vector<1x8x512xf32> to vector<8x512xf32>
    %cst_64 = arith.constant dense<0.000000e+00> : vector<8x512xf32>
    %196 = tpu.matmul %190, %0, %cst_64 {dimension_numbers = #tpu.dot_dimension_numbers<[1], [0], [0], [1], [0, 0, 1, 1], [], []>} : vector<8x128xf32>, vector<128x512xf32>, vector<8x512xf32> -> vector<8x512xf32>
    %197 = arith.addf %195, %196 : vector<8x512xf32>
    %198 = vector.extract_strided_slice %197 {offsets = [0, 0], sizes = [8, 128], strides = [1, 1]} : vector<8x512xf32> to vector<8x128xf32>
    %cst_65 = arith.constant 5.000000e-01 : f32
    %199 = vector.broadcast %cst_65 : f32 to vector<8x128xf32>
    %200 = arith.mulf %199, %198 : vector<8x128xf32>
    %201 = math.tanh %200 : vector<8x128xf32>
    %cst_66 = arith.constant 5.000000e-01 : f32
    %202 = vector.broadcast %cst_66 : f32 to vector<8x128xf32>
    %203 = arith.mulf %202, %201 : vector<8x128xf32>
    %cst_67 = arith.constant 5.000000e-01 : f32
    %204 = vector.broadcast %cst_67 : f32 to vector<8x128xf32>
    %205 = arith.addf %203, %204 : vector<8x128xf32>
    %206 = vector.extract_strided_slice %197 {offsets = [0, 128], sizes = [8, 128], strides = [1, 1]} : vector<8x512xf32> to vector<8x128xf32>
    %cst_68 = arith.constant 5.000000e-01 : f32
    %207 = vector.broadcast %cst_68 : f32 to vector<8x128xf32>
    %208 = arith.mulf %207, %206 : vector<8x128xf32>
    %209 = math.tanh %208 : vector<8x128xf32>
    %cst_69 = arith.constant 5.000000e-01 : f32
    %210 = vector.broadcast %cst_69 : f32 to vector<8x128xf32>
    %211 = arith.mulf %210, %209 : vector<8x128xf32>
    %cst_70 = arith.constant 5.000000e-01 : f32
    %212 = vector.broadcast %cst_70 : f32 to vector<8x128xf32>
    %213 = arith.addf %211, %212 : vector<8x128xf32>
    %214 = vector.extract_strided_slice %197 {offsets = [0, 256], sizes = [8, 128], strides = [1, 1]} : vector<8x512xf32> to vector<8x128xf32>
    %215 = math.tanh %214 : vector<8x128xf32>
    %216 = vector.extract_strided_slice %197 {offsets = [0, 384], sizes = [8, 128], strides = [1, 1]} : vector<8x512xf32> to vector<8x128xf32>
    %cst_71 = arith.constant 5.000000e-01 : f32
    %217 = vector.broadcast %cst_71 : f32 to vector<8x128xf32>
    %218 = arith.mulf %217, %216 : vector<8x128xf32>
    %219 = math.tanh %218 : vector<8x128xf32>
    %cst_72 = arith.constant 5.000000e-01 : f32
    %220 = vector.broadcast %cst_72 : f32 to vector<8x128xf32>
    %221 = arith.mulf %220, %219 : vector<8x128xf32>
    %cst_73 = arith.constant 5.000000e-01 : f32
    %222 = vector.broadcast %cst_73 : f32 to vector<8x128xf32>
    %223 = arith.addf %221, %222 : vector<8x128xf32>
    %224 = arith.mulf %213, %188 : vector<8x128xf32>
    %225 = arith.mulf %205, %215 : vector<8x128xf32>
    %226 = arith.addf %224, %225 : vector<8x128xf32>
    %227 = math.tanh %226 : vector<8x128xf32>
    %228 = arith.mulf %223, %227 : vector<8x128xf32>
    %229 = arith.addf %191, %228 : vector<8x128xf32>
    %230 = arith.maximumf %192, %228 : vector<8x128xf32>
    %c6_i32 = arith.constant 6 : i32
    %231 = arith.index_cast %c6_i32 : i32 to index
    %c0_74 = arith.constant 0 : index
    %c0_75 = arith.constant 0 : index
    %232 = vector.load %arg1[%231, %c0_74, %c0_75] : memref<16x8x512xf32, #tpu.memory_space<vmem>>, vector<1x8x512xf32>
    %233 = vector.shape_cast %232 : vector<1x8x512xf32> to vector<8x512xf32>
    %cst_76 = arith.constant dense<0.000000e+00> : vector<8x512xf32>
    %234 = tpu.matmul %228, %0, %cst_76 {dimension_numbers = #tpu.dot_dimension_numbers<[1], [0], [0], [1], [0, 0, 1, 1], [], []>} : vector<8x128xf32>, vector<128x512xf32>, vector<8x512xf32> -> vector<8x512xf32>
    %235 = arith.addf %233, %234 : vector<8x512xf32>
    %236 = vector.extract_strided_slice %235 {offsets = [0, 0], sizes = [8, 128], strides = [1, 1]} : vector<8x512xf32> to vector<8x128xf32>
    %cst_77 = arith.constant 5.000000e-01 : f32
    %237 = vector.broadcast %cst_77 : f32 to vector<8x128xf32>
    %238 = arith.mulf %237, %236 : vector<8x128xf32>
    %239 = math.tanh %238 : vector<8x128xf32>
    %cst_78 = arith.constant 5.000000e-01 : f32
    %240 = vector.broadcast %cst_78 : f32 to vector<8x128xf32>
    %241 = arith.mulf %240, %239 : vector<8x128xf32>
    %cst_79 = arith.constant 5.000000e-01 : f32
    %242 = vector.broadcast %cst_79 : f32 to vector<8x128xf32>
    %243 = arith.addf %241, %242 : vector<8x128xf32>
    %244 = vector.extract_strided_slice %235 {offsets = [0, 128], sizes = [8, 128], strides = [1, 1]} : vector<8x512xf32> to vector<8x128xf32>
    %cst_80 = arith.constant 5.000000e-01 : f32
    %245 = vector.broadcast %cst_80 : f32 to vector<8x128xf32>
    %246 = arith.mulf %245, %244 : vector<8x128xf32>
    %247 = math.tanh %246 : vector<8x128xf32>
    %cst_81 = arith.constant 5.000000e-01 : f32
    %248 = vector.broadcast %cst_81 : f32 to vector<8x128xf32>
    %249 = arith.mulf %248, %247 : vector<8x128xf32>
    %cst_82 = arith.constant 5.000000e-01 : f32
    %250 = vector.broadcast %cst_82 : f32 to vector<8x128xf32>
    %251 = arith.addf %249, %250 : vector<8x128xf32>
    %252 = vector.extract_strided_slice %235 {offsets = [0, 256], sizes = [8, 128], strides = [1, 1]} : vector<8x512xf32> to vector<8x128xf32>
    %253 = math.tanh %252 : vector<8x128xf32>
    %254 = vector.extract_strided_slice %235 {offsets = [0, 384], sizes = [8, 128], strides = [1, 1]} : vector<8x512xf32> to vector<8x128xf32>
    %cst_83 = arith.constant 5.000000e-01 : f32
    %255 = vector.broadcast %cst_83 : f32 to vector<8x128xf32>
    %256 = arith.mulf %255, %254 : vector<8x128xf32>
    %257 = math.tanh %256 : vector<8x128xf32>
    %cst_84 = arith.constant 5.000000e-01 : f32
    %258 = vector.broadcast %cst_84 : f32 to vector<8x128xf32>
    %259 = arith.mulf %258, %257 : vector<8x128xf32>
    %cst_85 = arith.constant 5.000000e-01 : f32
    %260 = vector.broadcast %cst_85 : f32 to vector<8x128xf32>
    %261 = arith.addf %259, %260 : vector<8x128xf32>
    %262 = arith.mulf %251, %226 : vector<8x128xf32>
    %263 = arith.mulf %243, %253 : vector<8x128xf32>
    %264 = arith.addf %262, %263 : vector<8x128xf32>
    %265 = math.tanh %264 : vector<8x128xf32>
    %266 = arith.mulf %261, %265 : vector<8x128xf32>
    %267 = arith.addf %229, %266 : vector<8x128xf32>
    %268 = arith.maximumf %230, %266 : vector<8x128xf32>
    %c7_i32 = arith.constant 7 : i32
    %269 = arith.index_cast %c7_i32 : i32 to index
    %c0_86 = arith.constant 0 : index
    %c0_87 = arith.constant 0 : index
    %270 = vector.load %arg1[%269, %c0_86, %c0_87] : memref<16x8x512xf32, #tpu.memory_space<vmem>>, vector<1x8x512xf32>
    %271 = vector.shape_cast %270 : vector<1x8x512xf32> to vector<8x512xf32>
    %cst_88 = arith.constant dense<0.000000e+00> : vector<8x512xf32>
    %272 = tpu.matmul %266, %0, %cst_88 {dimension_numbers = #tpu.dot_dimension_numbers<[1], [0], [0], [1], [0, 0, 1, 1], [], []>} : vector<8x128xf32>, vector<128x512xf32>, vector<8x512xf32> -> vector<8x512xf32>
    %273 = arith.addf %271, %272 : vector<8x512xf32>
    %274 = vector.extract_strided_slice %273 {offsets = [0, 0], sizes = [8, 128], strides = [1, 1]} : vector<8x512xf32> to vector<8x128xf32>
    %cst_89 = arith.constant 5.000000e-01 : f32
    %275 = vector.broadcast %cst_89 : f32 to vector<8x128xf32>
    %276 = arith.mulf %275, %274 : vector<8x128xf32>
    %277 = math.tanh %276 : vector<8x128xf32>
    %cst_90 = arith.constant 5.000000e-01 : f32
    %278 = vector.broadcast %cst_90 : f32 to vector<8x128xf32>
    %279 = arith.mulf %278, %277 : vector<8x128xf32>
    %cst_91 = arith.constant 5.000000e-01 : f32
    %280 = vector.broadcast %cst_91 : f32 to vector<8x128xf32>
    %281 = arith.addf %279, %280 : vector<8x128xf32>
    %282 = vector.extract_strided_slice %273 {offsets = [0, 128], sizes = [8, 128], strides = [1, 1]} : vector<8x512xf32> to vector<8x128xf32>
    %cst_92 = arith.constant 5.000000e-01 : f32
    %283 = vector.broadcast %cst_92 : f32 to vector<8x128xf32>
    %284 = arith.mulf %283, %282 : vector<8x128xf32>
    %285 = math.tanh %284 : vector<8x128xf32>
    %cst_93 = arith.constant 5.000000e-01 : f32
    %286 = vector.broadcast %cst_93 : f32 to vector<8x128xf32>
    %287 = arith.mulf %286, %285 : vector<8x128xf32>
    %cst_94 = arith.constant 5.000000e-01 : f32
    %288 = vector.broadcast %cst_94 : f32 to vector<8x128xf32>
    %289 = arith.addf %287, %288 : vector<8x128xf32>
    %290 = vector.extract_strided_slice %273 {offsets = [0, 256], sizes = [8, 128], strides = [1, 1]} : vector<8x512xf32> to vector<8x128xf32>
    %291 = math.tanh %290 : vector<8x128xf32>
    %292 = vector.extract_strided_slice %273 {offsets = [0, 384], sizes = [8, 128], strides = [1, 1]} : vector<8x512xf32> to vector<8x128xf32>
    %cst_95 = arith.constant 5.000000e-01 : f32
    %293 = vector.broadcast %cst_95 : f32 to vector<8x128xf32>
    %294 = arith.mulf %293, %292 : vector<8x128xf32>
    %295 = math.tanh %294 : vector<8x128xf32>
    %cst_96 = arith.constant 5.000000e-01 : f32
    %296 = vector.broadcast %cst_96 : f32 to vector<8x128xf32>
    %297 = arith.mulf %296, %295 : vector<8x128xf32>
    %cst_97 = arith.constant 5.000000e-01 : f32
    %298 = vector.broadcast %cst_97 : f32 to vector<8x128xf32>
    %299 = arith.addf %297, %298 : vector<8x128xf32>
    %300 = arith.mulf %289, %264 : vector<8x128xf32>
    %301 = arith.mulf %281, %291 : vector<8x128xf32>
    %302 = arith.addf %300, %301 : vector<8x128xf32>
    %303 = math.tanh %302 : vector<8x128xf32>
    %304 = arith.mulf %299, %303 : vector<8x128xf32>
    %305 = arith.addf %267, %304 : vector<8x128xf32>
    %306 = arith.maximumf %268, %304 : vector<8x128xf32>
    %c8_i32 = arith.constant 8 : i32
    %307 = arith.index_cast %c8_i32 : i32 to index
    %c0_98 = arith.constant 0 : index
    %c0_99 = arith.constant 0 : index
    %308 = vector.load %arg1[%307, %c0_98, %c0_99] : memref<16x8x512xf32, #tpu.memory_space<vmem>>, vector<1x8x512xf32>
    %309 = vector.shape_cast %308 : vector<1x8x512xf32> to vector<8x512xf32>
    %cst_100 = arith.constant dense<0.000000e+00> : vector<8x512xf32>
    %310 = tpu.matmul %304, %0, %cst_100 {dimension_numbers = #tpu.dot_dimension_numbers<[1], [0], [0], [1], [0, 0, 1, 1], [], []>} : vector<8x128xf32>, vector<128x512xf32>, vector<8x512xf32> -> vector<8x512xf32>
    %311 = arith.addf %309, %310 : vector<8x512xf32>
    %312 = vector.extract_strided_slice %311 {offsets = [0, 0], sizes = [8, 128], strides = [1, 1]} : vector<8x512xf32> to vector<8x128xf32>
    %cst_101 = arith.constant 5.000000e-01 : f32
    %313 = vector.broadcast %cst_101 : f32 to vector<8x128xf32>
    %314 = arith.mulf %313, %312 : vector<8x128xf32>
    %315 = math.tanh %314 : vector<8x128xf32>
    %cst_102 = arith.constant 5.000000e-01 : f32
    %316 = vector.broadcast %cst_102 : f32 to vector<8x128xf32>
    %317 = arith.mulf %316, %315 : vector<8x128xf32>
    %cst_103 = arith.constant 5.000000e-01 : f32
    %318 = vector.broadcast %cst_103 : f32 to vector<8x128xf32>
    %319 = arith.addf %317, %318 : vector<8x128xf32>
    %320 = vector.extract_strided_slice %311 {offsets = [0, 128], sizes = [8, 128], strides = [1, 1]} : vector<8x512xf32> to vector<8x128xf32>
    %cst_104 = arith.constant 5.000000e-01 : f32
    %321 = vector.broadcast %cst_104 : f32 to vector<8x128xf32>
    %322 = arith.mulf %321, %320 : vector<8x128xf32>
    %323 = math.tanh %322 : vector<8x128xf32>
    %cst_105 = arith.constant 5.000000e-01 : f32
    %324 = vector.broadcast %cst_105 : f32 to vector<8x128xf32>
    %325 = arith.mulf %324, %323 : vector<8x128xf32>
    %cst_106 = arith.constant 5.000000e-01 : f32
    %326 = vector.broadcast %cst_106 : f32 to vector<8x128xf32>
    %327 = arith.addf %325, %326 : vector<8x128xf32>
    %328 = vector.extract_strided_slice %311 {offsets = [0, 256], sizes = [8, 128], strides = [1, 1]} : vector<8x512xf32> to vector<8x128xf32>
    %329 = math.tanh %328 : vector<8x128xf32>
    %330 = vector.extract_strided_slice %311 {offsets = [0, 384], sizes = [8, 128], strides = [1, 1]} : vector<8x512xf32> to vector<8x128xf32>
    %cst_107 = arith.constant 5.000000e-01 : f32
    %331 = vector.broadcast %cst_107 : f32 to vector<8x128xf32>
    %332 = arith.mulf %331, %330 : vector<8x128xf32>
    %333 = math.tanh %332 : vector<8x128xf32>
    %cst_108 = arith.constant 5.000000e-01 : f32
    %334 = vector.broadcast %cst_108 : f32 to vector<8x128xf32>
    %335 = arith.mulf %334, %333 : vector<8x128xf32>
    %cst_109 = arith.constant 5.000000e-01 : f32
    %336 = vector.broadcast %cst_109 : f32 to vector<8x128xf32>
    %337 = arith.addf %335, %336 : vector<8x128xf32>
    %338 = arith.mulf %327, %302 : vector<8x128xf32>
    %339 = arith.mulf %319, %329 : vector<8x128xf32>
    %340 = arith.addf %338, %339 : vector<8x128xf32>
    %341 = math.tanh %340 : vector<8x128xf32>
    %342 = arith.mulf %337, %341 : vector<8x128xf32>
    %343 = arith.addf %305, %342 : vector<8x128xf32>
    %344 = arith.maximumf %306, %342 : vector<8x128xf32>
    %c9_i32 = arith.constant 9 : i32
    %345 = arith.index_cast %c9_i32 : i32 to index
    %c0_110 = arith.constant 0 : index
    %c0_111 = arith.constant 0 : index
    %346 = vector.load %arg1[%345, %c0_110, %c0_111] : memref<16x8x512xf32, #tpu.memory_space<vmem>>, vector<1x8x512xf32>
    %347 = vector.shape_cast %346 : vector<1x8x512xf32> to vector<8x512xf32>
    %cst_112 = arith.constant dense<0.000000e+00> : vector<8x512xf32>
    %348 = tpu.matmul %342, %0, %cst_112 {dimension_numbers = #tpu.dot_dimension_numbers<[1], [0], [0], [1], [0, 0, 1, 1], [], []>} : vector<8x128xf32>, vector<128x512xf32>, vector<8x512xf32> -> vector<8x512xf32>
    %349 = arith.addf %347, %348 : vector<8x512xf32>
    %350 = vector.extract_strided_slice %349 {offsets = [0, 0], sizes = [8, 128], strides = [1, 1]} : vector<8x512xf32> to vector<8x128xf32>
    %cst_113 = arith.constant 5.000000e-01 : f32
    %351 = vector.broadcast %cst_113 : f32 to vector<8x128xf32>
    %352 = arith.mulf %351, %350 : vector<8x128xf32>
    %353 = math.tanh %352 : vector<8x128xf32>
    %cst_114 = arith.constant 5.000000e-01 : f32
    %354 = vector.broadcast %cst_114 : f32 to vector<8x128xf32>
    %355 = arith.mulf %354, %353 : vector<8x128xf32>
    %cst_115 = arith.constant 5.000000e-01 : f32
    %356 = vector.broadcast %cst_115 : f32 to vector<8x128xf32>
    %357 = arith.addf %355, %356 : vector<8x128xf32>
    %358 = vector.extract_strided_slice %349 {offsets = [0, 128], sizes = [8, 128], strides = [1, 1]} : vector<8x512xf32> to vector<8x128xf32>
    %cst_116 = arith.constant 5.000000e-01 : f32
    %359 = vector.broadcast %cst_116 : f32 to vector<8x128xf32>
    %360 = arith.mulf %359, %358 : vector<8x128xf32>
    %361 = math.tanh %360 : vector<8x128xf32>
    %cst_117 = arith.constant 5.000000e-01 : f32
    %362 = vector.broadcast %cst_117 : f32 to vector<8x128xf32>
    %363 = arith.mulf %362, %361 : vector<8x128xf32>
    %cst_118 = arith.constant 5.000000e-01 : f32
    %364 = vector.broadcast %cst_118 : f32 to vector<8x128xf32>
    %365 = arith.addf %363, %364 : vector<8x128xf32>
    %366 = vector.extract_strided_slice %349 {offsets = [0, 256], sizes = [8, 128], strides = [1, 1]} : vector<8x512xf32> to vector<8x128xf32>
    %367 = math.tanh %366 : vector<8x128xf32>
    %368 = vector.extract_strided_slice %349 {offsets = [0, 384], sizes = [8, 128], strides = [1, 1]} : vector<8x512xf32> to vector<8x128xf32>
    %cst_119 = arith.constant 5.000000e-01 : f32
    %369 = vector.broadcast %cst_119 : f32 to vector<8x128xf32>
    %370 = arith.mulf %369, %368 : vector<8x128xf32>
    %371 = math.tanh %370 : vector<8x128xf32>
    %cst_120 = arith.constant 5.000000e-01 : f32
    %372 = vector.broadcast %cst_120 : f32 to vector<8x128xf32>
    %373 = arith.mulf %372, %371 : vector<8x128xf32>
    %cst_121 = arith.constant 5.000000e-01 : f32
    %374 = vector.broadcast %cst_121 : f32 to vector<8x128xf32>
    %375 = arith.addf %373, %374 : vector<8x128xf32>
    %376 = arith.mulf %365, %340 : vector<8x128xf32>
    %377 = arith.mulf %357, %367 : vector<8x128xf32>
    %378 = arith.addf %376, %377 : vector<8x128xf32>
    %379 = math.tanh %378 : vector<8x128xf32>
    %380 = arith.mulf %375, %379 : vector<8x128xf32>
    %381 = arith.addf %343, %380 : vector<8x128xf32>
    %382 = arith.maximumf %344, %380 : vector<8x128xf32>
    %c10_i32 = arith.constant 10 : i32
    %383 = arith.index_cast %c10_i32 : i32 to index
    %c0_122 = arith.constant 0 : index
    %c0_123 = arith.constant 0 : index
    %384 = vector.load %arg1[%383, %c0_122, %c0_123] : memref<16x8x512xf32, #tpu.memory_space<vmem>>, vector<1x8x512xf32>
    %385 = vector.shape_cast %384 : vector<1x8x512xf32> to vector<8x512xf32>
    %cst_124 = arith.constant dense<0.000000e+00> : vector<8x512xf32>
    %386 = tpu.matmul %380, %0, %cst_124 {dimension_numbers = #tpu.dot_dimension_numbers<[1], [0], [0], [1], [0, 0, 1, 1], [], []>} : vector<8x128xf32>, vector<128x512xf32>, vector<8x512xf32> -> vector<8x512xf32>
    %387 = arith.addf %385, %386 : vector<8x512xf32>
    %388 = vector.extract_strided_slice %387 {offsets = [0, 0], sizes = [8, 128], strides = [1, 1]} : vector<8x512xf32> to vector<8x128xf32>
    %cst_125 = arith.constant 5.000000e-01 : f32
    %389 = vector.broadcast %cst_125 : f32 to vector<8x128xf32>
    %390 = arith.mulf %389, %388 : vector<8x128xf32>
    %391 = math.tanh %390 : vector<8x128xf32>
    %cst_126 = arith.constant 5.000000e-01 : f32
    %392 = vector.broadcast %cst_126 : f32 to vector<8x128xf32>
    %393 = arith.mulf %392, %391 : vector<8x128xf32>
    %cst_127 = arith.constant 5.000000e-01 : f32
    %394 = vector.broadcast %cst_127 : f32 to vector<8x128xf32>
    %395 = arith.addf %393, %394 : vector<8x128xf32>
    %396 = vector.extract_strided_slice %387 {offsets = [0, 128], sizes = [8, 128], strides = [1, 1]} : vector<8x512xf32> to vector<8x128xf32>
    %cst_128 = arith.constant 5.000000e-01 : f32
    %397 = vector.broadcast %cst_128 : f32 to vector<8x128xf32>
    %398 = arith.mulf %397, %396 : vector<8x128xf32>
    %399 = math.tanh %398 : vector<8x128xf32>
    %cst_129 = arith.constant 5.000000e-01 : f32
    %400 = vector.broadcast %cst_129 : f32 to vector<8x128xf32>
    %401 = arith.mulf %400, %399 : vector<8x128xf32>
    %cst_130 = arith.constant 5.000000e-01 : f32
    %402 = vector.broadcast %cst_130 : f32 to vector<8x128xf32>
    %403 = arith.addf %401, %402 : vector<8x128xf32>
    %404 = vector.extract_strided_slice %387 {offsets = [0, 256], sizes = [8, 128], strides = [1, 1]} : vector<8x512xf32> to vector<8x128xf32>
    %405 = math.tanh %404 : vector<8x128xf32>
    %406 = vector.extract_strided_slice %387 {offsets = [0, 384], sizes = [8, 128], strides = [1, 1]} : vector<8x512xf32> to vector<8x128xf32>
    %cst_131 = arith.constant 5.000000e-01 : f32
    %407 = vector.broadcast %cst_131 : f32 to vector<8x128xf32>
    %408 = arith.mulf %407, %406 : vector<8x128xf32>
    %409 = math.tanh %408 : vector<8x128xf32>
    %cst_132 = arith.constant 5.000000e-01 : f32
    %410 = vector.broadcast %cst_132 : f32 to vector<8x128xf32>
    %411 = arith.mulf %410, %409 : vector<8x128xf32>
    %cst_133 = arith.constant 5.000000e-01 : f32
    %412 = vector.broadcast %cst_133 : f32 to vector<8x128xf32>
    %413 = arith.addf %411, %412 : vector<8x128xf32>
    %414 = arith.mulf %403, %378 : vector<8x128xf32>
    %415 = arith.mulf %395, %405 : vector<8x128xf32>
    %416 = arith.addf %414, %415 : vector<8x128xf32>
    %417 = math.tanh %416 : vector<8x128xf32>
    %418 = arith.mulf %413, %417 : vector<8x128xf32>
    %419 = arith.addf %381, %418 : vector<8x128xf32>
    %420 = arith.maximumf %382, %418 : vector<8x128xf32>
    %c11_i32 = arith.constant 11 : i32
    %421 = arith.index_cast %c11_i32 : i32 to index
    %c0_134 = arith.constant 0 : index
    %c0_135 = arith.constant 0 : index
    %422 = vector.load %arg1[%421, %c0_134, %c0_135] : memref<16x8x512xf32, #tpu.memory_space<vmem>>, vector<1x8x512xf32>
    %423 = vector.shape_cast %422 : vector<1x8x512xf32> to vector<8x512xf32>
    %cst_136 = arith.constant dense<0.000000e+00> : vector<8x512xf32>
    %424 = tpu.matmul %418, %0, %cst_136 {dimension_numbers = #tpu.dot_dimension_numbers<[1], [0], [0], [1], [0, 0, 1, 1], [], []>} : vector<8x128xf32>, vector<128x512xf32>, vector<8x512xf32> -> vector<8x512xf32>
    %425 = arith.addf %423, %424 : vector<8x512xf32>
    %426 = vector.extract_strided_slice %425 {offsets = [0, 0], sizes = [8, 128], strides = [1, 1]} : vector<8x512xf32> to vector<8x128xf32>
    %cst_137 = arith.constant 5.000000e-01 : f32
    %427 = vector.broadcast %cst_137 : f32 to vector<8x128xf32>
    %428 = arith.mulf %427, %426 : vector<8x128xf32>
    %429 = math.tanh %428 : vector<8x128xf32>
    %cst_138 = arith.constant 5.000000e-01 : f32
    %430 = vector.broadcast %cst_138 : f32 to vector<8x128xf32>
    %431 = arith.mulf %430, %429 : vector<8x128xf32>
    %cst_139 = arith.constant 5.000000e-01 : f32
    %432 = vector.broadcast %cst_139 : f32 to vector<8x128xf32>
    %433 = arith.addf %431, %432 : vector<8x128xf32>
    %434 = vector.extract_strided_slice %425 {offsets = [0, 128], sizes = [8, 128], strides = [1, 1]} : vector<8x512xf32> to vector<8x128xf32>
    %cst_140 = arith.constant 5.000000e-01 : f32
    %435 = vector.broadcast %cst_140 : f32 to vector<8x128xf32>
    %436 = arith.mulf %435, %434 : vector<8x128xf32>
    %437 = math.tanh %436 : vector<8x128xf32>
    %cst_141 = arith.constant 5.000000e-01 : f32
    %438 = vector.broadcast %cst_141 : f32 to vector<8x128xf32>
    %439 = arith.mulf %438, %437 : vector<8x128xf32>
    %cst_142 = arith.constant 5.000000e-01 : f32
    %440 = vector.broadcast %cst_142 : f32 to vector<8x128xf32>
    %441 = arith.addf %439, %440 : vector<8x128xf32>
    %442 = vector.extract_strided_slice %425 {offsets = [0, 256], sizes = [8, 128], strides = [1, 1]} : vector<8x512xf32> to vector<8x128xf32>
    %443 = math.tanh %442 : vector<8x128xf32>
    %444 = vector.extract_strided_slice %425 {offsets = [0, 384], sizes = [8, 128], strides = [1, 1]} : vector<8x512xf32> to vector<8x128xf32>
    %cst_143 = arith.constant 5.000000e-01 : f32
    %445 = vector.broadcast %cst_143 : f32 to vector<8x128xf32>
    %446 = arith.mulf %445, %444 : vector<8x128xf32>
    %447 = math.tanh %446 : vector<8x128xf32>
    %cst_144 = arith.constant 5.000000e-01 : f32
    %448 = vector.broadcast %cst_144 : f32 to vector<8x128xf32>
    %449 = arith.mulf %448, %447 : vector<8x128xf32>
    %cst_145 = arith.constant 5.000000e-01 : f32
    %450 = vector.broadcast %cst_145 : f32 to vector<8x128xf32>
    %451 = arith.addf %449, %450 : vector<8x128xf32>
    %452 = arith.mulf %441, %416 : vector<8x128xf32>
    %453 = arith.mulf %433, %443 : vector<8x128xf32>
    %454 = arith.addf %452, %453 : vector<8x128xf32>
    %455 = math.tanh %454 : vector<8x128xf32>
    %456 = arith.mulf %451, %455 : vector<8x128xf32>
    %457 = arith.addf %419, %456 : vector<8x128xf32>
    %458 = arith.maximumf %420, %456 : vector<8x128xf32>
    %c12_i32 = arith.constant 12 : i32
    %459 = arith.index_cast %c12_i32 : i32 to index
    %c0_146 = arith.constant 0 : index
    %c0_147 = arith.constant 0 : index
    %460 = vector.load %arg1[%459, %c0_146, %c0_147] : memref<16x8x512xf32, #tpu.memory_space<vmem>>, vector<1x8x512xf32>
    %461 = vector.shape_cast %460 : vector<1x8x512xf32> to vector<8x512xf32>
    %cst_148 = arith.constant dense<0.000000e+00> : vector<8x512xf32>
    %462 = tpu.matmul %456, %0, %cst_148 {dimension_numbers = #tpu.dot_dimension_numbers<[1], [0], [0], [1], [0, 0, 1, 1], [], []>} : vector<8x128xf32>, vector<128x512xf32>, vector<8x512xf32> -> vector<8x512xf32>
    %463 = arith.addf %461, %462 : vector<8x512xf32>
    %464 = vector.extract_strided_slice %463 {offsets = [0, 0], sizes = [8, 128], strides = [1, 1]} : vector<8x512xf32> to vector<8x128xf32>
    %cst_149 = arith.constant 5.000000e-01 : f32
    %465 = vector.broadcast %cst_149 : f32 to vector<8x128xf32>
    %466 = arith.mulf %465, %464 : vector<8x128xf32>
    %467 = math.tanh %466 : vector<8x128xf32>
    %cst_150 = arith.constant 5.000000e-01 : f32
    %468 = vector.broadcast %cst_150 : f32 to vector<8x128xf32>
    %469 = arith.mulf %468, %467 : vector<8x128xf32>
    %cst_151 = arith.constant 5.000000e-01 : f32
    %470 = vector.broadcast %cst_151 : f32 to vector<8x128xf32>
    %471 = arith.addf %469, %470 : vector<8x128xf32>
    %472 = vector.extract_strided_slice %463 {offsets = [0, 128], sizes = [8, 128], strides = [1, 1]} : vector<8x512xf32> to vector<8x128xf32>
    %cst_152 = arith.constant 5.000000e-01 : f32
    %473 = vector.broadcast %cst_152 : f32 to vector<8x128xf32>
    %474 = arith.mulf %473, %472 : vector<8x128xf32>
    %475 = math.tanh %474 : vector<8x128xf32>
    %cst_153 = arith.constant 5.000000e-01 : f32
    %476 = vector.broadcast %cst_153 : f32 to vector<8x128xf32>
    %477 = arith.mulf %476, %475 : vector<8x128xf32>
    %cst_154 = arith.constant 5.000000e-01 : f32
    %478 = vector.broadcast %cst_154 : f32 to vector<8x128xf32>
    %479 = arith.addf %477, %478 : vector<8x128xf32>
    %480 = vector.extract_strided_slice %463 {offsets = [0, 256], sizes = [8, 128], strides = [1, 1]} : vector<8x512xf32> to vector<8x128xf32>
    %481 = math.tanh %480 : vector<8x128xf32>
    %482 = vector.extract_strided_slice %463 {offsets = [0, 384], sizes = [8, 128], strides = [1, 1]} : vector<8x512xf32> to vector<8x128xf32>
    %cst_155 = arith.constant 5.000000e-01 : f32
    %483 = vector.broadcast %cst_155 : f32 to vector<8x128xf32>
    %484 = arith.mulf %483, %482 : vector<8x128xf32>
    %485 = math.tanh %484 : vector<8x128xf32>
    %cst_156 = arith.constant 5.000000e-01 : f32
    %486 = vector.broadcast %cst_156 : f32 to vector<8x128xf32>
    %487 = arith.mulf %486, %485 : vector<8x128xf32>
    %cst_157 = arith.constant 5.000000e-01 : f32
    %488 = vector.broadcast %cst_157 : f32 to vector<8x128xf32>
    %489 = arith.addf %487, %488 : vector<8x128xf32>
    %490 = arith.mulf %479, %454 : vector<8x128xf32>
    %491 = arith.mulf %471, %481 : vector<8x128xf32>
    %492 = arith.addf %490, %491 : vector<8x128xf32>
    %493 = math.tanh %492 : vector<8x128xf32>
    %494 = arith.mulf %489, %493 : vector<8x128xf32>
    %495 = arith.addf %457, %494 : vector<8x128xf32>
    %496 = arith.maximumf %458, %494 : vector<8x128xf32>
    %c13_i32 = arith.constant 13 : i32
    %497 = arith.index_cast %c13_i32 : i32 to index
    %c0_158 = arith.constant 0 : index
    %c0_159 = arith.constant 0 : index
    %498 = vector.load %arg1[%497, %c0_158, %c0_159] : memref<16x8x512xf32, #tpu.memory_space<vmem>>, vector<1x8x512xf32>
    %499 = vector.shape_cast %498 : vector<1x8x512xf32> to vector<8x512xf32>
    %cst_160 = arith.constant dense<0.000000e+00> : vector<8x512xf32>
    %500 = tpu.matmul %494, %0, %cst_160 {dimension_numbers = #tpu.dot_dimension_numbers<[1], [0], [0], [1], [0, 0, 1, 1], [], []>} : vector<8x128xf32>, vector<128x512xf32>, vector<8x512xf32> -> vector<8x512xf32>
    %501 = arith.addf %499, %500 : vector<8x512xf32>
    %502 = vector.extract_strided_slice %501 {offsets = [0, 0], sizes = [8, 128], strides = [1, 1]} : vector<8x512xf32> to vector<8x128xf32>
    %cst_161 = arith.constant 5.000000e-01 : f32
    %503 = vector.broadcast %cst_161 : f32 to vector<8x128xf32>
    %504 = arith.mulf %503, %502 : vector<8x128xf32>
    %505 = math.tanh %504 : vector<8x128xf32>
    %cst_162 = arith.constant 5.000000e-01 : f32
    %506 = vector.broadcast %cst_162 : f32 to vector<8x128xf32>
    %507 = arith.mulf %506, %505 : vector<8x128xf32>
    %cst_163 = arith.constant 5.000000e-01 : f32
    %508 = vector.broadcast %cst_163 : f32 to vector<8x128xf32>
    %509 = arith.addf %507, %508 : vector<8x128xf32>
    %510 = vector.extract_strided_slice %501 {offsets = [0, 128], sizes = [8, 128], strides = [1, 1]} : vector<8x512xf32> to vector<8x128xf32>
    %cst_164 = arith.constant 5.000000e-01 : f32
    %511 = vector.broadcast %cst_164 : f32 to vector<8x128xf32>
    %512 = arith.mulf %511, %510 : vector<8x128xf32>
    %513 = math.tanh %512 : vector<8x128xf32>
    %cst_165 = arith.constant 5.000000e-01 : f32
    %514 = vector.broadcast %cst_165 : f32 to vector<8x128xf32>
    %515 = arith.mulf %514, %513 : vector<8x128xf32>
    %cst_166 = arith.constant 5.000000e-01 : f32
    %516 = vector.broadcast %cst_166 : f32 to vector<8x128xf32>
    %517 = arith.addf %515, %516 : vector<8x128xf32>
    %518 = vector.extract_strided_slice %501 {offsets = [0, 256], sizes = [8, 128], strides = [1, 1]} : vector<8x512xf32> to vector<8x128xf32>
    %519 = math.tanh %518 : vector<8x128xf32>
    %520 = vector.extract_strided_slice %501 {offsets = [0, 384], sizes = [8, 128], strides = [1, 1]} : vector<8x512xf32> to vector<8x128xf32>
    %cst_167 = arith.constant 5.000000e-01 : f32
    %521 = vector.broadcast %cst_167 : f32 to vector<8x128xf32>
    %522 = arith.mulf %521, %520 : vector<8x128xf32>
    %523 = math.tanh %522 : vector<8x128xf32>
    %cst_168 = arith.constant 5.000000e-01 : f32
    %524 = vector.broadcast %cst_168 : f32 to vector<8x128xf32>
    %525 = arith.mulf %524, %523 : vector<8x128xf32>
    %cst_169 = arith.constant 5.000000e-01 : f32
    %526 = vector.broadcast %cst_169 : f32 to vector<8x128xf32>
    %527 = arith.addf %525, %526 : vector<8x128xf32>
    %528 = arith.mulf %517, %492 : vector<8x128xf32>
    %529 = arith.mulf %509, %519 : vector<8x128xf32>
    %530 = arith.addf %528, %529 : vector<8x128xf32>
    %531 = math.tanh %530 : vector<8x128xf32>
    %532 = arith.mulf %527, %531 : vector<8x128xf32>
    %533 = arith.addf %495, %532 : vector<8x128xf32>
    %534 = arith.maximumf %496, %532 : vector<8x128xf32>
    %c14_i32 = arith.constant 14 : i32
    %535 = arith.index_cast %c14_i32 : i32 to index
    %c0_170 = arith.constant 0 : index
    %c0_171 = arith.constant 0 : index
    %536 = vector.load %arg1[%535, %c0_170, %c0_171] : memref<16x8x512xf32, #tpu.memory_space<vmem>>, vector<1x8x512xf32>
    %537 = vector.shape_cast %536 : vector<1x8x512xf32> to vector<8x512xf32>
    %cst_172 = arith.constant dense<0.000000e+00> : vector<8x512xf32>
    %538 = tpu.matmul %532, %0, %cst_172 {dimension_numbers = #tpu.dot_dimension_numbers<[1], [0], [0], [1], [0, 0, 1, 1], [], []>} : vector<8x128xf32>, vector<128x512xf32>, vector<8x512xf32> -> vector<8x512xf32>
    %539 = arith.addf %537, %538 : vector<8x512xf32>
    %540 = vector.extract_strided_slice %539 {offsets = [0, 0], sizes = [8, 128], strides = [1, 1]} : vector<8x512xf32> to vector<8x128xf32>
    %cst_173 = arith.constant 5.000000e-01 : f32
    %541 = vector.broadcast %cst_173 : f32 to vector<8x128xf32>
    %542 = arith.mulf %541, %540 : vector<8x128xf32>
    %543 = math.tanh %542 : vector<8x128xf32>
    %cst_174 = arith.constant 5.000000e-01 : f32
    %544 = vector.broadcast %cst_174 : f32 to vector<8x128xf32>
    %545 = arith.mulf %544, %543 : vector<8x128xf32>
    %cst_175 = arith.constant 5.000000e-01 : f32
    %546 = vector.broadcast %cst_175 : f32 to vector<8x128xf32>
    %547 = arith.addf %545, %546 : vector<8x128xf32>
    %548 = vector.extract_strided_slice %539 {offsets = [0, 128], sizes = [8, 128], strides = [1, 1]} : vector<8x512xf32> to vector<8x128xf32>
    %cst_176 = arith.constant 5.000000e-01 : f32
    %549 = vector.broadcast %cst_176 : f32 to vector<8x128xf32>
    %550 = arith.mulf %549, %548 : vector<8x128xf32>
    %551 = math.tanh %550 : vector<8x128xf32>
    %cst_177 = arith.constant 5.000000e-01 : f32
    %552 = vector.broadcast %cst_177 : f32 to vector<8x128xf32>
    %553 = arith.mulf %552, %551 : vector<8x128xf32>
    %cst_178 = arith.constant 5.000000e-01 : f32
    %554 = vector.broadcast %cst_178 : f32 to vector<8x128xf32>
    %555 = arith.addf %553, %554 : vector<8x128xf32>
    %556 = vector.extract_strided_slice %539 {offsets = [0, 256], sizes = [8, 128], strides = [1, 1]} : vector<8x512xf32> to vector<8x128xf32>
    %557 = math.tanh %556 : vector<8x128xf32>
    %558 = vector.extract_strided_slice %539 {offsets = [0, 384], sizes = [8, 128], strides = [1, 1]} : vector<8x512xf32> to vector<8x128xf32>
    %cst_179 = arith.constant 5.000000e-01 : f32
    %559 = vector.broadcast %cst_179 : f32 to vector<8x128xf32>
    %560 = arith.mulf %559, %558 : vector<8x128xf32>
    %561 = math.tanh %560 : vector<8x128xf32>
    %cst_180 = arith.constant 5.000000e-01 : f32
    %562 = vector.broadcast %cst_180 : f32 to vector<8x128xf32>
    %563 = arith.mulf %562, %561 : vector<8x128xf32>
    %cst_181 = arith.constant 5.000000e-01 : f32
    %564 = vector.broadcast %cst_181 : f32 to vector<8x128xf32>
    %565 = arith.addf %563, %564 : vector<8x128xf32>
    %566 = arith.mulf %555, %530 : vector<8x128xf32>
    %567 = arith.mulf %547, %557 : vector<8x128xf32>
    %568 = arith.addf %566, %567 : vector<8x128xf32>
    %569 = math.tanh %568 : vector<8x128xf32>
    %570 = arith.mulf %565, %569 : vector<8x128xf32>
    %571 = arith.addf %533, %570 : vector<8x128xf32>
    %572 = arith.maximumf %534, %570 : vector<8x128xf32>
    %c15_i32 = arith.constant 15 : i32
    %573 = arith.index_cast %c15_i32 : i32 to index
    %c0_182 = arith.constant 0 : index
    %c0_183 = arith.constant 0 : index
    %574 = vector.load %arg1[%573, %c0_182, %c0_183] : memref<16x8x512xf32, #tpu.memory_space<vmem>>, vector<1x8x512xf32>
    %575 = vector.shape_cast %574 : vector<1x8x512xf32> to vector<8x512xf32>
    %cst_184 = arith.constant dense<0.000000e+00> : vector<8x512xf32>
    %576 = tpu.matmul %570, %0, %cst_184 {dimension_numbers = #tpu.dot_dimension_numbers<[1], [0], [0], [1], [0, 0, 1, 1], [], []>} : vector<8x128xf32>, vector<128x512xf32>, vector<8x512xf32> -> vector<8x512xf32>
    %577 = arith.addf %575, %576 : vector<8x512xf32>
    %578 = vector.extract_strided_slice %577 {offsets = [0, 0], sizes = [8, 128], strides = [1, 1]} : vector<8x512xf32> to vector<8x128xf32>
    %cst_185 = arith.constant 5.000000e-01 : f32
    %579 = vector.broadcast %cst_185 : f32 to vector<8x128xf32>
    %580 = arith.mulf %579, %578 : vector<8x128xf32>
    %581 = math.tanh %580 : vector<8x128xf32>
    %cst_186 = arith.constant 5.000000e-01 : f32
    %582 = vector.broadcast %cst_186 : f32 to vector<8x128xf32>
    %583 = arith.mulf %582, %581 : vector<8x128xf32>
    %cst_187 = arith.constant 5.000000e-01 : f32
    %584 = vector.broadcast %cst_187 : f32 to vector<8x128xf32>
    %585 = arith.addf %583, %584 : vector<8x128xf32>
    %586 = vector.extract_strided_slice %577 {offsets = [0, 128], sizes = [8, 128], strides = [1, 1]} : vector<8x512xf32> to vector<8x128xf32>
    %cst_188 = arith.constant 5.000000e-01 : f32
    %587 = vector.broadcast %cst_188 : f32 to vector<8x128xf32>
    %588 = arith.mulf %587, %586 : vector<8x128xf32>
    %589 = math.tanh %588 : vector<8x128xf32>
    %cst_189 = arith.constant 5.000000e-01 : f32
    %590 = vector.broadcast %cst_189 : f32 to vector<8x128xf32>
    %591 = arith.mulf %590, %589 : vector<8x128xf32>
    %cst_190 = arith.constant 5.000000e-01 : f32
    %592 = vector.broadcast %cst_190 : f32 to vector<8x128xf32>
    %593 = arith.addf %591, %592 : vector<8x128xf32>
    %594 = vector.extract_strided_slice %577 {offsets = [0, 256], sizes = [8, 128], strides = [1, 1]} : vector<8x512xf32> to vector<8x128xf32>
    %595 = math.tanh %594 : vector<8x128xf32>
    %596 = vector.extract_strided_slice %577 {offsets = [0, 384], sizes = [8, 128], strides = [1, 1]} : vector<8x512xf32> to vector<8x128xf32>
    %cst_191 = arith.constant 5.000000e-01 : f32
    %597 = vector.broadcast %cst_191 : f32 to vector<8x128xf32>
    %598 = arith.mulf %597, %596 : vector<8x128xf32>
    %599 = math.tanh %598 : vector<8x128xf32>
    %cst_192 = arith.constant 5.000000e-01 : f32
    %600 = vector.broadcast %cst_192 : f32 to vector<8x128xf32>
    %601 = arith.mulf %600, %599 : vector<8x128xf32>
    %cst_193 = arith.constant 5.000000e-01 : f32
    %602 = vector.broadcast %cst_193 : f32 to vector<8x128xf32>
    %603 = arith.addf %601, %602 : vector<8x128xf32>
    %604 = arith.mulf %593, %568 : vector<8x128xf32>
    %605 = arith.mulf %585, %595 : vector<8x128xf32>
    %606 = arith.addf %604, %605 : vector<8x128xf32>
    %607 = math.tanh %606 : vector<8x128xf32>
    %608 = arith.mulf %603, %607 : vector<8x128xf32>
    %609 = arith.addf %571, %608 : vector<8x128xf32>
    %610 = arith.maximumf %572, %608 : vector<8x128xf32>
    %c16_i32 = arith.constant 16 : i32
    %cst_194 = arith.constant 6.250000e-02 : f32
    %611 = vector.broadcast %cst_194 : f32 to vector<8x128xf32>
    %612 = arith.mulf %609, %611 : vector<8x128xf32>
    %613 = tpu.concatenate %612, %610 in 1 : vector<8x128xf32>, vector<8x128xf32> -> vector<8x256xf32>
    %c0_195 = arith.constant 0 : index
    %c0_196 = arith.constant 0 : index
    %614 = vector.load %arg3[%c0_195, %c0_196] : memref<256x128xf32, #tpu.memory_space<vmem>>, vector<256x128xf32>
    %cst_197 = arith.constant dense<0.000000e+00> : vector<8x128xf32>
    %615 = tpu.matmul %613, %614, %cst_197 {dimension_numbers = #tpu.dot_dimension_numbers<[1], [0], [0], [1], [0, 0, 1, 1], [], []>} : vector<8x256xf32>, vector<256x128xf32>, vector<8x128xf32> -> vector<8x128xf32>
    %c0_198 = arith.constant 0 : index
    %c0_199 = arith.constant 0 : index
    %616 = vector.load %arg4[%c0_198, %c0_199] : memref<1x128xf32, #tpu.memory_space<vmem>>, vector<1x128xf32>
    %617 = vector.broadcast %616 : vector<1x128xf32> to vector<8x128xf32>
    %618 = arith.addf %615, %617 : vector<8x128xf32>
    %cst_200 = arith.constant 0.000000e+00 : f32
    %619 = vector.broadcast %cst_200 : f32 to vector<8x128xf32>
    %620 = arith.maximumf %618, %619 : vector<8x128xf32>
    %c0_201 = arith.constant 0 : index
    %c0_202 = arith.constant 0 : index
    %621 = vector.load %arg5[%c0_201, %c0_202] : memref<128x128xf32, #tpu.memory_space<vmem>>, vector<128x128xf32>
    %cst_203 = arith.constant dense<0.000000e+00> : vector<8x128xf32>
    %622 = tpu.matmul %620, %621, %cst_203 {dimension_numbers = #tpu.dot_dimension_numbers<[1], [0], [0], [1], [0, 0, 1, 1], [], []>} : vector<8x128xf32>, vector<128x128xf32>, vector<8x128xf32> -> vector<8x128xf32>
    %c0_204 = arith.constant 0 : index
    %c0_205 = arith.constant 0 : index
    %623 = vector.load %arg6[%c0_204, %c0_205] : memref<1x128xf32, #tpu.memory_space<vmem>>, vector<1x128xf32>
    %624 = vector.broadcast %623 : vector<1x128xf32> to vector<8x128xf32>
    %625 = arith.addf %622, %624 : vector<8x128xf32>
    %c0_206 = arith.constant 0 : index
    %c0_207 = arith.constant 0 : index
    %626 = vector.load %arg7[%c0_206, %c0_207] : memref<8x128xf32, #tpu.memory_space<vmem>>, vector<8x128xf32>
    tpu.vector_store %arg7[%c0_206, %c0_207], %625 {strides = array<i32>} : memref<8x128xf32, #tpu.memory_space<vmem>>, vector<8x128xf32>,
    return
  }
  func.func @transform_0(%arg0: i32) -> (i32, i32, i32) {
    %c0_i32 = arith.constant 0 : i32
    %c0_i32_0 = arith.constant 0 : i32
    %c0_i32_1 = arith.constant 0 : i32
    return %c0_i32, %arg0, %c0_i32_0 : i32, i32, i32
  }
  func.func @transform_1(%arg0: i32) -> (i32, i32) {
    %c0_i32 = arith.constant 0 : i32
    %c0_i32_0 = arith.constant 0 : i32
    %c0_i32_1 = arith.constant 0 : i32
    return %c0_i32, %c0_i32_0 : i32, i32
  }
  func.func @transform_2(%arg0: i32) -> (i32, i32) {
    %c0_i32 = arith.constant 0 : i32
    %c0_i32_0 = arith.constant 0 : i32
    %c0_i32_1 = arith.constant 0 : i32
    return %c0_i32, %c0_i32_0 : i32, i32
  }
  func.func @transform_3(%arg0: i32) -> (i32, i32) {
    %c0_i32 = arith.constant 0 : i32
    %c0_i32_0 = arith.constant 0 : i32
    %c0_i32_1 = arith.constant 0 : i32
    return %c0_i32, %c0_i32_0 : i32, i32
  }
  func.func @transform_4(%arg0: i32) -> (i32, i32) {
    %c0_i32 = arith.constant 0 : i32
    %c0_i32_0 = arith.constant 0 : i32
    %c0_i32_1 = arith.constant 0 : i32
    return %c0_i32, %c0_i32_0 : i32, i32
  }
  func.func @transform_5(%arg0: i32) -> (i32, i32) {
    %c0_i32 = arith.constant 0 : i32
    %c0_i32_0 = arith.constant 0 : i32
    %c0_i32_1 = arith.constant 0 : i32
    return %c0_i32, %c0_i32_0 : i32, i32
  }
  func.func @transform_6(%arg0: i32) -> (i32, i32) {
    %c0_i32 = arith.constant 0 : i32
    %c0_i32_0 = arith.constant 0 : i32
    return %arg0, %c0_i32 : i32, i32
  }
}

</mosaic_0001>

<bundles_post_ra>
// kernel: bilstm_forward.1
= control target key start
LH: loop header
LB: loop body
LE: loop exit
PB: predicated region body
PF: predicated region fallthrough
CT: control target
= control target key end

     0   :  { %v4422_v3 = vmov 0.0   ;;  %vm4424_vm0 = vmmov 0   ;;  %s5802_s1 = inlined_call_operand.vmem [shape: f32[128,512], index: 1, kind: input, shape index: {}]   ;;  %s5803_s0 = inlined_call_operand.vmem [shape: f32[16,8,512], index: 0, kind: input, shape index: {}]   ;;  %s5804_s2 = inlined_call_operand.vmem [shape: f32[256,128], index: 2, kind: input, shape index: {}]   ;;  %s5805_s4 = inlined_call_operand.vmem [shape: f32[128,128], index: 4, kind: input, shape index: {}]   ;;  %s5806_s3 = inlined_call_operand.vmem [shape: f32[1,128], index: 3, kind: input, shape index: {}]   ;;  %s5807_s5 = inlined_call_operand.vmem [shape: f32[1,128], index: 5, kind: input, shape index: {}]   ;;  %s5808_s6 = inlined_call_operand.vmem [shape: f32[8,128], index: 6, kind: output, shape index: {}]  }
   0x1   :  { %v24_v0 = vld [vmem:[%s5802_s1 + $0x8] sm:$0xff]  ;;  %v23_v2 = vld [vmem:[%s5802_s1] sm:$0xff]  ;;  %155 = vmatprep.mubr.f32.mxu0 %v4422_v3  ;;  %226 = vmatprep.mubr.f32.mxu1 %v4422_v3  ;;  %v26_v12 = vld [vmem:[%s5802_s1 + $0x18] sm:$0xff] }
   0x2   :  { %v28_v1 = vld [vmem:[%s5802_s1 + $0x28] sm:$0xff]  ;;  %v27_v5 = vld [vmem:[%s5802_s1 + $0x20] sm:$0xff]  ;;  %v30_v13 = vld [vmem:[%s5802_s1 + $0x38] sm:$0xff] }
   0x3   :  { %v4471_v4 = vpack.c.bf16 %v28_v1, %v24_v0  ;;  %v32_v6 = vld [vmem:[%s5802_s1 + $0x48] sm:$0xff]  ;;  %v4482_v8 = vpack.c.bf16 %v27_v5, %v23_v2  ;;  %v31_v10 = vld [vmem:[%s5802_s1 + $0x40] sm:$0xff]  ;;  %v25_v14 = vld [vmem:[%s5802_s1 + $0x10] sm:$0xff]  ;;  %v4508_v17 = vpack.c.bf16 %v30_v13, %v26_v12 }
   0x4   :  { %v36_v7 = vld [vmem:[%s5802_s1 + $0x68] sm:$0xff]  ;;  %v35_v11 = vld [vmem:[%s5802_s1 + $0x60] sm:$0xff]  ;;  %v29_v15 = vld [vmem:[%s5802_s1 + $0x30] sm:$0xff] }
   0x5   :  { %v4484_v9 = vpack.c.bf16 %v36_v7, %v32_v6  ;;  %3180 = vmatprep.subr.bf16.mxu0 %v4471_v4  ;;  %v4506_v16 = vpack.c.bf16 %v35_v11, %v31_v10  ;;  %v4510_v18 = vpack.c.bf16 %v29_v15, %v25_v14  ;;  %v40_v19 = vld [vmem:[%s5802_s1 + $0x88] sm:$0xff]  ;;  %v39_v21 = vld [vmem:[%s5802_s1 + $0x80] sm:$0xff]  ;;  %v34_v24 = vld [vmem:[%s5802_s1 + $0x58] sm:$0xff]  ;;  %3212 = vmatprep.subr.bf16.mxu1 %v4508_v17 }
   0x6   :  { %3182 = vmatpush1.bf16.msra.mxu0 %v4482_v8  ;;  %v44_v20 = vld [vmem:[%s5802_s1 + $0xa8] sm:$0xff]  ;;  %v43_v23 = vld [vmem:[%s5802_s1 + $0xa0] sm:$0xff]  ;;  %v38_v25 = vld [vmem:[%s5802_s1 + $0x78] sm:$0xff] }
   0x7   :  { %3184 = vmatprep.subr.bf16.mxu0 %v4484_v9  ;;  %v4522_v22 = vpack.c.bf16 %v44_v20, %v40_v19  ;;  %v4534_v26 = vpack.c.bf16 %v38_v25, %v34_v24  ;;  %v33_v27 = vld [vmem:[%s5802_s1 + $0x50] sm:$0xff]  ;;  %v48_v29 = vld [vmem:[%s5802_s1 + $0xc8] sm:$0xff]  ;;  %3214 = vmatpush1.bf16.msra.mxu1 %v4510_v18  ;;  %v4552_v32 = vpack.c.bf16 %v43_v23, %v39_v21  ;;  %v42_v33 = vld [vmem:[%s5802_s1 + $0x98] sm:$0xff] }
   0x8   :  { %v37_v28 = vld [vmem:[%s5802_s1 + $0x70] sm:$0xff]  ;;  %v52_v31 = vld [vmem:[%s5802_s1 + $0xe8] sm:$0xff]  ;;  %v46_v34 = vld [vmem:[%s5802_s1 + $0xb8] sm:$0xff] }
   0x9   :  { %v4546_v30 = vpack.c.bf16 %v37_v28, %v33_v27  ;;  %3216 = vmatprep.subr.bf16.mxu1 %v4534_v26  ;;  %v41_v35 = vld [vmem:[%s5802_s1 + $0x90] sm:$0xff]  ;;  %v4565_v36 = vpack.c.bf16 %v52_v31, %v48_v29  ;;  %v47_v37 = vld [vmem:[%s5802_s1 + $0xc0] sm:$0xff]  ;;  %v4573_v39 = vpack.c.bf16 %v46_v34, %v42_v33  ;;  %v56_v41 = vld [vmem:[%s5802_s1 + $0x108] sm:$0xff] }
   0xa   :  { %3186 = vmatpush1.bf16.msra.mxu0 %v4506_v16  ;;  %v51_v38 = vld [vmem:[%s5802_s1 + $0xe0] sm:$0xff]  ;;  %v45_v40 = vld [vmem:[%s5802_s1 + $0xb0] sm:$0xff]  ;;  %v60_v42 = vld [vmem:[%s5802_s1 + $0x128] sm:$0xff] }
   0xb   :  { %3188 = vmatprep.subr.bf16.mxu0 %v4522_v22  ;;  %v50_v43 = vld [vmem:[%s5802_s1 + $0xd8] sm:$0xff]  ;;  %3218 = vmatpush1.bf16.msra.mxu1 %v4546_v30  ;;  %v4588_v44 = vpack.c.bf16 %v45_v40, %v41_v35  ;;  %v4594_v46 = vpack.c.bf16 %v51_v38, %v47_v37  ;;  %v55_v47 = vld [vmem:[%s5802_s1 + $0x100] sm:$0xff]  ;;  %v49_v49 = vld [vmem:[%s5802_s1 + $0xd0] sm:$0xff]  ;;  %v4609_v51 = vpack.c.bf16 %v60_v42, %v56_v41 }
   0xc   :  { %v54_v45 = vld [vmem:[%s5802_s1 + $0xf8] sm:$0xff]  ;;  %3220 = vmatprep.subr.bf16.mxu1 %v4573_v39  ;;  %v53_v50 = vld [vmem:[%s5802_s1 + $0xf0] sm:$0xff]  ;;  %v59_v52 = vld [vmem:[%s5802_s1 + $0x120] sm:$0xff] }
   0xd   :  { %v4600_v48 = vpack.c.bf16 %v54_v45, %v50_v43  ;;  %v58_v53 = vld [vmem:[%s5802_s1 + $0x118] sm:$0xff]  ;;  %v64_v55 = vld [vmem:[%s5802_s1 + $0x148] sm:$0xff]  ;;  %v4627_v57 = vpack.c.bf16 %v53_v50, %v49_v49  ;;  %v4630_v58 = vpack.c.bf16 %v59_v52, %v55_v47  ;;  %v63_v59 = vld [vmem:[%s5802_s1 + $0x140] sm:$0xff] }
   0xe   :  { %3190 = vmatpush1.bf16.msra.mxu0 %v4552_v32  ;;  %v62_v54 = vld [vmem:[%s5802_s1 + $0x138] sm:$0xff]  ;;  %v68_v56 = vld [vmem:[%s5802_s1 + $0x168] sm:$0xff]  ;;  %v57_v61 = vld [vmem:[%s5802_s1 + $0x110] sm:$0xff] }
   0xf   :  { %3192 = vmatprep.subr.bf16.mxu0 %v4565_v36  ;;  %3222 = vmatpush1.bf16.msra.mxu1 %v4588_v44  ;;  %v4636_v60 = vpack.c.bf16 %v62_v54, %v58_v53  ;;  %v61_v62 = vld [vmem:[%s5802_s1 + $0x130] sm:$0xff]  ;;  %v4645_v63 = vpack.c.bf16 %v68_v56, %v64_v55  ;;  %v67_v0 = vld [vmem:[%s5802_s1 + $0x160] sm:$0xff]  ;;  %v66_v1 = vld [vmem:[%s5802_s1 + $0x158] sm:$0xff] }
  0x10   :  { %3224 = vmatprep.subr.bf16.mxu1 %v4600_v48  ;;  %v70_v2 = vld [vmem:[%s5802_s1 + $0x178] sm:$0xff]  ;;  %v72_v5 = vld [vmem:[%s5802_s1 + $0x188] sm:$0xff]  ;;  %v4663_v7 = vpack.c.bf16 %v61_v62, %v57_v61  ;;  %v4666_v10 = vpack.c.bf16 %v67_v0, %v63_v59  ;;  %v71_v11 = vld [vmem:[%s5802_s1 + $0x180] sm:$0xff] }
  0x11   :  { %v76_v6 = vld [vmem:[%s5802_s1 + $0x1a8] sm:$0xff]  ;;  %v4672_v12 = vpack.c.bf16 %v70_v2, %v66_v1  ;;  %v65_v13 = vld [vmem:[%s5802_s1 + $0x150] sm:$0xff]  ;;  %v75_v19 = vld [vmem:[%s5802_s1 + $0x1a0] sm:$0xff] }
  0x12   :  { %3194 = vmatpush1.bf16.msra.mxu0 %v4594_v46  ;;  %v69_v14 = vld [vmem:[%s5802_s1 + $0x170] sm:$0xff]  ;;  %v4681_v15 = vpack.c.bf16 %v76_v6, %v72_v5  ;;  %v74_v20 = vld [vmem:[%s5802_s1 + $0x198] sm:$0xff]  ;;  %v80_v23 = vld [vmem:[%s5802_s1 + $0x1c8] sm:$0xff]  ;;  %v4702_v27 = vpack.c.bf16 %v75_v19, %v71_v11 }
  0x13   :  { %3196 = vmatprep.subr.bf16.mxu0 %v4609_v51  ;;  %3226 = vmatpush1.bf16.msra.mxu1 %v4627_v57  ;;  %v78_v21 = vld [vmem:[%s5802_s1 + $0x1b8] sm:$0xff]  ;;  %v84_v24 = vld [vmem:[%s5802_s1 + $0x1e8] sm:$0xff]  ;;  %v4699_v25 = vpack.c.bf16 %v69_v14, %v65_v13  ;;  %v79_v28 = vld [vmem:[%s5802_s1 + $0x1c0] sm:$0xff] }
  0x14   :  { %3228 = vmatprep.subr.bf16.mxu1 %v4636_v60  ;;  %v4708_v29 = vpack.c.bf16 %v78_v21, %v74_v20  ;;  %v73_v31 = vld [vmem:[%s5802_s1 + $0x190] sm:$0xff]  ;;  %v4717_v34 = vpack.c.bf16 %v84_v24, %v80_v23  ;;  %v83_v35 = vld [vmem:[%s5802_s1 + $0x1e0] sm:$0xff]  ;;  %v82_v37 = vld [vmem:[%s5802_s1 + $0x1d8] sm:$0xff] }
  0x15   :  { %v77_v33 = vld [vmem:[%s5802_s1 + $0x1b0] sm:$0xff]  ;;  %v86_v38 = vld [vmem:[%s5802_s1 + $0x1f8] sm:$0xff]  ;;  %v4732_v41 = vpack.c.bf16 %v83_v35, %v79_v28  ;;  %v87_v49 = vld [vmem:[%s5803_s0] sm:$0xff] }
  0x16   :  { %3198 = vmatpush1.bf16.msra.mxu0 %v4630_v58  ;;  %v4729_v40 = vpack.c.bf16 %v77_v33, %v73_v31  ;;  %v4735_v42 = vpack.c.bf16 %v86_v38, %v82_v37  ;;  %v81_v43 = vld [vmem:[%s5802_s1 + $0x1d0] sm:$0xff]  ;;  %v88_v50 = vld [vmem:[%s5803_s0 + $0x8] sm:$0xff]  ;;  %v90_v2 = vld [vmem:[%s5803_s0 + $0x18] sm:$0xff] }
  0x17   :  { %3200 = vmatprep.subr.bf16.mxu0 %v4645_v63  ;;  %3230 = vmatpush1.bf16.msra.mxu1 %v4663_v7  ;;  %v85_v45 = vld [vmem:[%s5802_s1 + $0x1f0] sm:$0xff] }
  0x18   :  { %3232 = vmatprep.subr.bf16.mxu1 %v4672_v12  ;;  %v4745_v47 = vpack.c.bf16 %v85_v45, %v81_v43  ;;  %v89_v55 = vld [vmem:[%s5803_s0 + $0x10] sm:$0xff]  ;;  %v3030_v45 = vld [vmem:[%s5803_s0 + $0x20] sm:$0xff] }
  0x1a   :  { %3202 = vmatpush1.bf16.msra.mxu0 %v4666_v10 }
  0x1b   :  { %3204 = vmatprep.subr.bf16.mxu0 %v4681_v15  ;;  %3234 = vmatpush1.bf16.msra.mxu1 %v4699_v25 }
  0x1c   :  { %3236 = vmatprep.subr.bf16.mxu1 %v4708_v29 }
  0x1e   :  { %3206 = vmatpush1.bf16.msra.mxu0 %v4702_v27 }
  0x1f   :  { %3208 = vmatprep.subr.bf16.mxu0 %v4717_v34  ;;  %3238 = vmatpush1.bf16.msra.mxu1 %v4729_v40 }
  0x20   :  { %3240 = vmatprep.subr.bf16.mxu1 %v4735_v42 }
  0x22   :  { %3210 = vmatpush1.bf16.msra.mxu0 %v4732_v41 }
  0x23   :  { %3244 = vmatprep.subr.bf16.mxu0 %v4471_v4  ;;  %3242 = vmatpush1.bf16.msra.mxu1 %v4745_v47 }
  0x24   :  { %3276 = vmatprep.subr.bf16.mxu1 %v4508_v17 }
  0x25   :  { %156 = vmatmul.mubr.f32.vlgmr.msra.gmra.mrb[0].mxu0 %v4422_v3 }
  0x26   :  { %3246 = vmatpush1.bf16.msra.mxu0 %v4482_v8  ;;  %325 = vmatprep.mubr.f32.mxu0 %v4422_v3 }
  0x27   :  { %3248 = vmatprep.subr.bf16.mxu0 %v4484_v9  ;;  %227 = vmatmul.mubr.f32.vlgmr.msra.gmra.mrb[0].mxu1 %v4422_v3 }
  0x28   :  { %3278 = vmatpush1.bf16.msra.mxu1 %v4510_v18  ;;  %396 = vmatprep.mubr.f32.mxu1 %v4422_v3 }
  0x29   :  { %3280 = vmatprep.subr.bf16.mxu1 %v4534_v26 }
  0x2a   :  { %3250 = vmatpush1.bf16.msra.mxu0 %v4506_v16 }
  0x2b   :  { %3252 = vmatprep.subr.bf16.mxu0 %v4522_v22 }
  0x2c   :  { %3282 = vmatpush1.bf16.msra.mxu1 %v4546_v30 }
  0x2d   :  { %3284 = vmatprep.subr.bf16.mxu1 %v4573_v39 }
  0x2e   :  { %3254 = vmatpush1.bf16.msra.mxu0 %v4552_v32 }
  0x2f   :  { %3256 = vmatprep.subr.bf16.mxu0 %v4565_v36 }
  0x30   :  { %3286 = vmatpush1.bf16.msra.mxu1 %v4588_v44 }
  0x31   :  { %3288 = vmatprep.subr.bf16.mxu1 %v4600_v48 }
  0x32   :  { %3258 = vmatpush1.bf16.msra.mxu0 %v4594_v46 }
  0x33   :  { %3260 = vmatprep.subr.bf16.mxu0 %v4609_v51 }
  0x34   :  { %3290 = vmatpush1.bf16.msra.mxu1 %v4627_v57 }
  0x35   :  { %3292 = vmatprep.subr.bf16.mxu1 %v4636_v60 }
  0x36   :  { %3262 = vmatpush1.bf16.msra.mxu0 %v4630_v58 }
  0x37   :  { %3264 = vmatprep.subr.bf16.mxu0 %v4645_v63 }
  0x38   :  { %3294 = vmatpush1.bf16.msra.mxu1 %v4663_v7 }
  0x39   :  { %3296 = vmatprep.subr.bf16.mxu1 %v4672_v12 }
  0x3a   :  { %3266 = vmatpush1.bf16.msra.mxu0 %v4666_v10 }
  0x3b   :  { %3268 = vmatprep.subr.bf16.mxu0 %v4681_v15 }
  0x3c   :  { %3298 = vmatpush1.bf16.msra.mxu1 %v4699_v25 }
  0x3d   :  { %3300 = vmatprep.subr.bf16.mxu1 %v4708_v29 }
  0x3e   :  { %3270 = vmatpush1.bf16.msra.mxu0 %v4702_v27 }
  0x3f   :  { %3272 = vmatprep.subr.bf16.mxu0 %v4717_v34 }
  0x40   :  { %3302 = vmatpush1.bf16.msra.mxu1 %v4729_v40 }
  0x41   :  { %3304 = vmatprep.subr.bf16.mxu1 %v4735_v42 }
  0x42   :  { %3274 = vmatpush1.bf16.msra.mxu0 %v4732_v41 }
  0x43   :  { %3308 = vmatprep.subr.bf16.mxu0 %v4471_v4 }
  0x44   :  { %3306 = vmatpush1.bf16.msra.mxu1 %v4745_v47 }
  0x45   :  { %3340 = vmatprep.subr.bf16.mxu1 %v4508_v17 }
  0xf8   :  { %v157_v52 = vpop.f32.mrb[0].mxu0 }
  0xf9   :  { %v233_v53 = vadd.f32 %v157_v52, %v87_v49  ;;  %v159_v54 = vpop.f32.mrb[1].mxu0  ;;  %v3031_v49 = vld [vmem:[%s5803_s0 + $0x28] sm:$0xff] }
  0xfa   :  { %v234_v56 = vadd.f32 %v159_v54, %v88_v50  ;;  %v228_v61 = vpop.f32.mrb[0].mxu1 }
  0xfb   :  { %v237_v59 = vmul.f32 0.5, %v233_v53  ;;  %v235_v0 = vadd.f32 %v228_v61, %v89_v55  ;;  %v230_v1 = vpop.f32.mrb[1].mxu1 }
  0xfc   :  { %v241_v62 = vmul.f32 0.5, %v234_v56  ;;  %v236_v5 = vadd.f32 %v230_v1, %v90_v2  ;;  %v3032_v56 = vld [vmem:[%s5803_s0 + $0x30] sm:$0xff]  ;;  %v3033_v1 = vld [vmem:[%s5803_s0 + $0x38] sm:$0xff] }
  0xfd   :  { %4262 = vtanh.f32 %v237_v59 }
  0xfe   :  { %4264 = vtanh.f32 %v241_v62  ;;  %v246_v6 = vmul.f32 0.5, %v236_v5 }
  0xff   :  { %4266 = vtanh.f32 %v235_v0 }
 0x100   :  { %4268 = vtanh.f32 %v246_v6 }
 0x107   :  { %v4263_v11 = vpop.eup %4262 }
 0x108   :  { %v4265_v13 = vpop.eup %4264  ;;  %v239_v14 = vmul.f32 0.5, %v4263_v11 }
 0x109   :  { %v4267_v19 = vpop.eup %4266  ;;  %v243_v20 = vmul.f32 0.5, %v4265_v13 }
 0x10a   :  { %v240_v21 = vadd.f32 0.5, %v239_v14  ;;  %v4269_v33 = vpop.eup %4268 }
 0x10b   :  { %v244_v23 = vadd.f32 0.5, %v243_v20  ;;  %v248_v35 = vmul.f32 0.5, %v4269_v33 }
 0x10c   :  { %v251_v24 = vmul.f32 %v4267_v19, %v240_v21 }
 0x10d   :  { %v250_v28 = vmul.f32 0.0, %v244_v23  ;;  %v249_v37 = vadd.f32 0.5, %v248_v35 }
 0x10f   :  { %v4800_v31 = vadd.f32 %v251_v24, %v250_v28 }
 0x111   :  { %4270 = vtanh.f32 %v4800_v31 }
 0x11b   :  { %v4271_v38 = vpop.eup %4270 }
 0x11c   :  { %v4803_v43 = vmul.f32 %v4271_v38, %v249_v37 }
 0x11e   :  { %326 = vmatmul.mubr.f32.vlgmr.msra.gmra.mrb[2].mxu0 %v4803_v43  ;;  %397 = vmatmul.mubr.f32.vlgmr.msra.gmra.mrb[2].mxu1 %v4803_v43 }
 0x11f   :  { %3310 = vmatpush1.bf16.msra.mxu0 %v4482_v8  ;;  %3342 = vmatpush1.bf16.msra.mxu1 %v4510_v18 }
 0x120   :  { %3312 = vmatprep.subr.bf16.mxu0 %v4484_v9  ;;  %3344 = vmatprep.subr.bf16.mxu1 %v4534_v26 }
 0x121   :  { %496 = vmatprep.mubr.f32.mxu0 %v4422_v3  ;;  %567 = vmatprep.mubr.f32.mxu1 %v4422_v3 }
 0x123   :  { %3314 = vmatpush1.bf16.msra.mxu0 %v4506_v16  ;;  %3346 = vmatpush1.bf16.msra.mxu1 %v4546_v30 }
 0x124   :  { %3316 = vmatprep.subr.bf16.mxu0 %v4522_v22  ;;  %3348 = vmatprep.subr.bf16.mxu1 %v4573_v39 }
 0x127   :  { %3318 = vmatpush1.bf16.msra.mxu0 %v4552_v32  ;;  %3350 = vmatpush1.bf16.msra.mxu1 %v4588_v44 }
 0x128   :  { %3320 = vmatprep.subr.bf16.mxu0 %v4565_v36  ;;  %3352 = vmatprep.subr.bf16.mxu1 %v4600_v48 }
 0x12b   :  { %3322 = vmatpush1.bf16.msra.mxu0 %v4594_v46  ;;  %3354 = vmatpush1.bf16.msra.mxu1 %v4627_v57 }
 0x12c   :  { %3324 = vmatprep.subr.bf16.mxu0 %v4609_v51  ;;  %3356 = vmatprep.subr.bf16.mxu1 %v4636_v60 }
 0x12f   :  { %3326 = vmatpush1.bf16.msra.mxu0 %v4630_v58  ;;  %3358 = vmatpush1.bf16.msra.mxu1 %v4663_v7 }
 0x130   :  { %3328 = vmatprep.subr.bf16.mxu0 %v4645_v63  ;;  %3360 = vmatprep.subr.bf16.mxu1 %v4672_v12 }
 0x133   :  { %3330 = vmatpush1.bf16.msra.mxu0 %v4666_v10  ;;  %3362 = vmatpush1.bf16.msra.mxu1 %v4699_v25 }
 0x134   :  { %3332 = vmatprep.subr.bf16.mxu0 %v4681_v15  ;;  %3364 = vmatprep.subr.bf16.mxu1 %v4708_v29 }
 0x137   :  { %3334 = vmatpush1.bf16.msra.mxu0 %v4702_v27  ;;  %3366 = vmatpush1.bf16.msra.mxu1 %v4729_v40 }
 0x138   :  { %3336 = vmatprep.subr.bf16.mxu0 %v4717_v34  ;;  %3368 = vmatprep.subr.bf16.mxu1 %v4735_v42 }
 0x13b   :  { %3338 = vmatpush1.bf16.msra.mxu0 %v4732_v41  ;;  %3370 = vmatpush1.bf16.msra.mxu1 %v4745_v47 }
 0x13c   :  { %3372 = vmatprep.subr.bf16.mxu0 %v4471_v4  ;;  %3404 = vmatprep.subr.bf16.mxu1 %v4508_v17 }
 0x1f1   :  { %v327_v50 = vpop.f32.mrb[2].mxu0  ;;  %v398_v52 = vpop.f32.mrb[2].mxu1 }
 0x1f2   :  { %v403_v53 = vadd.f32 %v3030_v45, %v327_v50  ;;  %v329_v54 = vpop.f32.mrb[3].mxu0  ;;  %v400_v55 = vpop.f32.mrb[3].mxu1  ;;  %v405_v0 = vadd.f32 %v3032_v56, %v398_v52  ;;  %v3036_v56 = vld [vmem:[%s5803_s0 + $0x50] sm:$0xff] }
 0x1f3   :  { %v404_v59 = vadd.f32 %v3031_v49, %v329_v54  ;;  %v406_v2 = vadd.f32 %v3033_v1, %v400_v55  ;;  %v3035_v49 = vld [vmem:[%s5803_s0 + $0x48] sm:$0xff]  ;;  %v3037_v1 = vld [vmem:[%s5803_s0 + $0x58] sm:$0xff] }
 0x1f4   :  { %v407_v61 = vmul.f32 0.5, %v403_v53 }
 0x1f5   :  { %v411_v62 = vmul.f32 0.5, %v404_v59  ;;  %v416_v5 = vmul.f32 0.5, %v406_v2 }
 0x1f6   :  { %4272 = vtanh.f32 %v407_v61 }
 0x1f7   :  { %4274 = vtanh.f32 %v411_v62 }
 0x1f8   :  { %4276 = vtanh.f32 %v405_v0 }
 0x1f9   :  { %4278 = vtanh.f32 %v416_v5 }
 0x200   :  { %v4273_v6 = vpop.eup %4272 }
 0x201   :  { %v4275_v11 = vpop.eup %4274  ;;  %v409_v13 = vmul.f32 0.5, %v4273_v6 }
 0x202   :  { %v413_v14 = vmul.f32 0.5, %v4275_v11  ;;  %v4277_v20 = vpop.eup %4276 }
 0x203   :  { %v410_v19 = vadd.f32 0.5, %v409_v13  ;;  %v4279_v33 = vpop.eup %4278 }
 0x204   :  { %v414_v21 = vadd.f32 0.5, %v413_v14  ;;  %v418_v35 = vmul.f32 0.5, %v4279_v33 }
 0x205   :  { %v421_v23 = vmul.f32 %v4277_v20, %v410_v19 }
 0x206   :  { %v420_v24 = vmul.f32 %v414_v21, %v4800_v31  ;;  %v419_v37 = vadd.f32 0.5, %v418_v35  ;;  %v3034_v31 = vld [vmem:[%s5803_s0 + $0x40] sm:$0xff] }
 0x208   :  { %v4854_v28 = vadd.f32 %v421_v23, %v420_v24 }
 0x20a   :  { %4280 = vtanh.f32 %v4854_v28 }
 0x214   :  { %v4281_v38 = vpop.eup %4280 }
 0x215   :  { %v4857_v45 = vmul.f32 %v4281_v38, %v419_v37 }
 0x217   :  { %497 = vmatmul.mubr.f32.vlgmr.msra.gmra.mrb[4].mxu0 %v4857_v45  ;;  %568 = vmatmul.mubr.f32.vlgmr.msra.gmra.mrb[4].mxu1 %v4857_v45 }
 0x218   :  { %3374 = vmatpush1.bf16.msra.mxu0 %v4482_v8  ;;  %3406 = vmatpush1.bf16.msra.mxu1 %v4510_v18 }
 0x219   :  { %3376 = vmatprep.subr.bf16.mxu0 %v4484_v9  ;;  %3408 = vmatprep.subr.bf16.mxu1 %v4534_v26 }
 0x21a   :  { %667 = vmatprep.mubr.f32.mxu0 %v4422_v3  ;;  %738 = vmatprep.mubr.f32.mxu1 %v4422_v3 }
 0x21c   :  { %3378 = vmatpush1.bf16.msra.mxu0 %v4506_v16  ;;  %3410 = vmatpush1.bf16.msra.mxu1 %v4546_v30 }
 0x21d   :  { %3380 = vmatprep.subr.bf16.mxu0 %v4522_v22  ;;  %3412 = vmatprep.subr.bf16.mxu1 %v4573_v39 }
 0x220   :  { %3382 = vmatpush1.bf16.msra.mxu0 %v4552_v32  ;;  %3414 = vmatpush1.bf16.msra.mxu1 %v4588_v44 }
 0x221   :  { %3384 = vmatprep.subr.bf16.mxu0 %v4565_v36  ;;  %3416 = vmatprep.subr.bf16.mxu1 %v4600_v48 }
 0x224   :  { %3386 = vmatpush1.bf16.msra.mxu0 %v4594_v46  ;;  %3418 = vmatpush1.bf16.msra.mxu1 %v4627_v57 }
 0x225   :  { %3388 = vmatprep.subr.bf16.mxu0 %v4609_v51  ;;  %3420 = vmatprep.subr.bf16.mxu1 %v4636_v60 }
 0x228   :  { %3390 = vmatpush1.bf16.msra.mxu0 %v4630_v58  ;;  %3422 = vmatpush1.bf16.msra.mxu1 %v4663_v7 }
 0x229   :  { %3392 = vmatprep.subr.bf16.mxu0 %v4645_v63  ;;  %3424 = vmatprep.subr.bf16.mxu1 %v4672_v12 }
 0x22c   :  { %3394 = vmatpush1.bf16.msra.mxu0 %v4666_v10  ;;  %3426 = vmatpush1.bf16.msra.mxu1 %v4699_v25 }
 0x22d   :  { %3396 = vmatprep.subr.bf16.mxu0 %v4681_v15  ;;  %3428 = vmatprep.subr.bf16.mxu1 %v4708_v29 }
 0x230   :  { %3398 = vmatpush1.bf16.msra.mxu0 %v4702_v27  ;;  %3430 = vmatpush1.bf16.msra.mxu1 %v4729_v40 }
 0x231   :  { %3400 = vmatprep.subr.bf16.mxu0 %v4717_v34  ;;  %3432 = vmatprep.subr.bf16.mxu1 %v4735_v42 }
 0x234   :  { %3402 = vmatpush1.bf16.msra.mxu0 %v4732_v41  ;;  %3434 = vmatpush1.bf16.msra.mxu1 %v4745_v47 }
 0x235   :  { %3436 = vmatprep.subr.bf16.mxu0 %v4471_v4  ;;  %3468 = vmatprep.subr.bf16.mxu1 %v4508_v17 }
 0x2ea   :  { %v498_v50 = vpop.f32.mrb[4].mxu0  ;;  %v569_v52 = vpop.f32.mrb[4].mxu1 }
 0x2eb   :  { %v574_v53 = vadd.f32 %v3034_v31, %v498_v50  ;;  %v500_v54 = vpop.f32.mrb[5].mxu0  ;;  %v571_v55 = vpop.f32.mrb[5].mxu1  ;;  %v576_v0 = vadd.f32 %v3036_v56, %v569_v52  ;;  %v426_v50 = vmax.f32 %v4803_v43, %v4857_v45 }
 0x2ec   :  { %v575_v59 = vadd.f32 %v3035_v49, %v500_v54  ;;  %v577_v2 = vadd.f32 %v3037_v1, %v571_v55  ;;  %v425_v49 = vadd.f32 %v4857_v45, %v4803_v43  ;;  %v3038_v43 = vld [vmem:[%s5803_s0 + $0x60] sm:$0xff] }
 0x2ed   :  { %v578_v61 = vmul.f32 0.5, %v574_v53 }
 0x2ee   :  { %v582_v62 = vmul.f32 0.5, %v575_v59  ;;  %v587_v5 = vmul.f32 0.5, %v577_v2 }
 0x2ef   :  { %4282 = vtanh.f32 %v578_v61 }
 0x2f0   :  { %4284 = vtanh.f32 %v582_v62  ;;  %v3040_v62 = vld [vmem:[%s5803_s0 + $0x70] sm:$0xff] }
 0x2f1   :  { %4286 = vtanh.f32 %v576_v0 }
 0x2f2   :  { %4288 = vtanh.f32 %v587_v5 }
 0x2f9   :  { %v4283_v6 = vpop.eup %4282 }
 0x2fa   :  { %v4285_v11 = vpop.eup %4284  ;;  %v580_v13 = vmul.f32 0.5, %v4283_v6  ;;  %v3041_v6 = vld [vmem:[%s5803_s0 + $0x78] sm:$0xff] }
 0x2fb   :  { %v584_v14 = vmul.f32 0.5, %v4285_v11  ;;  %v4287_v20 = vpop.eup %4286 }
 0x2fc   :  { %v581_v19 = vadd.f32 0.5, %v580_v13  ;;  %v4289_v35 = vpop.eup %4288 }
 0x2fd   :  { %v585_v21 = vadd.f32 0.5, %v584_v14  ;;  %v589_v37 = vmul.f32 0.5, %v4289_v35 }
 0x2fe   :  { %v592_v23 = vmul.f32 %v4287_v20, %v581_v19 }
 0x2ff   :  { %v591_v24 = vmul.f32 %v585_v21, %v4854_v28  ;;  %v590_v38 = vadd.f32 0.5, %v589_v37  ;;  %v3039_v28 = vld [vmem:[%s5803_s0 + $0x68] sm:$0xff] }
 0x301   :  { %v4908_v33 = vadd.f32 %v592_v23, %v591_v24 }
 0x303   :  { %4290 = vtanh.f32 %v4908_v33 }
 0x30d   :  { %v4291_v31 = vpop.eup %4290 }
 0x30e   :  { %v595_v52 = vmul.f32 %v4291_v31, %v590_v38 }
 0x310   :  { %v4915_v53 = vmax.f32 %v426_v50, %v595_v52  ;;  %v4917_v54 = vadd.f32 %v595_v52, %v425_v49  ;;  %668 = vmatmul.mubr.f32.vlgmr.msra.gmra.mrb[6].mxu0 %v595_v52  ;;  %739 = vmatmul.mubr.f32.vlgmr.msra.gmra.mrb[6].mxu1 %v595_v52 }
 0x311   :  { %3438 = vmatpush1.bf16.msra.mxu0 %v4482_v8  ;;  %3470 = vmatpush1.bf16.msra.mxu1 %v4510_v18 }
 0x312   :  { %3440 = vmatprep.subr.bf16.mxu0 %v4484_v9  ;;  %3472 = vmatprep.subr.bf16.mxu1 %v4534_v26 }
 0x313   :  { %838 = vmatprep.mubr.f32.mxu0 %v4422_v3  ;;  %909 = vmatprep.mubr.f32.mxu1 %v4422_v3 }
 0x315   :  { %3442 = vmatpush1.bf16.msra.mxu0 %v4506_v16  ;;  %3474 = vmatpush1.bf16.msra.mxu1 %v4546_v30 }
 0x316   :  { %3444 = vmatprep.subr.bf16.mxu0 %v4522_v22  ;;  %3476 = vmatprep.subr.bf16.mxu1 %v4573_v39 }
 0x319   :  { %3446 = vmatpush1.bf16.msra.mxu0 %v4552_v32  ;;  %3478 = vmatpush1.bf16.msra.mxu1 %v4588_v44 }
 0x31a   :  { %3448 = vmatprep.subr.bf16.mxu0 %v4565_v36  ;;  %3480 = vmatprep.subr.bf16.mxu1 %v4600_v48 }
 0x31d   :  { %3450 = vmatpush1.bf16.msra.mxu0 %v4594_v46  ;;  %3482 = vmatpush1.bf16.msra.mxu1 %v4627_v57 }
 0x31e   :  { %3452 = vmatprep.subr.bf16.mxu0 %v4609_v51  ;;  %3484 = vmatprep.subr.bf16.mxu1 %v4636_v60 }
 0x321   :  { %3454 = vmatpush1.bf16.msra.mxu0 %v4630_v58  ;;  %3486 = vmatpush1.bf16.msra.mxu1 %v4663_v7 }
 0x322   :  { %3456 = vmatprep.subr.bf16.mxu0 %v4645_v63  ;;  %3488 = vmatprep.subr.bf16.mxu1 %v4672_v12 }
 0x325   :  { %3458 = vmatpush1.bf16.msra.mxu0 %v4666_v10  ;;  %3490 = vmatpush1.bf16.msra.mxu1 %v4699_v25 }
 0x326   :  { %3460 = vmatprep.subr.bf16.mxu0 %v4681_v15  ;;  %3492 = vmatprep.subr.bf16.mxu1 %v4708_v29 }
 0x329   :  { %3462 = vmatpush1.bf16.msra.mxu0 %v4702_v27  ;;  %3494 = vmatpush1.bf16.msra.mxu1 %v4729_v40 }
 0x32a   :  { %3464 = vmatprep.subr.bf16.mxu0 %v4717_v34  ;;  %3496 = vmatprep.subr.bf16.mxu1 %v4735_v42 }
 0x32d   :  { %3466 = vmatpush1.bf16.msra.mxu0 %v4732_v41  ;;  %3498 = vmatpush1.bf16.msra.mxu1 %v4745_v47 }
 0x32e   :  { %3500 = vmatprep.subr.bf16.mxu0 %v4471_v4  ;;  %3532 = vmatprep.subr.bf16.mxu1 %v4508_v17 }
 0x3e3   :  { %v669_v45 = vpop.f32.mrb[6].mxu0  ;;  %v740_v55 = vpop.f32.mrb[6].mxu1 }
 0x3e4   :  { %v745_v56 = vadd.f32 %v3038_v43, %v669_v45  ;;  %v671_v59 = vpop.f32.mrb[7].mxu0  ;;  %v742_v61 = vpop.f32.mrb[7].mxu1  ;;  %v747_v5 = vadd.f32 %v3040_v62, %v740_v55 }
 0x3e5   :  { %v746_v0 = vadd.f32 %v3039_v28, %v671_v59  ;;  %v748_v11 = vadd.f32 %v3041_v6, %v742_v61 }
 0x3e6   :  { %v749_v1 = vmul.f32 0.5, %v745_v56 }
 0x3e7   :  { %v753_v2 = vmul.f32 0.5, %v746_v0  ;;  %v758_v13 = vmul.f32 0.5, %v748_v11 }
 0x3e8   :  { %4292 = vtanh.f32 %v749_v1  ;;  %v3044_v1 = vld [vmem:[%s5803_s0 + $0x90] sm:$0xff] }
 0x3e9   :  { %4294 = vtanh.f32 %v753_v2 }
 0x3ea   :  { %4296 = vtanh.f32 %v747_v5 }
 0x3eb   :  { %4298 = vtanh.f32 %v758_v13  ;;  %v3045_v13 = vld [vmem:[%s5803_s0 + $0x98] sm:$0xff] }
 0x3f2   :  { %v4293_v14 = vpop.eup %4292 }
 0x3f3   :  { %v4295_v19 = vpop.eup %4294  ;;  %v751_v20 = vmul.f32 0.5, %v4293_v14 }
 0x3f4   :  { %v755_v21 = vmul.f32 0.5, %v4295_v19  ;;  %v4297_v24 = vpop.eup %4296 }
 0x3f5   :  { %v752_v23 = vadd.f32 0.5, %v751_v20  ;;  %v4299_v49 = vpop.eup %4298 }
 0x3f6   :  { %v756_v35 = vadd.f32 0.5, %v755_v21  ;;  %v760_v50 = vmul.f32 0.5, %v4299_v49 }
 0x3f7   :  { %v763_v37 = vmul.f32 %v4297_v24, %v752_v23 }
 0x3f8   :  { %v762_v38 = vmul.f32 %v756_v35, %v4908_v33  ;;  %v761_v52 = vadd.f32 0.5, %v760_v50  ;;  %v3042_v33 = vld [vmem:[%s5803_s0 + $0x80] sm:$0xff] }
 0x3fa   :  { %v4966_v31 = vadd.f32 %v763_v37, %v762_v38 }
 0x3fc   :  { %4300 = vtanh.f32 %v4966_v31 }
 0x406   :  { %v4301_v43 = vpop.eup %4300 }
 0x407   :  { %v4969_v28 = vmul.f32 %v4301_v43, %v761_v52 }
 0x409   :  { %v768_v45 = vmax.f32 %v4915_v53, %v4969_v28  ;;  %v4975_v55 = vadd.f32 %v4969_v28, %v4917_v54  ;;  %839 = vmatmul.mubr.f32.vlgmr.msra.gmra.mrb[8].mxu0 %v4969_v28  ;;  %910 = vmatmul.mubr.f32.vlgmr.msra.gmra.mrb[8].mxu1 %v4969_v28  ;;  %v3043_v54 = vld [vmem:[%s5803_s0 + $0x88] sm:$0xff]  ;;  %v3046_v53 = vld [vmem:[%s5803_s0 + $0xa0] sm:$0xff] }
 0x40a   :  { %3502 = vmatpush1.bf16.msra.mxu0 %v4482_v8  ;;  %3534 = vmatpush1.bf16.msra.mxu1 %v4510_v18 }
 0x40b   :  { %3504 = vmatprep.subr.bf16.mxu0 %v4484_v9  ;;  %3536 = vmatprep.subr.bf16.mxu1 %v4534_v26 }
 0x40c   :  { %1009 = vmatprep.mubr.f32.mxu0 %v4422_v3  ;;  %1080 = vmatprep.mubr.f32.mxu1 %v4422_v3 }
 0x40e   :  { %3506 = vmatpush1.bf16.msra.mxu0 %v4506_v16  ;;  %3538 = vmatpush1.bf16.msra.mxu1 %v4546_v30 }
 0x40f   :  { %3508 = vmatprep.subr.bf16.mxu0 %v4522_v22  ;;  %3540 = vmatprep.subr.bf16.mxu1 %v4573_v39 }
 0x412   :  { %3510 = vmatpush1.bf16.msra.mxu0 %v4552_v32  ;;  %3542 = vmatpush1.bf16.msra.mxu1 %v4588_v44 }
 0x413   :  { %3512 = vmatprep.subr.bf16.mxu0 %v4565_v36  ;;  %3544 = vmatprep.subr.bf16.mxu1 %v4600_v48 }
 0x416   :  { %3514 = vmatpush1.bf16.msra.mxu0 %v4594_v46  ;;  %3546 = vmatpush1.bf16.msra.mxu1 %v4627_v57 }
 0x417   :  { %3516 = vmatprep.subr.bf16.mxu0 %v4609_v51  ;;  %3548 = vmatprep.subr.bf16.mxu1 %v4636_v60 }
 0x41a   :  { %3518 = vmatpush1.bf16.msra.mxu0 %v4630_v58  ;;  %3550 = vmatpush1.bf16.msra.mxu1 %v4663_v7 }
 0x41b   :  { %3520 = vmatprep.subr.bf16.mxu0 %v4645_v63  ;;  %3552 = vmatprep.subr.bf16.mxu1 %v4672_v12 }
 0x41e   :  { %3522 = vmatpush1.bf16.msra.mxu0 %v4666_v10  ;;  %3554 = vmatpush1.bf16.msra.mxu1 %v4699_v25 }
 0x41f   :  { %3524 = vmatprep.subr.bf16.mxu0 %v4681_v15  ;;  %3556 = vmatprep.subr.bf16.mxu1 %v4708_v29 }
 0x422   :  { %3526 = vmatpush1.bf16.msra.mxu0 %v4702_v27  ;;  %3558 = vmatpush1.bf16.msra.mxu1 %v4729_v40 }
 0x423   :  { %3528 = vmatprep.subr.bf16.mxu0 %v4717_v34  ;;  %3560 = vmatprep.subr.bf16.mxu1 %v4735_v42 }
 0x426   :  { %3530 = vmatpush1.bf16.msra.mxu0 %v4732_v41  ;;  %3562 = vmatpush1.bf16.msra.mxu1 %v4745_v47 }
 0x427   :  { %3564 = vmatprep.subr.bf16.mxu0 %v4471_v4  ;;  %3596 = vmatprep.subr.bf16.mxu1 %v4508_v17 }
 0x4dc   :  { %v840_v56 = vpop.f32.mrb[8].mxu0  ;;  %v911_v59 = vpop.f32.mrb[8].mxu1 }
 0x4dd   :  { %v916_v61 = vadd.f32 %v3042_v33, %v840_v56  ;;  %v842_v62 = vpop.f32.mrb[9].mxu0  ;;  %v913_v0 = vpop.f32.mrb[9].mxu1  ;;  %v918_v11 = vadd.f32 %v3044_v1, %v911_v59 }
 0x4de   :  { %v917_v2 = vadd.f32 %v3043_v54, %v842_v62  ;;  %v919_v14 = vadd.f32 %v3045_v13, %v913_v0 }
 0x4df   :  { %v920_v5 = vmul.f32 0.5, %v916_v61 }
 0x4e0   :  { %v924_v6 = vmul.f32 0.5, %v917_v2  ;;  %v929_v19 = vmul.f32 0.5, %v919_v14  ;;  %v3048_v2 = vld [vmem:[%s5803_s0 + $0xb0] sm:$0xff]  ;;  %v3049_v14 = vld [vmem:[%s5803_s0 + $0xb8] sm:$0xff] }
 0x4e1   :  { %4302 = vtanh.f32 %v920_v5 }
 0x4e2   :  { %4304 = vtanh.f32 %v924_v6 }
 0x4e3   :  { %4306 = vtanh.f32 %v918_v11 }
 0x4e4   :  { %4308 = vtanh.f32 %v929_v19 }
 0x4eb   :  { %v4303_v20 = vpop.eup %4302 }
 0x4ec   :  { %v4305_v21 = vpop.eup %4304  ;;  %v922_v23 = vmul.f32 0.5, %v4303_v20 }
 0x4ed   :  { %v926_v24 = vmul.f32 0.5, %v4305_v21  ;;  %v4307_v37 = vpop.eup %4306 }
 0x4ee   :  { %v923_v35 = vadd.f32 0.5, %v922_v23  ;;  %v4309_v43 = vpop.eup %4308 }
 0x4ef   :  { %v927_v38 = vadd.f32 0.5, %v926_v24  ;;  %v931_v33 = vmul.f32 0.5, %v4309_v43 }
 0x4f0   :  { %v934_v49 = vmul.f32 %v4307_v37, %v923_v35 }
 0x4f1   :  { %v933_v50 = vmul.f32 %v927_v38, %v4966_v31  ;;  %v932_v54 = vadd.f32 0.5, %v931_v33  ;;  %v3047_v31 = vld [vmem:[%s5803_s0 + $0xa8] sm:$0xff] }
 0x4f3   :  { %v5026_v52 = vadd.f32 %v934_v49, %v933_v50 }
 0x4f5   :  { %4310 = vtanh.f32 %v5026_v52 }
 0x4ff   :  { %v4311_v56 = vpop.eup %4310 }
 0x500   :  { %v937_v59 = vmul.f32 %v4311_v56, %v932_v54 }
 0x502   :  { %v5032_v61 = vmax.f32 %v768_v45, %v937_v59  ;;  %v5035_v62 = vadd.f32 %v937_v59, %v4975_v55  ;;  %1010 = vmatmul.mubr.f32.vlgmr.msra.gmra.mrb[10].mxu0 %v937_v59  ;;  %1081 = vmatmul.mubr.f32.vlgmr.msra.gmra.mrb[10].mxu1 %v937_v59 }
 0x503   :  { %3566 = vmatpush1.bf16.msra.mxu0 %v4482_v8  ;;  %3598 = vmatpush1.bf16.msra.mxu1 %v4510_v18 }
 0x504   :  { %3568 = vmatprep.subr.bf16.mxu0 %v4484_v9  ;;  %3600 = vmatprep.subr.bf16.mxu1 %v4534_v26 }
 0x505   :  { %1180 = vmatprep.mubr.f32.mxu0 %v4422_v3  ;;  %1251 = vmatprep.mubr.f32.mxu1 %v4422_v3 }
 0x507   :  { %3570 = vmatpush1.bf16.msra.mxu0 %v4506_v16  ;;  %3602 = vmatpush1.bf16.msra.mxu1 %v4546_v30 }
 0x508   :  { %3572 = vmatprep.subr.bf16.mxu0 %v4522_v22  ;;  %3604 = vmatprep.subr.bf16.mxu1 %v4573_v39 }
 0x50b   :  { %3574 = vmatpush1.bf16.msra.mxu0 %v4552_v32  ;;  %3606 = vmatpush1.bf16.msra.mxu1 %v4588_v44 }
 0x50c   :  { %3576 = vmatprep.subr.bf16.mxu0 %v4565_v36  ;;  %3608 = vmatprep.subr.bf16.mxu1 %v4600_v48 }
 0x50f   :  { %3578 = vmatpush1.bf16.msra.mxu0 %v4594_v46  ;;  %3610 = vmatpush1.bf16.msra.mxu1 %v4627_v57 }
 0x510   :  { %3580 = vmatprep.subr.bf16.mxu0 %v4609_v51  ;;  %3612 = vmatprep.subr.bf16.mxu1 %v4636_v60 }
 0x513   :  { %3582 = vmatpush1.bf16.msra.mxu0 %v4630_v58  ;;  %3614 = vmatpush1.bf16.msra.mxu1 %v4663_v7 }
 0x514   :  { %3584 = vmatprep.subr.bf16.mxu0 %v4645_v63  ;;  %3616 = vmatprep.subr.bf16.mxu1 %v4672_v12 }
 0x517   :  { %3586 = vmatpush1.bf16.msra.mxu0 %v4666_v10  ;;  %3618 = vmatpush1.bf16.msra.mxu1 %v4699_v25 }
 0x518   :  { %3588 = vmatprep.subr.bf16.mxu0 %v4681_v15  ;;  %3620 = vmatprep.subr.bf16.mxu1 %v4708_v29 }
 0x51b   :  { %3590 = vmatpush1.bf16.msra.mxu0 %v4702_v27  ;;  %3622 = vmatpush1.bf16.msra.mxu1 %v4729_v40 }
 0x51c   :  { %3592 = vmatprep.subr.bf16.mxu0 %v4717_v34  ;;  %3624 = vmatprep.subr.bf16.mxu1 %v4735_v42 }
 0x51f   :  { %3594 = vmatpush1.bf16.msra.mxu0 %v4732_v41  ;;  %3626 = vmatpush1.bf16.msra.mxu1 %v4745_v47 }
 0x520   :  { %3628 = vmatprep.subr.bf16.mxu0 %v4471_v4  ;;  %3660 = vmatprep.subr.bf16.mxu1 %v4508_v17 }
 0x5d5   :  { %v1011_v28 = vpop.f32.mrb[10].mxu0  ;;  %v1082_v45 = vpop.f32.mrb[10].mxu1 }
 0x5d6   :  { %v1087_v55 = vadd.f32 %v3046_v53, %v1011_v28  ;;  %v1013_v0 = vpop.f32.mrb[11].mxu0  ;;  %v1084_v1 = vpop.f32.mrb[11].mxu1  ;;  %v1089_v13 = vadd.f32 %v3048_v2, %v1082_v45 }
 0x5d7   :  { %v1088_v5 = vadd.f32 %v3047_v31, %v1013_v0  ;;  %v1090_v19 = vadd.f32 %v3049_v14, %v1084_v1 }
 0x5d8   :  { %v1091_v6 = vmul.f32 0.5, %v1087_v55 }
 0x5d9   :  { %v1095_v11 = vmul.f32 0.5, %v1088_v5  ;;  %v1100_v20 = vmul.f32 0.5, %v1090_v19 }
 0x5da   :  { %4312 = vtanh.f32 %v1091_v6  ;;  %v3052_v6 = vld [vmem:[%s5803_s0 + $0xd0] sm:$0xff] }
 0x5db   :  { %4314 = vtanh.f32 %v1095_v11 }
 0x5dc   :  { %4316 = vtanh.f32 %v1089_v13 }
 0x5dd   :  { %4318 = vtanh.f32 %v1100_v20  ;;  %v3053_v20 = vld [vmem:[%s5803_s0 + $0xd8] sm:$0xff] }
 0x5e4   :  { %v4313_v21 = vpop.eup %4312 }
 0x5e5   :  { %v4315_v23 = vpop.eup %4314  ;;  %v1093_v24 = vmul.f32 0.5, %v4313_v21 }
 0x5e6   :  { %v1097_v35 = vmul.f32 0.5, %v4315_v23  ;;  %v4317_v38 = vpop.eup %4316 }
 0x5e7   :  { %v1094_v37 = vadd.f32 0.5, %v1093_v24  ;;  %v4319_v54 = vpop.eup %4318 }
 0x5e8   :  { %v1098_v49 = vadd.f32 0.5, %v1097_v35  ;;  %v1102_v56 = vmul.f32 0.5, %v4319_v54 }
 0x5e9   :  { %v1105_v50 = vmul.f32 %v4317_v38, %v1094_v37 }
 0x5ea   :  { %v1104_v43 = vmul.f32 %v1098_v49, %v5026_v52  ;;  %v1103_v59 = vadd.f32 0.5, %v1102_v56  ;;  %v3050_v52 = vld [vmem:[%s5803_s0 + $0xc0] sm:$0xff] }
 0x5ec   :  { %v5084_v33 = vadd.f32 %v1105_v50, %v1104_v43 }
 0x5ee   :  { %4320 = vtanh.f32 %v5084_v33 }
 0x5f8   :  { %v4321_v53 = vpop.eup %4320 }
 0x5f9   :  { %v5087_v31 = vmul.f32 %v4321_v53, %v1103_v59 }
 0x5fb   :  { %v1110_v28 = vmax.f32 %v5032_v61, %v5087_v31  ;;  %v5093_v45 = vadd.f32 %v5087_v31, %v5035_v62  ;;  %1181 = vmatmul.mubr.f32.vlgmr.msra.gmra.mrb[12].mxu0 %v5087_v31  ;;  %1252 = vmatmul.mubr.f32.vlgmr.msra.gmra.mrb[12].mxu1 %v5087_v31  ;;  %v3051_v62 = vld [vmem:[%s5803_s0 + $0xc8] sm:$0xff]  ;;  %v3054_v61 = vld [vmem:[%s5803_s0 + $0xe0] sm:$0xff] }
 0x5fc   :  { %3630 = vmatpush1.bf16.msra.mxu0 %v4482_v8  ;;  %3662 = vmatpush1.bf16.msra.mxu1 %v4510_v18 }
 0x5fd   :  { %3632 = vmatprep.subr.bf16.mxu0 %v4484_v9  ;;  %3664 = vmatprep.subr.bf16.mxu1 %v4534_v26 }
 0x5fe   :  { %1351 = vmatprep.mubr.f32.mxu0 %v4422_v3  ;;  %1422 = vmatprep.mubr.f32.mxu1 %v4422_v3 }
 0x600   :  { %3634 = vmatpush1.bf16.msra.mxu0 %v4506_v16  ;;  %3666 = vmatpush1.bf16.msra.mxu1 %v4546_v30 }
 0x601   :  { %3636 = vmatprep.subr.bf16.mxu0 %v4522_v22  ;;  %3668 = vmatprep.subr.bf16.mxu1 %v4573_v39 }
 0x604   :  { %3638 = vmatpush1.bf16.msra.mxu0 %v4552_v32  ;;  %3670 = vmatpush1.bf16.msra.mxu1 %v4588_v44 }
 0x605   :  { %3640 = vmatprep.subr.bf16.mxu0 %v4565_v36  ;;  %3672 = vmatprep.subr.bf16.mxu1 %v4600_v48 }
 0x608   :  { %3642 = vmatpush1.bf16.msra.mxu0 %v4594_v46  ;;  %3674 = vmatpush1.bf16.msra.mxu1 %v4627_v57 }
 0x609   :  { %3644 = vmatprep.subr.bf16.mxu0 %v4609_v51  ;;  %3676 = vmatprep.subr.bf16.mxu1 %v4636_v60 }
 0x60c   :  { %3646 = vmatpush1.bf16.msra.mxu0 %v4630_v58  ;;  %3678 = vmatpush1.bf16.msra.mxu1 %v4663_v7 }
 0x60d   :  { %3648 = vmatprep.subr.bf16.mxu0 %v4645_v63  ;;  %3680 = vmatprep.subr.bf16.mxu1 %v4672_v12 }
 0x610   :  { %3650 = vmatpush1.bf16.msra.mxu0 %v4666_v10  ;;  %3682 = vmatpush1.bf16.msra.mxu1 %v4699_v25 }
 0x611   :  { %3652 = vmatprep.subr.bf16.mxu0 %v4681_v15  ;;  %3684 = vmatprep.subr.bf16.mxu1 %v4708_v29 }
 0x614   :  { %3654 = vmatpush1.bf16.msra.mxu0 %v4702_v27  ;;  %3686 = vmatpush1.bf16.msra.mxu1 %v4729_v40 }
 0x615   :  { %3656 = vmatprep.subr.bf16.mxu0 %v4717_v34  ;;  %3688 = vmatprep.subr.bf16.mxu1 %v4735_v42 }
 0x618   :  { %3658 = vmatpush1.bf16.msra.mxu0 %v4732_v41  ;;  %3690 = vmatpush1.bf16.msra.mxu1 %v4745_v47 }
 0x619   :  { %3692 = vmatprep.subr.bf16.mxu0 %v4471_v4  ;;  %3724 = vmatprep.subr.bf16.mxu1 %v4508_v17 }
 0x6ce   :  { %v1182_v55 = vpop.f32.mrb[12].mxu0  ;;  %v1253_v0 = vpop.f32.mrb[12].mxu1 }
 0x6cf   :  { %v1258_v1 = vadd.f32 %v3050_v52, %v1182_v55  ;;  %v1184_v2 = vpop.f32.mrb[13].mxu0  ;;  %v1255_v5 = vpop.f32.mrb[13].mxu1  ;;  %v1260_v19 = vadd.f32 %v3052_v6, %v1253_v0 }
 0x6d0   :  { %v1259_v11 = vadd.f32 %v3051_v62, %v1184_v2  ;;  %v1261_v21 = vadd.f32 %v3053_v20, %v1255_v5 }
 0x6d1   :  { %v1262_v13 = vmul.f32 0.5, %v1258_v1 }
 0x6d2   :  { %v1266_v14 = vmul.f32 0.5, %v1259_v11  ;;  %v1271_v23 = vmul.f32 0.5, %v1261_v21  ;;  %v3056_v11 = vld [vmem:[%s5803_s0 + $0xf0] sm:$0xff]  ;;  %v3057_v21 = vld [vmem:[%s5803_s0 + $0xf8] sm:$0xff] }
 0x6d3   :  { %4322 = vtanh.f32 %v1262_v13 }
 0x6d4   :  { %4324 = vtanh.f32 %v1266_v14 }
 0x6d5   :  { %4326 = vtanh.f32 %v1260_v19 }
 0x6d6   :  { %4328 = vtanh.f32 %v1271_v23 }
 0x6dd   :  { %v4323_v24 = vpop.eup %4322 }
 0x6de   :  { %v4325_v35 = vpop.eup %4324  ;;  %v1264_v37 = vmul.f32 0.5, %v4323_v24 }
 0x6df   :  { %v1268_v38 = vmul.f32 0.5, %v4325_v35  ;;  %v4327_v50 = vpop.eup %4326 }
 0x6e0   :  { %v1265_v49 = vadd.f32 0.5, %v1264_v37  ;;  %v4329_v53 = vpop.eup %4328 }
 0x6e1   :  { %v1269_v43 = vadd.f32 0.5, %v1268_v38  ;;  %v1273_v52 = vmul.f32 0.5, %v4329_v53 }
 0x6e2   :  { %v1276_v54 = vmul.f32 %v4327_v50, %v1265_v49 }
 0x6e3   :  { %v1275_v56 = vmul.f32 %v1269_v43, %v5084_v33  ;;  %v1274_v62 = vadd.f32 0.5, %v1273_v52  ;;  %v3055_v33 = vld [vmem:[%s5803_s0 + $0xe8] sm:$0xff] }
 0x6e5   :  { %v5144_v59 = vadd.f32 %v1276_v54, %v1275_v56 }
 0x6e7   :  { %4330 = vtanh.f32 %v5144_v59 }
 0x6f1   :  { %v4331_v55 = vpop.eup %4330 }
 0x6f2   :  { %v1279_v0 = vmul.f32 %v4331_v55, %v1274_v62 }
 0x6f4   :  { %v5150_v1 = vmax.f32 %v1110_v28, %v1279_v0  ;;  %v5153_v2 = vadd.f32 %v1279_v0, %v5093_v45  ;;  %1352 = vmatmul.mubr.f32.vlgmr.msra.gmra.mrb[14].mxu0 %v1279_v0  ;;  %1423 = vmatmul.mubr.f32.vlgmr.msra.gmra.mrb[14].mxu1 %v1279_v0 }
 0x6f5   :  { %3694 = vmatpush1.bf16.msra.mxu0 %v4482_v8  ;;  %3726 = vmatpush1.bf16.msra.mxu1 %v4510_v18 }
 0x6f6   :  { %3696 = vmatprep.subr.bf16.mxu0 %v4484_v9  ;;  %3728 = vmatprep.subr.bf16.mxu1 %v4534_v26 }
 0x6f7   :  { %1522 = vmatprep.mubr.f32.mxu0 %v4422_v3  ;;  %1593 = vmatprep.mubr.f32.mxu1 %v4422_v3 }
 0x6f9   :  { %3698 = vmatpush1.bf16.msra.mxu0 %v4506_v16  ;;  %3730 = vmatpush1.bf16.msra.mxu1 %v4546_v30 }
 0x6fa   :  { %3700 = vmatprep.subr.bf16.mxu0 %v4522_v22  ;;  %3732 = vmatprep.subr.bf16.mxu1 %v4573_v39 }
 0x6fd   :  { %3702 = vmatpush1.bf16.msra.mxu0 %v4552_v32  ;;  %3734 = vmatpush1.bf16.msra.mxu1 %v4588_v44 }
 0x6fe   :  { %3704 = vmatprep.subr.bf16.mxu0 %v4565_v36  ;;  %3736 = vmatprep.subr.bf16.mxu1 %v4600_v48 }
 0x701   :  { %3706 = vmatpush1.bf16.msra.mxu0 %v4594_v46  ;;  %3738 = vmatpush1.bf16.msra.mxu1 %v4627_v57 }
 0x702   :  { %3708 = vmatprep.subr.bf16.mxu0 %v4609_v51  ;;  %3740 = vmatprep.subr.bf16.mxu1 %v4636_v60 }
 0x705   :  { %3710 = vmatpush1.bf16.msra.mxu0 %v4630_v58  ;;  %3742 = vmatpush1.bf16.msra.mxu1 %v4663_v7 }
 0x706   :  { %3712 = vmatprep.subr.bf16.mxu0 %v4645_v63  ;;  %3744 = vmatprep.subr.bf16.mxu1 %v4672_v12 }
 0x709   :  { %3714 = vmatpush1.bf16.msra.mxu0 %v4666_v10  ;;  %3746 = vmatpush1.bf16.msra.mxu1 %v4699_v25 }
 0x70a   :  { %3716 = vmatprep.subr.bf16.mxu0 %v4681_v15  ;;  %3748 = vmatprep.subr.bf16.mxu1 %v4708_v29 }
 0x70d   :  { %3718 = vmatpush1.bf16.msra.mxu0 %v4702_v27  ;;  %3750 = vmatpush1.bf16.msra.mxu1 %v4729_v40 }
 0x70e   :  { %3720 = vmatprep.subr.bf16.mxu0 %v4717_v34  ;;  %3752 = vmatprep.subr.bf16.mxu1 %v4735_v42 }
 0x711   :  { %3722 = vmatpush1.bf16.msra.mxu0 %v4732_v41  ;;  %3754 = vmatpush1.bf16.msra.mxu1 %v4745_v47 }
 0x712   :  { %3756 = vmatprep.subr.bf16.mxu0 %v4471_v4  ;;  %3788 = vmatprep.subr.bf16.mxu1 %v4508_v17 }
 0x7c7   :  { %v1353_v31 = vpop.f32.mrb[14].mxu0  ;;  %v1424_v28 = vpop.f32.mrb[14].mxu1 }
 0x7c8   :  { %v1429_v45 = vadd.f32 %v3054_v61, %v1353_v31  ;;  %v1355_v5 = vpop.f32.mrb[15].mxu0  ;;  %v1426_v6 = vpop.f32.mrb[15].mxu1  ;;  %v1431_v20 = vadd.f32 %v3056_v11, %v1424_v28 }
 0x7c9   :  { %v1430_v13 = vadd.f32 %v3055_v33, %v1355_v5  ;;  %v1432_v23 = vadd.f32 %v3057_v21, %v1426_v6 }
 0x7ca   :  { %v1433_v14 = vmul.f32 0.5, %v1429_v45 }
 0x7cb   :  { %v1437_v19 = vmul.f32 0.5, %v1430_v13  ;;  %v1442_v24 = vmul.f32 0.5, %v1432_v23 }
 0x7cc   :  { %4332 = vtanh.f32 %v1433_v14  ;;  %v3060_v14 = vld [vmem:[%s5803_s0 + $0x110] sm:$0xff] }
 0x7cd   :  { %4334 = vtanh.f32 %v1437_v19 }
 0x7ce   :  { %4336 = vtanh.f32 %v1431_v20 }
 0x7cf   :  { %4338 = vtanh.f32 %v1442_v24  ;;  %v3061_v24 = vld [vmem:[%s5803_s0 + $0x118] sm:$0xff] }
 0x7d6   :  { %v4333_v35 = vpop.eup %4332 }
 0x7d7   :  { %v4335_v37 = vpop.eup %4334  ;;  %v1435_v38 = vmul.f32 0.5, %v4333_v35 }
 0x7d8   :  { %v1439_v49 = vmul.f32 0.5, %v4335_v37  ;;  %v4337_v43 = vpop.eup %4336 }
 0x7d9   :  { %v1436_v50 = vadd.f32 0.5, %v1435_v38  ;;  %v4339_v62 = vpop.eup %4338 }
 0x7da   :  { %v1440_v54 = vadd.f32 0.5, %v1439_v49  ;;  %v1444_v55 = vmul.f32 0.5, %v4339_v62 }
 0x7db   :  { %v1447_v56 = vmul.f32 %v4337_v43, %v1436_v50 }
 0x7dc   :  { %v1446_v53 = vmul.f32 %v1440_v54, %v5144_v59  ;;  %v1445_v0 = vadd.f32 0.5, %v1444_v55  ;;  %v3058_v59 = vld [vmem:[%s5803_s0 + $0x100] sm:$0xff] }
 0x7de   :  { %v5202_v52 = vadd.f32 %v1447_v56, %v1446_v53 }
 0x7e0   :  { %4340 = vtanh.f32 %v5202_v52 }
 0x7ea   :  { %v4341_v61 = vpop.eup %4340 }
 0x7eb   :  { %v5205_v33 = vmul.f32 %v4341_v61, %v1445_v0 }
 0x7ed   :  { %v1452_v31 = vmax.f32 %v5150_v1, %v5205_v33  ;;  %v5211_v28 = vadd.f32 %v5205_v33, %v5153_v2  ;;  %1523 = vmatmul.mubr.f32.vlgmr.msra.gmra.mrb[16].mxu0 %v5205_v33  ;;  %1594 = vmatmul.mubr.f32.vlgmr.msra.gmra.mrb[16].mxu1 %v5205_v33  ;;  %v3059_v2 = vld [vmem:[%s5803_s0 + $0x108] sm:$0xff]  ;;  %v3062_v1 = vld [vmem:[%s5803_s0 + $0x120] sm:$0xff] }
 0x7ee   :  { %3758 = vmatpush1.bf16.msra.mxu0 %v4482_v8  ;;  %3790 = vmatpush1.bf16.msra.mxu1 %v4510_v18 }
 0x7ef   :  { %3760 = vmatprep.subr.bf16.mxu0 %v4484_v9  ;;  %3792 = vmatprep.subr.bf16.mxu1 %v4534_v26 }
 0x7f0   :  { %1693 = vmatprep.mubr.f32.mxu0 %v4422_v3  ;;  %1764 = vmatprep.mubr.f32.mxu1 %v4422_v3 }
 0x7f2   :  { %3762 = vmatpush1.bf16.msra.mxu0 %v4506_v16  ;;  %3794 = vmatpush1.bf16.msra.mxu1 %v4546_v30 }
 0x7f3   :  { %3764 = vmatprep.subr.bf16.mxu0 %v4522_v22  ;;  %3796 = vmatprep.subr.bf16.mxu1 %v4573_v39 }
 0x7f6   :  { %3766 = vmatpush1.bf16.msra.mxu0 %v4552_v32  ;;  %3798 = vmatpush1.bf16.msra.mxu1 %v4588_v44 }
 0x7f7   :  { %3768 = vmatprep.subr.bf16.mxu0 %v4565_v36  ;;  %3800 = vmatprep.subr.bf16.mxu1 %v4600_v48 }
 0x7fa   :  { %3770 = vmatpush1.bf16.msra.mxu0 %v4594_v46  ;;  %3802 = vmatpush1.bf16.msra.mxu1 %v4627_v57 }
 0x7fb   :  { %3772 = vmatprep.subr.bf16.mxu0 %v4609_v51  ;;  %3804 = vmatprep.subr.bf16.mxu1 %v4636_v60 }
 0x7fe   :  { %3774 = vmatpush1.bf16.msra.mxu0 %v4630_v58  ;;  %3806 = vmatpush1.bf16.msra.mxu1 %v4663_v7 }
 0x7ff   :  { %3776 = vmatprep.subr.bf16.mxu0 %v4645_v63  ;;  %3808 = vmatprep.subr.bf16.mxu1 %v4672_v12 }
 0x802   :  { %3778 = vmatpush1.bf16.msra.mxu0 %v4666_v10  ;;  %3810 = vmatpush1.bf16.msra.mxu1 %v4699_v25 }
 0x803   :  { %3780 = vmatprep.subr.bf16.mxu0 %v4681_v15  ;;  %3812 = vmatprep.subr.bf16.mxu1 %v4708_v29 }
 0x806   :  { %3782 = vmatpush1.bf16.msra.mxu0 %v4702_v27  ;;  %3814 = vmatpush1.bf16.msra.mxu1 %v4729_v40 }
 0x807   :  { %3784 = vmatprep.subr.bf16.mxu0 %v4717_v34  ;;  %3816 = vmatprep.subr.bf16.mxu1 %v4735_v42 }
 0x80a   :  { %3786 = vmatpush1.bf16.msra.mxu0 %v4732_v41  ;;  %3818 = vmatpush1.bf16.msra.mxu1 %v4745_v47 }
 0x80b   :  { %3820 = vmatprep.subr.bf16.mxu0 %v4471_v4  ;;  %3852 = vmatprep.subr.bf16.mxu1 %v4508_v17 }
 0x8c0   :  { %v1524_v45 = vpop.f32.mrb[16].mxu0  ;;  %v1595_v5 = vpop.f32.mrb[16].mxu1 }
 0x8c1   :  { %v1600_v6 = vadd.f32 %v3058_v59, %v1524_v45  ;;  %v1526_v11 = vpop.f32.mrb[17].mxu0  ;;  %v1597_v13 = vpop.f32.mrb[17].mxu1  ;;  %v1602_v23 = vadd.f32 %v3060_v14, %v1595_v5 }
 0x8c2   :  { %v1601_v19 = vadd.f32 %v3059_v2, %v1526_v11  ;;  %v1603_v35 = vadd.f32 %v3061_v24, %v1597_v13 }
 0x8c3   :  { %v1604_v20 = vmul.f32 0.5, %v1600_v6 }
 0x8c4   :  { %v1608_v21 = vmul.f32 0.5, %v1601_v19  ;;  %v1613_v37 = vmul.f32 0.5, %v1603_v35  ;;  %v3064_v19 = vld [vmem:[%s5803_s0 + $0x130] sm:$0xff]  ;;  %v3065_v35 = vld [vmem:[%s5803_s0 + $0x138] sm:$0xff] }
 0x8c5   :  { %4342 = vtanh.f32 %v1604_v20 }
 0x8c6   :  { %4344 = vtanh.f32 %v1608_v21 }
 0x8c7   :  { %4346 = vtanh.f32 %v1602_v23 }
 0x8c8   :  { %4348 = vtanh.f32 %v1613_v37 }
 0x8cf   :  { %v4343_v38 = vpop.eup %4342 }
 0x8d0   :  { %v4345_v49 = vpop.eup %4344  ;;  %v1606_v50 = vmul.f32 0.5, %v4343_v38 }
 0x8d1   :  { %v1610_v43 = vmul.f32 0.5, %v4345_v49  ;;  %v4347_v56 = vpop.eup %4346 }
 0x8d2   :  { %v1607_v54 = vadd.f32 0.5, %v1606_v50  ;;  %v4349_v61 = vpop.eup %4348 }
 0x8d3   :  { %v1611_v53 = vadd.f32 0.5, %v1610_v43  ;;  %v1615_v59 = vmul.f32 0.5, %v4349_v61 }
 0x8d4   :  { %v1618_v62 = vmul.f32 %v4347_v56, %v1607_v54 }
 0x8d5   :  { %v1617_v55 = vmul.f32 %v1611_v53, %v5202_v52  ;;  %v1616_v2 = vadd.f32 0.5, %v1615_v59  ;;  %v3063_v52 = vld [vmem:[%s5803_s0 + $0x128] sm:$0xff] }
 0x8d7   :  { %v5262_v0 = vadd.f32 %v1618_v62, %v1617_v55 }
 0x8d9   :  { %4350 = vtanh.f32 %v5262_v0 }
 0x8e3   :  { %v4351_v45 = vpop.eup %4350 }
 0x8e4   :  { %v1621_v5 = vmul.f32 %v4351_v45, %v1616_v2 }
 0x8e6   :  { %v5268_v6 = vmax.f32 %v1452_v31, %v1621_v5  ;;  %v5271_v11 = vadd.f32 %v1621_v5, %v5211_v28  ;;  %1694 = vmatmul.mubr.f32.vlgmr.msra.gmra.mrb[18].mxu0 %v1621_v5  ;;  %1765 = vmatmul.mubr.f32.vlgmr.msra.gmra.mrb[18].mxu1 %v1621_v5 }
 0x8e7   :  { %3822 = vmatpush1.bf16.msra.mxu0 %v4482_v8  ;;  %3854 = vmatpush1.bf16.msra.mxu1 %v4510_v18 }
 0x8e8   :  { %3824 = vmatprep.subr.bf16.mxu0 %v4484_v9  ;;  %3856 = vmatprep.subr.bf16.mxu1 %v4534_v26 }
 0x8e9   :  { %1864 = vmatprep.mubr.f32.mxu0 %v4422_v3  ;;  %1935 = vmatprep.mubr.f32.mxu1 %v4422_v3 }
 0x8eb   :  { %3826 = vmatpush1.bf16.msra.mxu0 %v4506_v16  ;;  %3858 = vmatpush1.bf16.msra.mxu1 %v4546_v30 }
 0x8ec   :  { %3828 = vmatprep.subr.bf16.mxu0 %v4522_v22  ;;  %3860 = vmatprep.subr.bf16.mxu1 %v4573_v39 }
 0x8ef   :  { %3830 = vmatpush1.bf16.msra.mxu0 %v4552_v32  ;;  %3862 = vmatpush1.bf16.msra.mxu1 %v4588_v44 }
 0x8f0   :  { %3832 = vmatprep.subr.bf16.mxu0 %v4565_v36  ;;  %3864 = vmatprep.subr.bf16.mxu1 %v4600_v48 }
 0x8f3   :  { %3834 = vmatpush1.bf16.msra.mxu0 %v4594_v46  ;;  %3866 = vmatpush1.bf16.msra.mxu1 %v4627_v57 }
 0x8f4   :  { %3836 = vmatprep.subr.bf16.mxu0 %v4609_v51  ;;  %3868 = vmatprep.subr.bf16.mxu1 %v4636_v60 }
 0x8f7   :  { %3838 = vmatpush1.bf16.msra.mxu0 %v4630_v58  ;;  %3870 = vmatpush1.bf16.msra.mxu1 %v4663_v7 }
 0x8f8   :  { %3840 = vmatprep.subr.bf16.mxu0 %v4645_v63  ;;  %3872 = vmatprep.subr.bf16.mxu1 %v4672_v12 }
 0x8fb   :  { %3842 = vmatpush1.bf16.msra.mxu0 %v4666_v10  ;;  %3874 = vmatpush1.bf16.msra.mxu1 %v4699_v25 }
 0x8fc   :  { %3844 = vmatprep.subr.bf16.mxu0 %v4681_v15  ;;  %3876 = vmatprep.subr.bf16.mxu1 %v4708_v29 }
 0x8ff   :  { %3846 = vmatpush1.bf16.msra.mxu0 %v4702_v27  ;;  %3878 = vmatpush1.bf16.msra.mxu1 %v4729_v40 }
 0x900   :  { %3848 = vmatprep.subr.bf16.mxu0 %v4717_v34  ;;  %3880 = vmatprep.subr.bf16.mxu1 %v4735_v42 }
 0x903   :  { %3850 = vmatpush1.bf16.msra.mxu0 %v4732_v41  ;;  %3882 = vmatpush1.bf16.msra.mxu1 %v4745_v47 }
 0x904   :  { %3884 = vmatprep.subr.bf16.mxu0 %v4471_v4  ;;  %3916 = vmatprep.subr.bf16.mxu1 %v4508_v17 }
 0x9b9   :  { %v1695_v33 = vpop.f32.mrb[18].mxu0  ;;  %v1766_v31 = vpop.f32.mrb[18].mxu1 }
 0x9ba   :  { %v1771_v28 = vadd.f32 %v3062_v1, %v1695_v33  ;;  %v1697_v13 = vpop.f32.mrb[19].mxu0  ;;  %v1768_v14 = vpop.f32.mrb[19].mxu1  ;;  %v1773_v24 = vadd.f32 %v3064_v19, %v1766_v31 }
 0x9bb   :  { %v1772_v20 = vadd.f32 %v3063_v52, %v1697_v13  ;;  %v1774_v37 = vadd.f32 %v3065_v35, %v1768_v14 }
 0x9bc   :  { %v1775_v21 = vmul.f32 0.5, %v1771_v28 }
 0x9bd   :  { %v1779_v23 = vmul.f32 0.5, %v1772_v20  ;;  %v1784_v38 = vmul.f32 0.5, %v1774_v37 }
 0x9be   :  { %4352 = vtanh.f32 %v1775_v21  ;;  %v3068_v21 = vld [vmem:[%s5803_s0 + $0x150] sm:$0xff] }
 0x9bf   :  { %4354 = vtanh.f32 %v1779_v23 }
 0x9c0   :  { %4356 = vtanh.f32 %v1773_v24 }
 0x9c1   :  { %4358 = vtanh.f32 %v1784_v38  ;;  %v3069_v38 = vld [vmem:[%s5803_s0 + $0x158] sm:$0xff] }
 0x9c8   :  { %v4353_v49 = vpop.eup %4352 }
 0x9c9   :  { %v4355_v50 = vpop.eup %4354  ;;  %v1777_v43 = vmul.f32 0.5, %v4353_v49 }
 0x9ca   :  { %v1781_v54 = vmul.f32 0.5, %v4355_v50  ;;  %v4357_v53 = vpop.eup %4356 }
 0x9cb   :  { %v1778_v56 = vadd.f32 0.5, %v1777_v43  ;;  %v4359_v2 = vpop.eup %4358 }
 0x9cc   :  { %v1782_v62 = vadd.f32 0.5, %v1781_v54  ;;  %v1786_v45 = vmul.f32 0.5, %v4359_v2 }
 0x9cd   :  { %v1789_v55 = vmul.f32 %v4357_v53, %v1778_v56 }
 0x9ce   :  { %v1788_v61 = vmul.f32 %v1782_v62, %v5262_v0  ;;  %v1787_v5 = vadd.f32 0.5, %v1786_v45  ;;  %v3066_v0 = vld [vmem:[%s5803_s0 + $0x140] sm:$0xff] }
 0x9d0   :  { %v5320_v59 = vadd.f32 %v1789_v55, %v1788_v61 }
 0x9d2   :  { %4360 = vtanh.f32 %v5320_v59 }
 0x9dc   :  { %v4361_v1 = vpop.eup %4360 }
 0x9dd   :  { %v5323_v52 = vmul.f32 %v4361_v1, %v1787_v5 }
 0x9df   :  { %v1794_v33 = vmax.f32 %v5268_v6, %v5323_v52  ;;  %v5329_v31 = vadd.f32 %v5323_v52, %v5271_v11  ;;  %1865 = vmatmul.mubr.f32.vlgmr.msra.gmra.mrb[20].mxu0 %v5323_v52  ;;  %1936 = vmatmul.mubr.f32.vlgmr.msra.gmra.mrb[20].mxu1 %v5323_v52  ;;  %v3067_v11 = vld [vmem:[%s5803_s0 + $0x148] sm:$0xff]  ;;  %v3070_v6 = vld [vmem:[%s5803_s0 + $0x160] sm:$0xff] }
 0x9e0   :  { %3886 = vmatpush1.bf16.msra.mxu0 %v4482_v8  ;;  %3918 = vmatpush1.bf16.msra.mxu1 %v4510_v18 }
 0x9e1   :  { %3888 = vmatprep.subr.bf16.mxu0 %v4484_v9  ;;  %3920 = vmatprep.subr.bf16.mxu1 %v4534_v26 }
 0x9e2   :  { %2035 = vmatprep.mubr.f32.mxu0 %v4422_v3  ;;  %2106 = vmatprep.mubr.f32.mxu1 %v4422_v3 }
 0x9e4   :  { %3890 = vmatpush1.bf16.msra.mxu0 %v4506_v16  ;;  %3922 = vmatpush1.bf16.msra.mxu1 %v4546_v30 }
 0x9e5   :  { %3892 = vmatprep.subr.bf16.mxu0 %v4522_v22  ;;  %3924 = vmatprep.subr.bf16.mxu1 %v4573_v39 }
 0x9e8   :  { %3894 = vmatpush1.bf16.msra.mxu0 %v4552_v32  ;;  %3926 = vmatpush1.bf16.msra.mxu1 %v4588_v44 }
 0x9e9   :  { %3896 = vmatprep.subr.bf16.mxu0 %v4565_v36  ;;  %3928 = vmatprep.subr.bf16.mxu1 %v4600_v48 }
 0x9ec   :  { %3898 = vmatpush1.bf16.msra.mxu0 %v4594_v46  ;;  %3930 = vmatpush1.bf16.msra.mxu1 %v4627_v57 }
 0x9ed   :  { %3900 = vmatprep.subr.bf16.mxu0 %v4609_v51  ;;  %3932 = vmatprep.subr.bf16.mxu1 %v4636_v60 }
 0x9f0   :  { %3902 = vmatpush1.bf16.msra.mxu0 %v4630_v58  ;;  %3934 = vmatpush1.bf16.msra.mxu1 %v4663_v7 }
 0x9f1   :  { %3904 = vmatprep.subr.bf16.mxu0 %v4645_v63  ;;  %3936 = vmatprep.subr.bf16.mxu1 %v4672_v12 }
 0x9f4   :  { %3906 = vmatpush1.bf16.msra.mxu0 %v4666_v10  ;;  %3938 = vmatpush1.bf16.msra.mxu1 %v4699_v25 }
 0x9f5   :  { %3908 = vmatprep.subr.bf16.mxu0 %v4681_v15  ;;  %3940 = vmatprep.subr.bf16.mxu1 %v4708_v29 }
 0x9f8   :  { %3910 = vmatpush1.bf16.msra.mxu0 %v4702_v27  ;;  %3942 = vmatpush1.bf16.msra.mxu1 %v4729_v40 }
 0x9f9   :  { %3912 = vmatprep.subr.bf16.mxu0 %v4717_v34  ;;  %3944 = vmatprep.subr.bf16.mxu1 %v4735_v42 }
 0x9fc   :  { %3914 = vmatpush1.bf16.msra.mxu0 %v4732_v41  ;;  %3946 = vmatpush1.bf16.msra.mxu1 %v4745_v47 }
 0x9fd   :  { %3948 = vmatprep.subr.bf16.mxu0 %v4471_v4  ;;  %3980 = vmatprep.subr.bf16.mxu1 %v4508_v17 }
 0xab2   :  { %v1866_v28 = vpop.f32.mrb[20].mxu0  ;;  %v1937_v13 = vpop.f32.mrb[20].mxu1 }
 0xab3   :  { %v1942_v14 = vadd.f32 %v3066_v0, %v1866_v28  ;;  %v1868_v19 = vpop.f32.mrb[21].mxu0  ;;  %v1939_v20 = vpop.f32.mrb[21].mxu1  ;;  %v1944_v37 = vadd.f32 %v3068_v21, %v1937_v13 }
 0xab4   :  { %v1943_v23 = vadd.f32 %v3067_v11, %v1868_v19  ;;  %v1945_v49 = vadd.f32 %v3069_v38, %v1939_v20 }
 0xab5   :  { %v1946_v24 = vmul.f32 0.5, %v1942_v14 }
 0xab6   :  { %v1950_v35 = vmul.f32 0.5, %v1943_v23  ;;  %v1955_v50 = vmul.f32 0.5, %v1945_v49  ;;  %v3072_v23 = vld [vmem:[%s5803_s0 + $0x170] sm:$0xff]  ;;  %v3073_v49 = vld [vmem:[%s5803_s0 + $0x178] sm:$0xff] }
 0xab7   :  { %4362 = vtanh.f32 %v1946_v24 }
 0xab8   :  { %4364 = vtanh.f32 %v1950_v35 }
 0xab9   :  { %4366 = vtanh.f32 %v1944_v37 }
 0xaba   :  { %4368 = vtanh.f32 %v1955_v50 }
 0xac1   :  { %v4363_v43 = vpop.eup %4362 }
 0xac2   :  { %v4365_v54 = vpop.eup %4364  ;;  %v1948_v56 = vmul.f32 0.5, %v4363_v43 }
 0xac3   :  { %v1952_v53 = vmul.f32 0.5, %v4365_v54  ;;  %v4367_v55 = vpop.eup %4366 }
 0xac4   :  { %v1949_v62 = vadd.f32 0.5, %v1948_v56  ;;  %v4369_v1 = vpop.eup %4368 }
 0xac5   :  { %v1953_v61 = vadd.f32 0.5, %v1952_v53  ;;  %v1957_v0 = vmul.f32 0.5, %v4369_v1 }
 0xac6   :  { %v1960_v2 = vmul.f32 %v4367_v55, %v1949_v62 }
 0xac7   :  { %v1959_v45 = vmul.f32 %v1953_v61, %v5320_v59  ;;  %v1958_v11 = vadd.f32 0.5, %v1957_v0  ;;  %v3071_v59 = vld [vmem:[%s5803_s0 + $0x168] sm:$0xff] }
 0xac9   :  { %v5380_v5 = vadd.f32 %v1960_v2, %v1959_v45 }
 0xacb   :  { %4370 = vtanh.f32 %v5380_v5 }
 0xad5   :  { %v4371_v28 = vpop.eup %4370 }
 0xad6   :  { %v1963_v13 = vmul.f32 %v4371_v28, %v1958_v11 }
 0xad8   :  { %v5386_v14 = vmax.f32 %v1794_v33, %v1963_v13  ;;  %v5389_v19 = vadd.f32 %v1963_v13, %v5329_v31  ;;  %2036 = vmatmul.mubr.f32.vlgmr.msra.gmra.mrb[22].mxu0 %v1963_v13  ;;  %2107 = vmatmul.mubr.f32.vlgmr.msra.gmra.mrb[22].mxu1 %v1963_v13 }
 0xad9   :  { %3950 = vmatpush1.bf16.msra.mxu0 %v4482_v8  ;;  %3982 = vmatpush1.bf16.msra.mxu1 %v4510_v18 }
 0xada   :  { %3952 = vmatprep.subr.bf16.mxu0 %v4484_v9  ;;  %3984 = vmatprep.subr.bf16.mxu1 %v4534_v26 }
 0xadb   :  { %2206 = vmatprep.mubr.f32.mxu0 %v4422_v3  ;;  %2277 = vmatprep.mubr.f32.mxu1 %v4422_v3 }
 0xadd   :  { %3954 = vmatpush1.bf16.msra.mxu0 %v4506_v16  ;;  %3986 = vmatpush1.bf16.msra.mxu1 %v4546_v30 }
 0xade   :  { %3956 = vmatprep.subr.bf16.mxu0 %v4522_v22  ;;  %3988 = vmatprep.subr.bf16.mxu1 %v4573_v39 }
 0xae1   :  { %3958 = vmatpush1.bf16.msra.mxu0 %v4552_v32  ;;  %3990 = vmatpush1.bf16.msra.mxu1 %v4588_v44 }
 0xae2   :  { %3960 = vmatprep.subr.bf16.mxu0 %v4565_v36  ;;  %3992 = vmatprep.subr.bf16.mxu1 %v4600_v48 }
 0xae5   :  { %3962 = vmatpush1.bf16.msra.mxu0 %v4594_v46  ;;  %3994 = vmatpush1.bf16.msra.mxu1 %v4627_v57 }
 0xae6   :  { %3964 = vmatprep.subr.bf16.mxu0 %v4609_v51  ;;  %3996 = vmatprep.subr.bf16.mxu1 %v4636_v60 }
 0xae9   :  { %3966 = vmatpush1.bf16.msra.mxu0 %v4630_v58  ;;  %3998 = vmatpush1.bf16.msra.mxu1 %v4663_v7 }
 0xaea   :  { %3968 = vmatprep.subr.bf16.mxu0 %v4645_v63  ;;  %4000 = vmatprep.subr.bf16.mxu1 %v4672_v12 }
 0xaed   :  { %3970 = vmatpush1.bf16.msra.mxu0 %v4666_v10  ;;  %4002 = vmatpush1.bf16.msra.mxu1 %v4699_v25 }
 0xaee   :  { %3972 = vmatprep.subr.bf16.mxu0 %v4681_v15  ;;  %4004 = vmatprep.subr.bf16.mxu1 %v4708_v29 }
 0xaf1   :  { %3974 = vmatpush1.bf16.msra.mxu0 %v4702_v27  ;;  %4006 = vmatpush1.bf16.msra.mxu1 %v4729_v40 }
 0xaf2   :  { %3976 = vmatprep.subr.bf16.mxu0 %v4717_v34  ;;  %4008 = vmatprep.subr.bf16.mxu1 %v4735_v42 }
 0xaf5   :  { %3978 = vmatpush1.bf16.msra.mxu0 %v4732_v41  ;;  %4010 = vmatpush1.bf16.msra.mxu1 %v4745_v47 }
 0xaf6   :  { %4012 = vmatprep.subr.bf16.mxu0 %v4471_v4  ;;  %4044 = vmatprep.subr.bf16.mxu1 %v4508_v17 }
 0xbab   :  { %v2037_v52 = vpop.f32.mrb[22].mxu0  ;;  %v2108_v33 = vpop.f32.mrb[22].mxu1 }
 0xbac   :  { %v2113_v31 = vadd.f32 %v3070_v6, %v2037_v52  ;;  %v2039_v20 = vpop.f32.mrb[23].mxu0  ;;  %v2110_v21 = vpop.f32.mrb[23].mxu1  ;;  %v2115_v38 = vadd.f32 %v3072_v23, %v2108_v33 }
 0xbad   :  { %v2114_v24 = vadd.f32 %v3071_v59, %v2039_v20  ;;  %v2116_v50 = vadd.f32 %v3073_v49, %v2110_v21 }
 0xbae   :  { %v2117_v35 = vmul.f32 0.5, %v2113_v31 }
 0xbaf   :  { %v2121_v37 = vmul.f32 0.5, %v2114_v24  ;;  %v2126_v43 = vmul.f32 0.5, %v2116_v50 }
 0xbb0   :  { %4372 = vtanh.f32 %v2117_v35  ;;  %v3076_v35 = vld [vmem:[%s5803_s0 + $0x190] sm:$0xff] }
 0xbb1   :  { %4374 = vtanh.f32 %v2121_v37 }
 0xbb2   :  { %4376 = vtanh.f32 %v2115_v38 }
 0xbb3   :  { %4378 = vtanh.f32 %v2126_v43  ;;  %v3077_v43 = vld [vmem:[%s5803_s0 + $0x198] sm:$0xff] }
 0xbba   :  { %v4373_v54 = vpop.eup %4372 }
 0xbbb   :  { %v4375_v56 = vpop.eup %4374  ;;  %v2119_v53 = vmul.f32 0.5, %v4373_v54 }
 0xbbc   :  { %v2123_v62 = vmul.f32 0.5, %v4375_v56  ;;  %v4377_v61 = vpop.eup %4376 }
 0xbbd   :  { %v2120_v55 = vadd.f32 0.5, %v2119_v53  ;;  %v4379_v11 = vpop.eup %4378 }
 0xbbe   :  { %v2124_v2 = vadd.f32 0.5, %v2123_v62  ;;  %v2128_v28 = vmul.f32 0.5, %v4379_v11 }
 0xbbf   :  { %v2131_v45 = vmul.f32 %v4377_v61, %v2120_v55 }
 0xbc0   :  { %v2130_v1 = vmul.f32 %v2124_v2, %v5380_v5  ;;  %v2129_v13 = vadd.f32 0.5, %v2128_v28  ;;  %v3074_v5 = vld [vmem:[%s5803_s0 + $0x180] sm:$0xff] }
 0xbc2   :  { %v5438_v0 = vadd.f32 %v2131_v45, %v2130_v1 }
 0xbc4   :  { %4380 = vtanh.f32 %v5438_v0 }
 0xbce   :  { %v4381_v6 = vpop.eup %4380 }
 0xbcf   :  { %v5441_v59 = vmul.f32 %v4381_v6, %v2129_v13 }
 0xbd1   :  { %v2136_v52 = vmax.f32 %v5386_v14, %v5441_v59  ;;  %v5447_v33 = vadd.f32 %v5441_v59, %v5389_v19  ;;  %2207 = vmatmul.mubr.f32.vlgmr.msra.gmra.mrb[24].mxu0 %v5441_v59  ;;  %2278 = vmatmul.mubr.f32.vlgmr.msra.gmra.mrb[24].mxu1 %v5441_v59  ;;  %v3075_v19 = vld [vmem:[%s5803_s0 + $0x188] sm:$0xff]  ;;  %v3078_v14 = vld [vmem:[%s5803_s0 + $0x1a0] sm:$0xff] }
 0xbd2   :  { %4014 = vmatpush1.bf16.msra.mxu0 %v4482_v8  ;;  %4046 = vmatpush1.bf16.msra.mxu1 %v4510_v18 }
 0xbd3   :  { %4016 = vmatprep.subr.bf16.mxu0 %v4484_v9  ;;  %4048 = vmatprep.subr.bf16.mxu1 %v4534_v26 }
 0xbd4   :  { %2377 = vmatprep.mubr.f32.mxu0 %v4422_v3  ;;  %2448 = vmatprep.mubr.f32.mxu1 %v4422_v3 }
 0xbd6   :  { %4018 = vmatpush1.bf16.msra.mxu0 %v4506_v16  ;;  %4050 = vmatpush1.bf16.msra.mxu1 %v4546_v30 }
 0xbd7   :  { %4020 = vmatprep.subr.bf16.mxu0 %v4522_v22  ;;  %4052 = vmatprep.subr.bf16.mxu1 %v4573_v39 }
 0xbda   :  { %4022 = vmatpush1.bf16.msra.mxu0 %v4552_v32  ;;  %4054 = vmatpush1.bf16.msra.mxu1 %v4588_v44 }
 0xbdb   :  { %4024 = vmatprep.subr.bf16.mxu0 %v4565_v36  ;;  %4056 = vmatprep.subr.bf16.mxu1 %v4600_v48 }
 0xbde   :  { %4026 = vmatpush1.bf16.msra.mxu0 %v4594_v46  ;;  %4058 = vmatpush1.bf16.msra.mxu1 %v4627_v57 }
 0xbdf   :  { %4028 = vmatprep.subr.bf16.mxu0 %v4609_v51  ;;  %4060 = vmatprep.subr.bf16.mxu1 %v4636_v60 }
 0xbe2   :  { %4030 = vmatpush1.bf16.msra.mxu0 %v4630_v58  ;;  %4062 = vmatpush1.bf16.msra.mxu1 %v4663_v7 }
 0xbe3   :  { %4032 = vmatprep.subr.bf16.mxu0 %v4645_v63  ;;  %4064 = vmatprep.subr.bf16.mxu1 %v4672_v12 }
 0xbe6   :  { %4034 = vmatpush1.bf16.msra.mxu0 %v4666_v10  ;;  %4066 = vmatpush1.bf16.msra.mxu1 %v4699_v25 }
 0xbe7   :  { %4036 = vmatprep.subr.bf16.mxu0 %v4681_v15  ;;  %4068 = vmatprep.subr.bf16.mxu1 %v4708_v29 }
 0xbea   :  { %4038 = vmatpush1.bf16.msra.mxu0 %v4702_v27  ;;  %4070 = vmatpush1.bf16.msra.mxu1 %v4729_v40 }
 0xbeb   :  { %4040 = vmatprep.subr.bf16.mxu0 %v4717_v34  ;;  %4072 = vmatprep.subr.bf16.mxu1 %v4735_v42 }
 0xbee   :  { %4042 = vmatpush1.bf16.msra.mxu0 %v4732_v41  ;;  %4074 = vmatpush1.bf16.msra.mxu1 %v4745_v47 }
 0xbef   :  { %4076 = vmatprep.subr.bf16.mxu0 %v4471_v4  ;;  %4108 = vmatprep.subr.bf16.mxu1 %v4508_v17 }
 0xca4   :  { %v2208_v31 = vpop.f32.mrb[24].mxu0  ;;  %v2279_v20 = vpop.f32.mrb[24].mxu1 }
 0xca5   :  { %v2284_v21 = vadd.f32 %v3074_v5, %v2208_v31  ;;  %v2210_v23 = vpop.f32.mrb[25].mxu0  ;;  %v2281_v24 = vpop.f32.mrb[25].mxu1  ;;  %v2286_v50 = vadd.f32 %v3076_v35, %v2279_v20 }
 0xca6   :  { %v2285_v37 = vadd.f32 %v3075_v19, %v2210_v23  ;;  %v2287_v54 = vadd.f32 %v3077_v43, %v2281_v24 }
 0xca7   :  { %v2288_v38 = vmul.f32 0.5, %v2284_v21 }
 0xca8   :  { %v2292_v49 = vmul.f32 0.5, %v2285_v37  ;;  %v2297_v56 = vmul.f32 0.5, %v2287_v54  ;;  %v3080_v37 = vld [vmem:[%s5803_s0 + $0x1b0] sm:$0xff] }
 0xca9   :  { %4382 = vtanh.f32 %v2288_v38 }
 0xcaa   :  { %4384 = vtanh.f32 %v2292_v49 }
 0xcab   :  { %4386 = vtanh.f32 %v2286_v50  ;;  %v3081_v50 = vld [vmem:[%s5803_s0 + $0x1b8] sm:$0xff] }
 0xcac   :  { %4388 = vtanh.f32 %v2297_v56 }
 0xcb3   :  { %v4383_v53 = vpop.eup %4382 }
 0xcb4   :  { %v4385_v62 = vpop.eup %4384  ;;  %v2290_v55 = vmul.f32 0.5, %v4383_v53 }
 0xcb5   :  { %v2294_v61 = vmul.f32 0.5, %v4385_v62  ;;  %v4387_v45 = vpop.eup %4386 }
 0xcb6   :  { %v2291_v2 = vadd.f32 0.5, %v2290_v55  ;;  %v4389_v6 = vpop.eup %4388 }
 0xcb7   :  { %v2295_v1 = vadd.f32 0.5, %v2294_v61  ;;  %v2299_v5 = vmul.f32 0.5, %v4389_v6 }
 0xcb8   :  { %v2302_v11 = vmul.f32 %v4387_v45, %v2291_v2 }
 0xcb9   :  { %v2301_v28 = vmul.f32 %v2295_v1, %v5438_v0  ;;  %v2300_v19 = vadd.f32 0.5, %v2299_v5  ;;  %v3079_v0 = vld [vmem:[%s5803_s0 + $0x1a8] sm:$0xff] }
 0xcbb   :  { %v5498_v13 = vadd.f32 %v2302_v11, %v2301_v28 }
 0xcbd   :  { %4390 = vtanh.f32 %v5498_v13 }
 0xcc7   :  { %v4391_v31 = vpop.eup %4390 }
 0xcc8   :  { %v2305_v20 = vmul.f32 %v4391_v31, %v2300_v19 }
 0xcca   :  { %v5504_v21 = vmax.f32 %v2136_v52, %v2305_v20  ;;  %2378 = vmatmul.mubr.f32.vlgmr.msra.gmra.mrb[26].mxu0 %v2305_v20  ;;  %2449 = vmatmul.mubr.f32.vlgmr.msra.gmra.mrb[26].mxu1 %v2305_v20  ;;  %v5507_v23 = vadd.f32 %v2305_v20, %v5447_v33 }
 0xccb   :  { %4078 = vmatpush1.bf16.msra.mxu0 %v4482_v8  ;;  %4110 = vmatpush1.bf16.msra.mxu1 %v4510_v18 }
 0xccc   :  { %4080 = vmatprep.subr.bf16.mxu0 %v4484_v9  ;;  %4112 = vmatprep.subr.bf16.mxu1 %v4534_v26 }
 0xccd   :  { %2548 = vmatprep.mubr.f32.mxu0 %v4422_v3  ;;  %2619 = vmatprep.mubr.f32.mxu1 %v4422_v3 }
 0xccf   :  { %4082 = vmatpush1.bf16.msra.mxu0 %v4506_v16  ;;  %4114 = vmatpush1.bf16.msra.mxu1 %v4546_v30 }
 0xcd0   :  { %4084 = vmatprep.subr.bf16.mxu0 %v4522_v22  ;;  %4116 = vmatprep.subr.bf16.mxu1 %v4573_v39 }
 0xcd3   :  { %4086 = vmatpush1.bf16.msra.mxu0 %v4552_v32  ;;  %4118 = vmatpush1.bf16.msra.mxu1 %v4588_v44 }
 0xcd4   :  { %4088 = vmatprep.subr.bf16.mxu0 %v4565_v36  ;;  %4120 = vmatprep.subr.bf16.mxu1 %v4600_v48 }
 0xcd7   :  { %4090 = vmatpush1.bf16.msra.mxu0 %v4594_v46  ;;  %4122 = vmatpush1.bf16.msra.mxu1 %v4627_v57 }
 0xcd8   :  { %4092 = vmatprep.subr.bf16.mxu0 %v4609_v51  ;;  %4124 = vmatprep.subr.bf16.mxu1 %v4636_v60 }
 0xcdb   :  { %4094 = vmatpush1.bf16.msra.mxu0 %v4630_v58  ;;  %4126 = vmatpush1.bf16.msra.mxu1 %v4663_v7 }
 0xcdc   :  { %4096 = vmatprep.subr.bf16.mxu0 %v4645_v63  ;;  %4128 = vmatprep.subr.bf16.mxu1 %v4672_v12 }
 0xcdf   :  { %4098 = vmatpush1.bf16.msra.mxu0 %v4666_v10  ;;  %4130 = vmatpush1.bf16.msra.mxu1 %v4699_v25 }
 0xce0   :  { %4100 = vmatprep.subr.bf16.mxu0 %v4681_v15  ;;  %4132 = vmatprep.subr.bf16.mxu1 %v4708_v29 }
 0xce3   :  { %4102 = vmatpush1.bf16.msra.mxu0 %v4702_v27  ;;  %4134 = vmatpush1.bf16.msra.mxu1 %v4729_v40 }
 0xce4   :  { %4104 = vmatprep.subr.bf16.mxu0 %v4717_v34  ;;  %4136 = vmatprep.subr.bf16.mxu1 %v4735_v42 }
 0xce7   :  { %4106 = vmatpush1.bf16.msra.mxu0 %v4732_v41  ;;  %4138 = vmatpush1.bf16.msra.mxu1 %v4745_v47 }
 0xce8   :  { %4140 = vmatprep.subr.bf16.mxu0 %v4471_v4  ;;  %4172 = vmatprep.subr.bf16.mxu1 %v4508_v17 }
 0xd9d   :  { %v2379_v59 = vpop.f32.mrb[26].mxu0  ;;  %v2450_v52 = vpop.f32.mrb[26].mxu1 }
 0xd9e   :  { %v2455_v33 = vadd.f32 %v3078_v14, %v2379_v59  ;;  %v2381_v24 = vpop.f32.mrb[27].mxu0  ;;  %v2452_v35 = vpop.f32.mrb[27].mxu1  ;;  %v2457_v49 = vadd.f32 %v3080_v37, %v2450_v52  ;;  %v2838_v59 = vld [vmem:[%s5804_s2 + $0x80] sm:$0xff]  ;;  %v2839_v52 = vld [vmem:[%s5804_s2 + $0x88] sm:$0xff]  ;;  %v2840_v37 = vld [vmem:[%s5804_s2 + $0x90] sm:$0xff] }
 0xd9f   :  { %v2456_v4 = vadd.f32 %v3079_v0, %v2381_v24  ;;  %v2458_v43 = vadd.f32 %v3081_v50, %v2452_v35  ;;  %v2823_v24 = vld [vmem:[%s5804_s2 + $0x8] sm:$0xff] }
 0xda0   :  { %v2459_v38 = vmul.f32 0.5, %v2455_v33  ;;  %v4203_v33 = vpack.c.bf16 %v2839_v52, %v2838_v59  ;;  %v2940_v52 = vld [vmem:[%s5805_s4 + $0x40] sm:$0xff] }
 0xda1   :  { %v2463_v17 = vmul.f32 0.5, %v2456_v4  ;;  %v2468_v54 = vmul.f32 0.5, %v2458_v43  ;;  %v2841_v4 = vld [vmem:[%s5804_s2 + $0x98] sm:$0xff]  ;;  %v2842_v43 = vld [vmem:[%s5804_s2 + $0xa0] sm:$0xff] }
 0xda2   :  { %4392 = vtanh.f32 %v2459_v38  ;;  %v4207_v38 = vpack.c.bf16 %v2841_v4, %v2840_v37  ;;  %v3086_v4 = vld [vmem:[%s5803_s0 + $0x1e0] sm:$0xff] }
 0xda3   :  { %4394 = vtanh.f32 %v2463_v17  ;;  %v2824_v17 = vld [vmem:[%s5804_s2 + $0x10] sm:$0xff] }
 0xda4   :  { %4396 = vtanh.f32 %v2457_v49  ;;  %v2825_v49 = vld [vmem:[%s5804_s2 + $0x18] sm:$0xff] }
 0xda5   :  { %4398 = vtanh.f32 %v2468_v54  ;;  %v4209_v50 = vpack.c.bf16 %v2825_v49, %v2824_v17  ;;  %v2843_v54 = vld [vmem:[%s5804_s2 + $0xa8] sm:$0xff] }
 0xdac   :  { %v4393_v56 = vpop.eup %4392 }
 0xdad   :  { %v4395_v53 = vpop.eup %4394  ;;  %v2461_v62 = vmul.f32 0.5, %v4393_v56  ;;  %v4211_v56 = vpack.c.bf16 %v2843_v54, %v2842_v43 }
 0xdae   :  { %v2465_v55 = vmul.f32 0.5, %v4395_v53  ;;  %v4397_v2 = vpop.eup %4396  ;;  %v2826_v53 = vld [vmem:[%s5804_s2 + $0x20] sm:$0xff] }
 0xdaf   :  { %v2462_v61 = vadd.f32 0.5, %v2461_v62  ;;  %v4399_v6 = vpop.eup %4398  ;;  %v2827_v62 = vld [vmem:[%s5804_s2 + $0x28] sm:$0xff] }
 0xdb0   :  { %v2466_v45 = vadd.f32 0.5, %v2465_v55  ;;  %v2470_v5 = vmul.f32 0.5, %v4399_v6  ;;  %v4213_v55 = vpack.c.bf16 %v2827_v62, %v2826_v53  ;;  %v2846_v6 = vld [vmem:[%s5804_s2 + $0xc0] sm:$0xff] }
 0xdb1   :  { %v2473_v1 = vmul.f32 %v4397_v2, %v2462_v61  ;;  %v2844_v61 = vld [vmem:[%s5804_s2 + $0xb0] sm:$0xff]  ;;  %v2845_v2 = vld [vmem:[%s5804_s2 + $0xb8] sm:$0xff] }
 0xdb2   :  { %v2472_v11 = vmul.f32 %v2466_v45, %v5498_v13  ;;  %v2471_v19 = vadd.f32 0.5, %v2470_v5  ;;  %v4215_v45 = vpack.c.bf16 %v2845_v2, %v2844_v61  ;;  %v2847_v5 = vld [vmem:[%s5804_s2 + $0xc8] sm:$0xff]  ;;  %v3089_v2 = vld [vmem:[%s5803_s0 + $0x1f8] sm:$0xff] }
 0xdb4   :  { %v5556_v28 = vadd.f32 %v2473_v1, %v2472_v11  ;;  %v2828_v1 = vld [vmem:[%s5804_s2 + $0x30] sm:$0xff]  ;;  %v2829_v11 = vld [vmem:[%s5804_s2 + $0x38] sm:$0xff] }
 0xdb6   :  { %4400 = vtanh.f32 %v5556_v28 }
 0xdc0   :  { %v4401_v31 = vpop.eup %4400 }
 0xdc1   :  { %v5559_v20 = vmul.f32 %v4401_v31, %v2471_v19  ;;  %v4219_v19 = vpack.c.bf16 %v2847_v5, %v2846_v6  ;;  %v2830_v31 = vld [vmem:[%s5804_s2 + $0x40] sm:$0xff] }
 0xdc3   :  { %v2478_v14 = vmax.f32 %v5504_v21, %v5559_v20  ;;  %2549 = vmatmul.mubr.f32.vlgmr.msra.gmra.mrb[28].mxu0 %v5559_v20  ;;  %2620 = vmatmul.mubr.f32.vlgmr.msra.gmra.mrb[28].mxu1 %v5559_v20  ;;  %v5567_v13 = vadd.f32 %v5559_v20, %v5507_v23  ;;  %v2822_v21 = vld [vmem:[%s5804_s2] sm:$0xff]  ;;  %v2831_v20 = vld [vmem:[%s5804_s2 + $0x48] sm:$0xff] }
 0xdc4   :  { %4142 = vmatpush1.bf16.msra.mxu0 %v4482_v8  ;;  %4174 = vmatpush1.bf16.msra.mxu1 %v4510_v18  ;;  %v3082_v8 = vld [vmem:[%s5803_s0 + $0x1c0] sm:$0xff]  ;;  %v4205_v35 = vpack.c.bf16 %v2823_v24, %v2822_v21  ;;  %v2942_v24 = vld [vmem:[%s5805_s4 + $0x50] sm:$0xff] }
 0xdc5   :  { %4144 = vmatprep.subr.bf16.mxu0 %v4484_v9  ;;  %4176 = vmatprep.subr.bf16.mxu1 %v4534_v26  ;;  %v3083_v9 = vld [vmem:[%s5803_s0 + $0x1c8] sm:$0xff] }
 0xdc6   :  { %2719 = vmatprep.mubr.f32.mxu0 %v4422_v3  ;;  %2790 = vmatprep.mubr.f32.mxu1 %v4422_v3 }
 0xdc8   :  { %4146 = vmatpush1.bf16.msra.mxu0 %v4506_v16  ;;  %4178 = vmatpush1.bf16.msra.mxu1 %v4546_v30 }
 0xdc9   :  { %4148 = vmatprep.subr.bf16.mxu0 %v4522_v22  ;;  %4180 = vmatprep.subr.bf16.mxu1 %v4573_v39 }
 0xdcc   :  { %4150 = vmatpush1.bf16.msra.mxu0 %v4552_v32  ;;  %4182 = vmatpush1.bf16.msra.mxu1 %v4588_v44  ;;  %v3084_v32 = vld [vmem:[%s5803_s0 + $0x1d0] sm:$0xff] }
 0xdcd   :  { %4152 = vmatprep.subr.bf16.mxu0 %v4565_v36  ;;  %4184 = vmatprep.subr.bf16.mxu1 %v4600_v48  ;;  %v3085_v48 = vld [vmem:[%s5803_s0 + $0x1d8] sm:$0xff] }
 0xdd0   :  { %4154 = vmatpush1.bf16.msra.mxu0 %v4594_v46  ;;  %4186 = vmatpush1.bf16.msra.mxu1 %v4627_v57 }
 0xdd1   :  { %4156 = vmatprep.subr.bf16.mxu0 %v4609_v51  ;;  %4188 = vmatprep.subr.bf16.mxu1 %v4636_v60 }
 0xdd4   :  { %4158 = vmatpush1.bf16.msra.mxu0 %v4630_v58  ;;  %4190 = vmatpush1.bf16.msra.mxu1 %v4663_v7 }
 0xdd5   :  { %4160 = vmatprep.subr.bf16.mxu0 %v4645_v63  ;;  %4192 = vmatprep.subr.bf16.mxu1 %v4672_v12 }
 0xdd8   :  { %4162 = vmatpush1.bf16.msra.mxu0 %v4666_v10  ;;  %4194 = vmatpush1.bf16.msra.mxu1 %v4699_v25 }
 0xdd9   :  { %4164 = vmatprep.subr.bf16.mxu0 %v4681_v15  ;;  %4196 = vmatprep.subr.bf16.mxu1 %v4708_v29 }
 0xddc   :  { %4166 = vmatpush1.bf16.msra.mxu0 %v4702_v27  ;;  %4198 = vmatpush1.bf16.msra.mxu1 %v4729_v40 }
 0xddd   :  { %4168 = vmatprep.subr.bf16.mxu0 %v4717_v34  ;;  %4200 = vmatprep.subr.bf16.mxu1 %v4735_v42 }
 0xde0   :  { %4170 = vmatpush1.bf16.msra.mxu0 %v4732_v41  ;;  %4202 = vmatpush1.bf16.msra.mxu1 %v4745_v47 }
 0xde1   :  { %4204 = vmatprep.subr.bf16.mxu0 %v4203_v33  ;;  %v2941_v33 = vld [vmem:[%s5805_s4 + $0x48] sm:$0xff] }
 0xde2   :  { %v4248_v21 = vpack.c.bf16 %v2941_v33, %v2940_v52 }
 0xe96   :  { %v2550_v16 = vpop.f32.mrb[28].mxu0  ;;  %v2621_v18 = vpop.f32.mrb[28].mxu1 }
 0xe97   :  { %v2626_v22 = vadd.f32 %v3082_v8, %v2550_v16  ;;  %v2552_v26 = vpop.f32.mrb[29].mxu0  ;;  %v2623_v30 = vpop.f32.mrb[29].mxu1  ;;  %v2628_v46 = vadd.f32 %v3084_v32, %v2621_v18  ;;  %v2849_v8 = vld [vmem:[%s5804_s2 + $0xd8] sm:$0xff] }
 0xe98   :  { %v2627_v36 = vadd.f32 %v3083_v9, %v2552_v26  ;;  %v2629_v51 = vadd.f32 %v3085_v48, %v2623_v30  ;;  %v2832_v9 = vld [vmem:[%s5804_s2 + $0x50] sm:$0xff]  ;;  %v2833_v16 = vld [vmem:[%s5804_s2 + $0x58] sm:$0xff]  ;;  %v2851_v26 = vld [vmem:[%s5804_s2 + $0xe8] sm:$0xff] }
 0xe99   :  { %v2630_v39 = vmul.f32 0.5, %v2626_v22  ;;  %v2850_v22 = vld [vmem:[%s5804_s2 + $0xe0] sm:$0xff]  ;;  %v4225_v30 = vpack.c.bf16 %v2833_v16, %v2832_v9 }
 0xe9a   :  { %v2634_v44 = vmul.f32 0.5, %v2627_v36  ;;  %v2639_v57 = vmul.f32 0.5, %v2629_v51  ;;  %v4227_v32 = vpack.c.bf16 %v2851_v26, %v2850_v22  ;;  %v2834_v36 = vld [vmem:[%s5804_s2 + $0x60] sm:$0xff] }
 0xe9b   :  { %4402 = vtanh.f32 %v2630_v39  ;;  %v2835_v39 = vld [vmem:[%s5804_s2 + $0x68] sm:$0xff] }
 0xe9c   :  { %4404 = vtanh.f32 %v2634_v44  ;;  %v2852_v44 = vld [vmem:[%s5804_s2 + $0xf0] sm:$0xff]  ;;  %v4229_v48 = vpack.c.bf16 %v2835_v39, %v2834_v36  ;;  %v2944_v39 = vld [vmem:[%s5805_s4 + $0x60] sm:$0xff] }
 0xe9d   :  { %4406 = vtanh.f32 %v2628_v46  ;;  %v2853_v46 = vld [vmem:[%s5804_s2 + $0xf8] sm:$0xff] }
 0xe9e   :  { %4408 = vtanh.f32 %v2639_v57  ;;  %v4231_v51 = vpack.c.bf16 %v2853_v46, %v2852_v44  ;;  %v2836_v57 = vld [vmem:[%s5804_s2 + $0x70] sm:$0xff] }
 0xea5   :  { %v4403_v58 = vpop.eup %4402 }
 0xea6   :  { %v4405_v60 = vpop.eup %4404  ;;  %v2632_v63 = vmul.f32 0.5, %v4403_v58  ;;  %v2837_v58 = vld [vmem:[%s5804_s2 + $0x78] sm:$0xff] }
 0xea7   :  { %v2636_v7 = vmul.f32 0.5, %v4405_v60  ;;  %v4407_v12 = vpop.eup %4406  ;;  %v4233_v60 = vpack.c.bf16 %v2837_v58, %v2836_v57 }
 0xea8   :  { %v2633_v10 = vadd.f32 0.5, %v2632_v63  ;;  %v4409_v34 = vpop.eup %4408  ;;  %v4423_v63 = vmov 0.0|0.0  }
 0xea9   :  { %v2637_v15 = vadd.f32 0.5, %v2636_v7  ;;  %v2641_v40 = vmul.f32 0.5, %v4409_v34  ;;  %4235 = vmatprep.subr.bf16.mxu1 %v4423_v63  ;;  %v2932_v7 = vld [vmem:[%s5805_s4] sm:$0xff] }
 0xeaa   :  { %v2644_v25 = vmul.f32 %v4407_v12, %v2633_v10  ;;  %v2933_v10 = vld [vmem:[%s5805_s4 + $0x8] sm:$0xff]  ;;  %v2934_v12 = vld [vmem:[%s5805_s4 + $0x10] sm:$0xff]  ;;  %v2936_v34 = vld [vmem:[%s5805_s4 + $0x20] sm:$0xff] }
 0xeab   :  { %v2643_v27 = vmul.f32 %v2637_v15, %v5556_v28  ;;  %v2642_v41 = vadd.f32 0.5, %v2641_v40  ;;  %v4217_v28 = vpack.c.bf16 %v2829_v11, %v2828_v1  ;;  %v4236_v15 = vpack.c.bf16 %v2933_v10, %v2932_v7  ;;  %v2937_v40 = vld [vmem:[%s5805_s4 + $0x28] sm:$0xff]  ;;  %v3091_v7 = vld [vmem:[%s5807_s5] ss:$0 sm:$0xff] }
 0xead   :  { %v5614_v29 = vadd.f32 %v2644_v25, %v2643_v27  ;;  %v2935_v25 = vld [vmem:[%s5805_s4 + $0x18] sm:$0xff] }
 0xeae   :  { %v4239_v27 = vpack.c.bf16 %v2935_v25, %v2934_v12 }
 0xeaf   :  { %4410 = vtanh.f32 %v5614_v29 }
 0xeb9   :  { %v4411_v42 = vpop.eup %4410 }
 0xeba   :  { %v2647_v47 = vmul.f32 %v4411_v42, %v2642_v41  ;;  %v4242_v41 = vpack.c.bf16 %v2937_v40, %v2936_v34  ;;  %v2938_v42 = vld [vmem:[%s5805_s4 + $0x30] sm:$0xff] }
 0xebc   :  { %v5620_v23 = vmax.f32 %v2478_v14, %v2647_v47  ;;  %2720 = vmatmul.mubr.f32.vlgmr.msra.gmra.mrb[30].mxu0 %v2647_v47  ;;  %2791 = vmatmul.mubr.f32.vlgmr.msra.gmra.mrb[30].mxu1 %v2647_v47  ;;  %v5623_v0 = vadd.f32 %v2647_v47, %v5567_v13  ;;  %v2848_v14 = vld [vmem:[%s5804_s2 + $0xd0] sm:$0xff]  ;;  %v4221_v13 = vpack.c.bf16 %v2831_v20, %v2830_v31  ;;  %v2939_v47 = vld [vmem:[%s5805_s4 + $0x38] sm:$0xff] }
 0xebd   :  { %4206 = vmatpush3.bf16.msra.mxu0 %v4205_v35  ;;  %v4223_v18 = vpack.c.bf16 %v2849_v8, %v2848_v14  ;;  %4237 = vmatpush3.bf16.msra.mxu1 %v4236_v15  ;;  %v4245_v59 = vpack.c.bf16 %v2939_v47, %v2938_v42  ;;  %v2943_v35 = vld [vmem:[%s5805_s4 + $0x58] sm:$0xff] }
 0xebe   :  { %4208 = vmatprep.subr.bf16.mxu0 %v4207_v38  ;;  %4238 = vmatprep.subr.bf16.mxu1 %v4423_v63  ;;  %v4251_v37 = vpack.c.bf16 %v2943_v35, %v2942_v24  ;;  %v3087_v38 = vld [vmem:[%s5803_s0 + $0x1e8] sm:$0xff] }
 0xebf   :  { %3176 = vmatprep.mubr.msk.f32.mxu1 %vm4424_vm0, %v4422_v3 }
 0xec1   :  { %4210 = vmatpush3.bf16.msra.mxu0 %v4209_v50  ;;  %4240 = vmatpush3.bf16.msra.mxu1 %v4239_v27 }
 0xec2   :  { %4212 = vmatprep.subr.bf16.mxu0 %v4211_v56  ;;  %4241 = vmatprep.subr.bf16.mxu1 %v4423_v63  ;;  %v3088_v56 = vld [vmem:[%s5803_s0 + $0x1f0] sm:$0xff] }
 0xec5   :  { %4214 = vmatpush3.bf16.msra.mxu0 %v4213_v55  ;;  %4243 = vmatpush3.bf16.msra.mxu1 %v4242_v41 }
 0xec6   :  { %4216 = vmatprep.subr.bf16.mxu0 %v4215_v45  ;;  %4244 = vmatprep.subr.bf16.mxu1 %v4423_v63 }
 0xec9   :  { %4218 = vmatpush3.bf16.msra.mxu0 %v4217_v28  ;;  %4246 = vmatpush3.bf16.msra.mxu1 %v4245_v59 }
 0xeca   :  { %4220 = vmatprep.subr.bf16.mxu0 %v4219_v19  ;;  %4247 = vmatprep.subr.bf16.mxu1 %v4423_v63 }
 0xecd   :  { %4222 = vmatpush3.bf16.msra.mxu0 %v4221_v13  ;;  %4249 = vmatpush3.bf16.msra.mxu1 %v4248_v21 }
 0xece   :  { %4224 = vmatprep.subr.bf16.mxu0 %v4223_v18  ;;  %4250 = vmatprep.subr.bf16.mxu1 %v4423_v63 }
 0xed1   :  { %4226 = vmatpush3.bf16.msra.mxu0 %v4225_v30  ;;  %4252 = vmatpush3.bf16.msra.mxu1 %v4251_v37 }
 0xed2   :  { %4228 = vmatprep.subr.bf16.mxu0 %v4227_v32  ;;  %4253 = vmatprep.subr.bf16.mxu1 %v4423_v63 }
 0xed5   :  { %4230 = vmatpush3.bf16.msra.mxu0 %v4229_v48 }
 0xed6   :  { %4232 = vmatprep.subr.bf16.mxu0 %v4231_v51  ;;  %v3090_v51 = vld [vmem:[%s5806_s3] ss:$0 sm:$0xff] }
 0xed9   :  { %4234 = vmatpush3.bf16.msra.mxu0 %v4233_v60 }
 0xf8f   :  { %v2721_v17 = vpop.f32.mrb[30].mxu0  ;;  %v2792_v49 = vpop.f32.mrb[30].mxu1 }
 0xf90   :  { %v2797_v50 = vadd.f32 %v3086_v4, %v2721_v17  ;;  %v2723_v43 = vpop.f32.mrb[31].mxu0  ;;  %v2794_v54 = vpop.f32.mrb[31].mxu1  ;;  %v2799_v61 = vadd.f32 %v3088_v56, %v2792_v49 }
 0xf91   :  { %v2798_v53 = vadd.f32 %v3087_v38, %v2723_v43  ;;  %v2800_v45 = vadd.f32 %v3089_v2, %v2794_v54 }
 0xf92   :  { %v2801_v62 = vmul.f32 0.5, %v2797_v50 }
 0xf93   :  { %v2805_v55 = vmul.f32 0.5, %v2798_v53  ;;  %v2810_v1 = vmul.f32 0.5, %v2800_v45 }
 0xf94   :  { %4412 = vtanh.f32 %v2801_v62 }
 0xf95   :  { %4414 = vtanh.f32 %v2805_v55 }
 0xf96   :  { %4416 = vtanh.f32 %v2799_v61 }
 0xf97   :  { %4418 = vtanh.f32 %v2810_v1 }
 0xf9e   :  { %v4413_v11 = vpop.eup %4412 }
 0xf9f   :  { %v4415_v28 = vpop.eup %4414  ;;  %v2803_v6 = vmul.f32 0.5, %v4413_v11 }
 0xfa0   :  { %v2807_v5 = vmul.f32 0.5, %v4415_v28  ;;  %v4417_v31 = vpop.eup %4416 }
 0xfa1   :  { %v2804_v19 = vadd.f32 0.5, %v2803_v6  ;;  %v4419_v9 = vpop.eup %4418 }
 0xfa2   :  { %v2808_v20 = vadd.f32 0.5, %v2807_v5  ;;  %v2812_v16 = vmul.f32 0.5, %v4419_v9 }
 0xfa3   :  { %v2815_v14 = vmul.f32 %v4417_v31, %v2804_v19 }
 0xfa4   :  { %v2814_v13 = vmul.f32 %v2808_v20, %v5614_v29  ;;  %v2813_v18 = vadd.f32 0.5, %v2812_v16  ;;  %v2945_v29 = vld [vmem:[%s5805_s4 + $0x68] sm:$0xff] }
 0xfa5   :  { %v4254_v44 = vpack.c.bf16 %v2945_v29, %v2944_v39 }
 0xfa6   :  { %v2816_v8 = vadd.f32 %v2815_v14, %v2814_v13 }
 0xfa7   :  { %4255 = vmatpush3.bf16.msra.mxu1 %v4254_v44 }
 0xfa8   :  { %4420 = vtanh.f32 %v2816_v8  ;;  %4256 = vmatprep.subr.bf16.mxu1 %v4423_v63 }
 0xfb2   :  { %v4421_v22 = vpop.eup %4420 }
 0xfb3   :  { %v2818_v26 = vmul.f32 %v4421_v22, %v2813_v18 }
 0xfb5   :  { %v2820_v30 = vmax.f32 %v5620_v23, %v2818_v26  ;;  %v2819_v32 = vadd.f32 %v2818_v26, %v5623_v0  ;;  %v2946_v23 = vld [vmem:[%s5805_s4 + $0x70] sm:$0xff]  ;;  %v2947_v0 = vld [vmem:[%s5805_s4 + $0x78] sm:$0xff] }
 0xfb6   :  { %v4257_v46 = vpack.c.bf16 %v2947_v0, %v2946_v23 }
 0xfb7   :  { %2925 = vmatprep.mubr.f32.mxu0 %v2820_v30  ;;  %v2821_v36 = vmul.f32 0.0625, %v2819_v32 }
 0xfb8   :  { %4258 = vmatpush3.bf16.msra.mxu1 %v4257_v46 }
 0xfb9   :  { %2926 = vmatmul.mubr.f32.vlgmr.msra.gmra.mrb[32].mxu0 %v2821_v36 }
0x108c   :  { %v3124_v48 = vpop.f32.mrb[32].mxu0 }
0x108d   :  { %v3125_v57 = vpop.f32.mrb[33].mxu0 }
0x108e   :  { %v3126_v58 = vadd.f32 %v3125_v57, %v3124_v48 }
0x1090   :  { %v2928_v60 = vadd.f32 %v3126_v58, %v3090_v51 }
0x1092   :  { %v2931_v63 = vmax.f32 %v2928_v60, 0.0 }
0x1094   :  { %3177 = vmatmul.mubr.f32.vlgmr.msra.gmra.mrb[32].mxu1 %v2931_v63 }
0x1167   :  { %v3021_v10 = vpop.f32.mrb[32].mxu1 }
0x1168   :  { %v3022_v12 = vadd.f32 %v3091_v7, %v3021_v10  ;;  %v3178_v15 = vpop.f32.mrb[33].mxu1 }
0x116a   :  { %3025 = vst [vmem:[%s5808_s6] sm:$0xff] %v3022_v12 }

</bundles_post_ra>
